<compile_context>
chip_gen: v6e
topology: v6e:2x2x1
jax: 0.10.0
libtpu: 0.0.40
codegen_flags: <defaults>
</compile_context>

<pallas_src>
import numpy as np
import jax
import jax.numpy as jnp
from jax import lax
from jax.experimental import pallas as pl
from jax.experimental.pallas import tpu as pltpu

VMEM = pl.BlockSpec(memory_space=pltpu.MemorySpace.VMEM)
EPS = 1e-5          # PyG BatchNorm default eps
NEG = -1e30         # mask sentinel for max-aggregation (f32 math only)
OUT_PAD = 128       # lane-dense padding of the 1-wide final output
LANES = 128


def _r8(n):
    return ((n + 7) // 8) * 8


# ------------------------------ parameters ---------------------------------

def init_linear(key, fan_in, fan_out):
    kw, kb = jax.random.split(key)
    bound = 1.0 / np.sqrt(fan_in)
    w = jax.random.uniform(kw, (fan_in, fan_out), jnp.float32, -bound, bound)
    b = jax.random.uniform(kb, (1, fan_out), jnp.float32, -bound, bound)
    return w, b


def init_mlp(key, dims):
    keys = jax.random.split(key, len(dims) - 1)
    return [init_linear(k, dims[i], dims[i + 1]) for i, k in enumerate(keys)]


def init_graph_unet_params(key, num_layers=3, num_channels=8,
                           mlp_dims=(128, 128), conv_dims=(32, 32)):
    params = {"Lconvs": [], "Rconvs": [], "Lnorms": [], "Rnorms": []}
    no = num_channels
    for i in range(num_layers):
        ni = 3 if i == 0 else num_channels + 2
        key, kl, kr = jax.random.split(key, 3)
        params["Lconvs"].append(init_mlp(kl, [2 * ni, *conv_dims, no]))
        params["Rconvs"].append(init_mlp(kr, [2 * (no * 2 + 2), *conv_dims, no]))
        params["Lnorms"].append((jnp.ones((1, no), jnp.float32),
                                 jnp.zeros((1, no), jnp.float32)))
        params["Rnorms"].append((jnp.ones((1, no), jnp.float32),
                                 jnp.zeros((1, no), jnp.float32)))
    key, km = jax.random.split(key)
    params["mlp_out"] = init_mlp(km, [no, *mlp_dims, 1])
    return params


# --------------------------- host-side packing ------------------------------

class _Slab:
    """Packs many small 2-D arrays into one [R, 128] slab (8-row aligned items)."""

    def __init__(self, dtype):
        self.dtype = dtype
        self.items = {}          # name -> (row_offset, rows, cols)
        self.blocks = []
        self.rows = 0

    def add(self, name, arr):
        arr = np.asarray(arr)
        if arr.ndim == 1:
            arr = arr.reshape(1, -1)
        arr = arr.astype(self.dtype)
        r, c = arr.shape
        assert c <= LANES, (name, arr.shape)
        padded = np.zeros((_r8(r), LANES), self.dtype)
        padded[:r, :c] = arr
        self.items[name] = (self.rows, r, c)
        self.blocks.append(padded)
        self.rows += padded.shape[0]

    def pack(self):
        if not self.blocks:
            return np.zeros((8, LANES), self.dtype)
        return np.concatenate(self.blocks, axis=0)


def _pad_edges(src, dst, n):
    """Group edges by destination into max_deg slot blocks of 8-aligned size n8.
    Padded edge row (d*n8 + j) is the d-th incoming edge of node j (or a masked
    dummy).  Returns (max_deg, n8, dst_col, src_col, pad_neg, has_edge)."""
    src = np.asarray(src).astype(np.int64).reshape(-1)
    dst = np.asarray(dst).astype(np.int64).reshape(-1)
    deg = np.bincount(dst, minlength=n) if dst.size else np.zeros(n, np.int64)
    max_deg = max(int(deg.max()) if deg.size else 0, 1)
    n8 = _r8(n)
    src_pad = np.zeros((max_deg, n8), np.int64)
    dst_pad = np.zeros((max_deg, n8), np.int64)
    dst_pad[:, :n] = np.arange(n)
    real = np.zeros((max_deg, n8), np.float32)
    slot = np.zeros(n, np.int64)
    for e in range(dst.size):
        d = int(dst[e]); s = int(src[e])
        src_pad[slot[d], d] = s
        real[slot[d], d] = 1.0
        slot[d] += 1
    pad_neg = np.where(real.reshape(-1, 1) > 0.5,
                       np.float32(0.0), np.float32(NEG)).astype(np.float32)
    has_edge = (deg > 0).astype(np.float32).reshape(-1, 1)
    return (max_deg, n8, dst_pad.reshape(-1, 1).astype(np.int32),
            src_pad.reshape(-1, 1).astype(np.int32), pad_neg, has_edge)


def _prep_edgeconv_np(mlp_params, widths):
    """Re-associate EdgeConv W1 (rows = [x_i ; x_j - x_i]) so the per-edge
    concat disappears:  h1 = x_i @ (W1a - W1b) + x_j @ W1b + b1,
    split per input piece (pos / feat / skip)."""
    (w1, b1), (w2, b2), (w3, b3) = [
        (np.asarray(w, np.float32), np.asarray(b, np.float32)) for (w, b) in mlp_params]
    ni = sum(widths)
    wd_full = w1[:ni, :] - w1[ni:, :]     # multiplies x_i pieces
    wb_full = w1[ni:, :]                  # multiplies x_j pieces
    wds, wbs, off = [], [], 0
    for wdt in widths:
        wds.append(wd_full[off:off + wdt, :])
        wbs.append(wb_full[off:off + wdt, :])
        off += wdt
    return wds, wbs, b1, w2, b2, w3, b3


# ----------------------------- fused kernel --------------------------------

def _make_fused_kernel(num_layers, Ns, N8s, max_degs, H1, f_items, i_items):
    f32 = jnp.float32

    def kernel(fslab_ref, islab_ref, out_ref):
        def rf(name):
            off, r, c = f_items[name]
            return fslab_ref[off:off + r, :c]

        def rf_row(name, r):
            off, _, c = f_items[name]
            return fslab_ref[off + r:off + r + 1, :c]

        def rf_col(name, k):
            off, r, _ = f_items[name]
            return fslab_ref[off:off + r, k:k + 1]

        def ri(name):
            off, r, c = i_items[name]
            return islab_ref[off:off + r, :c]

        # ---- static graph structure, built ONCE per level (shared L/R) ----
        Gdst, Gsrc, padneg, hasedge = [], [], [], []
        for i in range(num_layers):
            n, n8, md = Ns[i], N8s[i], max_degs[i]
            e = md * n8
            iota = lax.broadcasted_iota(jnp.int32, (e, n), 1)   # one iota per level
            Gdst.append((iota == ri(f"dstpad_{i}")).astype(f32))   # [e, n]
            Gsrc.append((iota == ri(f"srcpad_{i}")).astype(f32))   # [e, n]
            padneg.append(rf(f"padneg_{i}"))                       # [e, 1]
            hasedge.append(rf(f"hasedge_{i}"))                     # [n, 1]

        assign, pool_inv, unpool_g = [], [], []
        for c in range(num_layers - 1):
            nf, k = Ns[c], Ns[c + 1]
            row = ri(f"cl_row_{c}")                                 # [1, nf]
            A = (lax.broadcasted_iota(jnp.int32, (k, nf), 0) == row).astype(f32)
            assign.append(A)
            counts = jnp.sum(A, axis=1, keepdims=True)
            pool_inv.append(pl.reciprocal(jnp.maximum(counts, 1.0), approx=True))
            col = ri(f"cl_col_{c}")                                 # [nf, 1]
            unpool_g.append(
                (lax.broadcasted_iota(jnp.int32, (nf, k), 1) == col).astype(f32))

        # ------------------------- helpers -------------------------
        def piece_proj(piece, wd_name, wb_name):
            """First-layer projection of one input piece -> (a_part, b_part).
            Slab-resident narrow pieces (width<=4) use VPU rank-K updates
            (zero MXU pushes); computed 8-wide pieces use MXU dots."""
            if isinstance(piece, str):
                _, _, width = f_items[piece]
                ca = cb = None
                for k in range(width):
                    colv = rf_col(piece, k)                 # [n, 1]
                    wdr = rf_row(wd_name, k)                # [1, H1]
                    wbr = rf_row(wb_name, k)
                    ca = colv * wdr if ca is None else ca + colv * wdr
                    cb = colv * wbr if cb is None else cb + colv * wbr
                return ca, cb
            return (jnp.dot(piece, rf(wd_name), preferred_element_type=f32),
                    jnp.dot(piece, rf(wb_name), preferred_element_type=f32))

        def edge_conv(pieces, lvl, prefix):
            """EdgeConv(aggr='max') on the padded, dst-grouped edge layout."""
            n, n8, md = Ns[lvl], N8s[lvl], max_degs[lvl]
            a = bp = None
            for kk, p in enumerate(pieces):
                ca, cb = piece_proj(p, f"{prefix}wd_{lvl}_{kk}",
                                    f"{prefix}wb_{lvl}_{kk}")
                a = ca if a is None else a + ca
                bp = cb if bp is None else bp + cb
            # gather node projections onto padded edges (MXU one-hot matmuls)
            h = (jnp.dot(Gdst[lvl], a, preferred_element_type=f32)
                 + jnp.dot(Gsrc[lvl], bp, preferred_element_type=f32)
                 + rf(f"{prefix}b1_{lvl}"))
            h = jnp.maximum(h, 0.0)
            h = jnp.maximum(
                jnp.dot(h, rf(f"{prefix}w2_{lvl}"), preferred_element_type=f32)
                + rf(f"{prefix}b2_{lvl}"), 0.0)
            msg = (jnp.dot(h, rf(f"{prefix}w3_{lvl}"), preferred_element_type=f32)
                   + rf(f"{prefix}b3_{lvl}") + padneg[lvl])       # [md*n8, C]
            # bounded segment-max: md aligned [n8, C] elementwise maxima
            agg = msg[0:n8, :]
            for d in range(1, md):
                agg = jnp.maximum(agg, msg[d * n8:(d + 1) * n8, :])
            if n != n8:
                agg = agg[0:n, :]
            # PyG fill for nodes with no incoming edges: 0
            return jnp.where(hasedge[lvl] > 0.0, agg, 0.0)

        def relu_bn(v, prefix, lvl):
            # y = BatchNorm(ReLU(v)), training-mode batch stats, biased variance
            y = jnp.maximum(v, 0.0)
            inv_n = f32(1.0 / y.shape[0])
            mean = jnp.sum(y, axis=0, keepdims=True) * inv_n
            d = y - mean
            var = jnp.sum(d * d, axis=0, keepdims=True) * inv_n
            return (rf(f"{prefix}gamma_{lvl}") * d * lax.rsqrt(var + f32(EPS))
                    + rf(f"{prefix}beta_{lvl}"))

        # ------------------------- encoder (L) -------------------------
        x = [None] * num_layers
        x[0] = "x_full_0"
        for i in range(num_layers - 1):
            pieces = [x[0]] if i == 0 else [f"pos_{i}", x[i]]
            xi = relu_bn(edge_conv(pieces, i, "L"), "L", i)
            x[i] = xi
            x[i + 1] = jnp.dot(assign[i], xi,
                               preferred_element_type=f32) * pool_inv[i]
        i = num_layers - 1
        X = relu_bn(edge_conv([f"pos_{i}", x[i]], i, "L"), "L", i)

        # ------------------------- decoder (R) -------------------------
        for i in range(num_layers, 0, -1):
            j = i - 1
            X = relu_bn(edge_conv([f"pos_{j}", x[j], X], j, "R"), "R", j)
            if j > 0:
                X = jnp.dot(unpool_g[j - 1], X, preferred_element_type=f32)

        # ------------------------- output MLP --------------------------
        h = jnp.maximum(jnp.dot(X, rf("mw1"), preferred_element_type=f32)
                        + rf("mb1"), 0.0)
        h = jnp.maximum(jnp.dot(h, rf("mw2"), preferred_element_type=f32)
                        + rf("mb2"), 0.0)
        out_ref[...] = (jnp.dot(h, rf("mw3p"), preferred_element_type=f32)
                        + rf("mb3p"))

    return kernel


# ------------------------------ forward pass -------------------------------

def graph_unet_forward(params, xs, edge_indices, clusters, num_layers=3):
    C = int(np.asarray(params["Lnorms"][0][0]).shape[1])
    H1 = int(np.asarray(params["Lconvs"][0][0][0]).shape[1])
    Ns = [int(np.asarray(v).shape[0]) for v in xs]
    l_widths = [[int(np.asarray(xs[0]).shape[1])]] + [[2, C]] * (num_layers - 1)
    r_widths = [[2, C, C]] * num_layers

    fslab, islab = _Slab(np.float32), _Slab(np.int32)

    # graph structure + node features
    N8s, max_degs = [], []
    for i in range(num_layers):
        src, dst = edge_indices[i]
        md, n8, dst_col, src_col, pad_neg, has_edge = _pad_edges(src, dst, Ns[i])
        max_degs.append(md)
        N8s.append(n8)
        islab.add(f"dstpad_{i}", dst_col)
        islab.add(f"srcpad_{i}", src_col)
        fslab.add(f"padneg_{i}", pad_neg)
        fslab.add(f"hasedge_{i}", has_edge)
        xi = np.asarray(xs[i], np.float32)
        fslab.add(f"pos_{i}", xi[:, :2])          # host-side pre-slice of x[:, :2]
        if i == 0:
            fslab.add("x_full_0", xi)
    for c in range(num_layers - 1):
        cl = np.asarray(clusters[c]).astype(np.int32).reshape(-1)
        islab.add(f"cl_row_{c}", cl.reshape(1, -1))
        islab.add(f"cl_col_{c}", cl.reshape(-1, 1))

    # conv / norm / output-MLP weights
    def add_conv(prefix, lvl, mlp_params, widths):
        wds, wbs, b1, w2, b2, w3, b3 = _prep_edgeconv_np(mlp_params, widths)
        for k in range(len(widths)):
            fslab.add(f"{prefix}wd_{lvl}_{k}", wds[k])
            fslab.add(f"{prefix}wb_{lvl}_{k}", wbs[k])
        fslab.add(f"{prefix}b1_{lvl}", b1)
        fslab.add(f"{prefix}w2_{lvl}", w2)
        fslab.add(f"{prefix}b2_{lvl}", b2)
        fslab.add(f"{prefix}w3_{lvl}", w3)
        fslab.add(f"{prefix}b3_{lvl}", b3)

    for i in range(num_layers):
        add_conv("L", i, params["Lconvs"][i], l_widths[i])
        g, b = params["Lnorms"][i]
        fslab.add(f"Lgamma_{i}", np.asarray(g))
        fslab.add(f"Lbeta_{i}", np.asarray(b))
    for i in range(num_layers):
        add_conv("R", i, params["Rconvs"][i], r_widths[i])
        g, b = params["Rnorms"][i]
        fslab.add(f"Rgamma_{i}", np.asarray(g))
        fslab.add(f"Rbeta_{i}", np.asarray(b))

    (mw1, mb1), (mw2, mb2), (mw3, mb3) = params["mlp_out"]
    mw3 = np.asarray(mw3, np.float32)
    mb3 = np.asarray(mb3, np.float32)
    out_dim = int(mw3.shape[1])
    mw3p = np.zeros((mw3.shape[0], OUT_PAD), np.float32)
    mw3p[:, :out_dim] = mw3                        # lane-dense final layer
    mb3p = np.zeros((1, OUT_PAD), np.float32)
    mb3p[:, :out_dim] = mb3
    fslab.add("mw1", np.asarray(mw1)); fslab.add("mb1", np.asarray(mb1))
    fslab.add("mw2", np.asarray(mw2)); fslab.add("mb2", np.asarray(mb2))
    fslab.add("mw3p", mw3p);           fslab.add("mb3p", mb3p)

    f_arr = fslab.pack()
    i_arr = islab.pack()

    kernel = _make_fused_kernel(num_layers, Ns, N8s, max_degs, H1,
                                fslab.items, islab.items)

    # explicit VMEM budget: resident slabs + output + activation headroom
    resident = f_arr.nbytes + i_arr.nbytes + Ns[0] * OUT_PAD * 4
    vmem_limit = int(min(max(4 * resident + (4 << 20), 16 << 20), 48 << 20))

    out_padded = pl.pallas_call(
        kernel,
        out_shape=jax.ShapeDtypeStruct((Ns[0], OUT_PAD), jnp.float32),
        in_specs=[VMEM, VMEM],
        out_specs=VMEM,
        compiler_params=pltpu.CompilerParams(vmem_limit_bytes=vmem_limit),
    )(f_arr, i_arr)
    return out_padded[:, :out_dim]


# --------------------------------- main -------------------------------------

if __name__ == "__main__":
    key = jax.random.PRNGKey(0)
    kp, k0, k1, k2 = jax.random.split(key, 4)

    num_layers = 3
    params = init_graph_unet_params(kp, num_layers=num_layers, num_channels=8)

    # Three graph levels (fine -> coarse)
    Ns = [16, 8, 4]
    xs = [
        jax.random.normal(k0, (Ns[0], 3), jnp.float32),  # level-0 node features
        jax.random.normal(k1, (Ns[1], 2), jnp.float32),  # coarser: only [:, :2] used
        jax.random.normal(k2, (Ns[2], 2), jnp.float32),
    ]

    def ring_edges(n):
        idx = np.arange(n)
        src = np.concatenate([idx, idx])
        dst = np.concatenate([(idx + 1) % n, (idx - 1) % n])
        return (jnp.asarray(src, jnp.int32), jnp.asarray(dst, jnp.int32))

    edge_indices = [ring_edges(n) for n in Ns]
    clusters = [jnp.asarray(np.arange(Ns[0]) // 2, jnp.int32),   # level0 -> level1
                jnp.asarray(np.arange(Ns[1]) // 2, jnp.int32)]   # level1 -> level2

    out = graph_unet_forward(params, xs, edge_indices, clusters,
                             num_layers=num_layers)
    out = jax.block_until_ready(out)
    assert out.shape == (Ns[0], 1) and out.dtype == jnp.float32
    print("KERNEL_OK")
</pallas_src>

<mosaic_0001>
module attributes {stable_mosaic.version = 11 : i64} {
  func.func @kernel(%arg0: memref<1280x128xf32, #tpu.memory_space<vmem>>, %arg1: memref<168x128xi32, #tpu.memory_space<vmem>>, %arg2: memref<16x128xf32, #tpu.memory_space<vmem>>) attributes {dimension_semantics = [], scalar_prefetch = 0 : i64, scratch_operands = 0 : i64, tpu.core_type = #tpu.core_type<tc>} {
    %0 = tpu.iota {dimensions = array<i32: 1>} : vector<32x16xi32>
    %c0 = arith.constant 0 : index
    %c0_0 = arith.constant 0 : index
    %1 = vector.load %arg1[%c0, %c0_0] : memref<168x128xi32, #tpu.memory_space<vmem>>, vector<32x1xi32>
    %2 = vector.broadcast %1 : vector<32x1xi32> to vector<32x16xi32>
    %3 = arith.cmpi eq, %0, %2 : vector<32x16xi32>
    %4 = arith.extui %3 : vector<32x16xi1> to vector<32x16xi32>
    %5 = arith.sitofp %4 : vector<32x16xi32> to vector<32x16xf32>
    %c32 = arith.constant 32 : index
    %c0_1 = arith.constant 0 : index
    %6 = vector.load %arg1[%c32, %c0_1] : memref<168x128xi32, #tpu.memory_space<vmem>>, vector<32x1xi32>
    %7 = vector.broadcast %6 : vector<32x1xi32> to vector<32x16xi32>
    %8 = arith.cmpi eq, %0, %7 : vector<32x16xi32>
    %9 = arith.extui %8 : vector<32x16xi1> to vector<32x16xi32>
    %10 = arith.sitofp %9 : vector<32x16xi32> to vector<32x16xf32>
    %c0_2 = arith.constant 0 : index
    %c0_3 = arith.constant 0 : index
    %11 = vector.load %arg0[%c0_2, %c0_3] : memref<1280x128xf32, #tpu.memory_space<vmem>>, vector<32x1xf32>
    %c32_4 = arith.constant 32 : index
    %c0_5 = arith.constant 0 : index
    %12 = vector.load %arg0[%c32_4, %c0_5] : memref<1280x128xf32, #tpu.memory_space<vmem>>, vector<16x1xf32>
    %13 = tpu.iota {dimensions = array<i32: 1>} : vector<16x8xi32>
    %c64 = arith.constant 64 : index
    %c0_6 = arith.constant 0 : index
    %14 = vector.load %arg1[%c64, %c0_6] : memref<168x128xi32, #tpu.memory_space<vmem>>, vector<16x1xi32>
    %15 = vector.broadcast %14 : vector<16x1xi32> to vector<16x8xi32>
    %16 = arith.cmpi eq, %13, %15 : vector<16x8xi32>
    %17 = arith.extui %16 : vector<16x8xi1> to vector<16x8xi32>
    %18 = arith.sitofp %17 : vector<16x8xi32> to vector<16x8xf32>
    %c80 = arith.constant 80 : index
    %c0_7 = arith.constant 0 : index
    %19 = vector.load %arg1[%c80, %c0_7] : memref<168x128xi32, #tpu.memory_space<vmem>>, vector<16x1xi32>
    %20 = vector.broadcast %19 : vector<16x1xi32> to vector<16x8xi32>
    %21 = arith.cmpi eq, %13, %20 : vector<16x8xi32>
    %22 = arith.extui %21 : vector<16x8xi1> to vector<16x8xi32>
    %23 = arith.sitofp %22 : vector<16x8xi32> to vector<16x8xf32>
    %c80_8 = arith.constant 80 : index
    %c0_9 = arith.constant 0 : index
    %24 = vector.load %arg0[%c80_8, %c0_9] : memref<1280x128xf32, #tpu.memory_space<vmem>>, vector<16x1xf32>
    %c96 = arith.constant 96 : index
    %c0_10 = arith.constant 0 : index
    %25 = vector.load %arg0[%c96, %c0_10] : memref<1280x128xf32, #tpu.memory_space<vmem>>, vector<8x1xf32>
    %26 = tpu.iota {dimensions = array<i32: 1>} : vector<16x4xi32>
    %c96_11 = arith.constant 96 : index
    %c0_12 = arith.constant 0 : index
    %27 = vector.load %arg1[%c96_11, %c0_12] : memref<168x128xi32, #tpu.memory_space<vmem>>, vector<16x1xi32>
    %28 = vector.broadcast %27 : vector<16x1xi32> to vector<16x4xi32>
    %29 = arith.cmpi eq, %26, %28 : vector<16x4xi32>
    %30 = arith.extui %29 : vector<16x4xi1> to vector<16x4xi32>
    %31 = arith.sitofp %30 : vector<16x4xi32> to vector<16x4xf32>
    %c112 = arith.constant 112 : index
    %c0_13 = arith.constant 0 : index
    %32 = vector.load %arg1[%c112, %c0_13] : memref<168x128xi32, #tpu.memory_space<vmem>>, vector<16x1xi32>
    %33 = vector.broadcast %32 : vector<16x1xi32> to vector<16x4xi32>
    %34 = arith.cmpi eq, %26, %33 : vector<16x4xi32>
    %35 = arith.extui %34 : vector<16x4xi1> to vector<16x4xi32>
    %36 = arith.sitofp %35 : vector<16x4xi32> to vector<16x4xf32>
    %c112_14 = arith.constant 112 : index
    %c0_15 = arith.constant 0 : index
    %37 = vector.load %arg0[%c112_14, %c0_15] : memref<1280x128xf32, #tpu.memory_space<vmem>>, vector<16x1xf32>
    %c128 = arith.constant 128 : index
    %c0_16 = arith.constant 0 : index
    %38 = vector.load %arg0[%c128, %c0_16] : memref<1280x128xf32, #tpu.memory_space<vmem>>, vector<4x1xf32>
    %c128_17 = arith.constant 128 : index
    %c0_18 = arith.constant 0 : index
    %39 = vector.load %arg1[%c128_17, %c0_18] : memref<168x128xi32, #tpu.memory_space<vmem>>, vector<1x16xi32>
    %40 = tpu.iota {dimensions = array<i32: 0>} : vector<8x16xi32>
    %41 = vector.broadcast %39 : vector<1x16xi32> to vector<8x16xi32>
    %42 = arith.cmpi eq, %40, %41 : vector<8x16xi32>
    %43 = arith.extui %42 : vector<8x16xi1> to vector<8x16xi32>
    %44 = arith.sitofp %43 : vector<8x16xi32> to vector<8x16xf32>
    %cst = arith.constant dense<0.000000e+00> : vector<8xf32>
    %45 = vector.multi_reduction <add>, %44, %cst [1] : vector<8x16xf32> to vector<8xf32>
    %46 = vector.shape_cast %45 : vector<8xf32> to vector<8x1xf32>
    %cst_19 = arith.constant 1.000000e+00 : f32
    %47 = vector.broadcast %cst_19 : f32 to vector<8x1xf32>
    %48 = arith.maximumf %46, %47 : vector<8x1xf32>
    %49 = tpu.reciprocal %48 {approx = true} : vector<8x1xf32> -> vector<8x1xf32>
    %c136 = arith.constant 136 : index
    %c0_20 = arith.constant 0 : index
    %50 = vector.load %arg1[%c136, %c0_20] : memref<168x128xi32, #tpu.memory_space<vmem>>, vector<16x1xi32>
    %51 = tpu.iota {dimensions = array<i32: 1>} : vector<16x8xi32>
    %52 = vector.broadcast %50 : vector<16x1xi32> to vector<16x8xi32>
    %53 = arith.cmpi eq, %51, %52 : vector<16x8xi32>
    %54 = arith.extui %53 : vector<16x8xi1> to vector<16x8xi32>
    %55 = arith.sitofp %54 : vector<16x8xi32> to vector<16x8xf32>
    %c152 = arith.constant 152 : index
    %c0_21 = arith.constant 0 : index
    %56 = vector.load %arg1[%c152, %c0_21] : memref<168x128xi32, #tpu.memory_space<vmem>>, vector<1x8xi32>
    %57 = tpu.iota {dimensions = array<i32: 0>} : vector<4x8xi32>
    %58 = vector.broadcast %56 : vector<1x8xi32> to vector<4x8xi32>
    %59 = arith.cmpi eq, %57, %58 : vector<4x8xi32>
    %60 = arith.extui %59 : vector<4x8xi1> to vector<4x8xi32>
    %61 = arith.sitofp %60 : vector<4x8xi32> to vector<4x8xf32>
    %cst_22 = arith.constant dense<0.000000e+00> : vector<4xf32>
    %62 = vector.multi_reduction <add>, %61, %cst_22 [1] : vector<4x8xf32> to vector<4xf32>
    %63 = vector.shape_cast %62 : vector<4xf32> to vector<4x1xf32>
    %cst_23 = arith.constant 1.000000e+00 : f32
    %64 = vector.broadcast %cst_23 : f32 to vector<4x1xf32>
    %65 = arith.maximumf %63, %64 : vector<4x1xf32>
    %66 = tpu.reciprocal %65 {approx = true} : vector<4x1xf32> -> vector<4x1xf32>
    %c160 = arith.constant 160 : index
    %c0_24 = arith.constant 0 : index
    %67 = vector.load %arg1[%c160, %c0_24] : memref<168x128xi32, #tpu.memory_space<vmem>>, vector<8x1xi32>
    %68 = tpu.iota {dimensions = array<i32: 1>} : vector<8x4xi32>
    %69 = vector.broadcast %67 : vector<8x1xi32> to vector<8x4xi32>
    %70 = arith.cmpi eq, %68, %69 : vector<8x4xi32>
    %71 = arith.extui %70 : vector<8x4xi1> to vector<8x4xi32>
    %72 = arith.sitofp %71 : vector<8x4xi32> to vector<8x4xf32>
    %c64_25 = arith.constant 64 : index
    %c0_26 = arith.constant 0 : index
    %73 = vector.load %arg0[%c64_25, %c0_26] : memref<1280x128xf32, #tpu.memory_space<vmem>>, vector<16x1xf32>
    %c144 = arith.constant 144 : index
    %c0_27 = arith.constant 0 : index
    %74 = vector.load %arg0[%c144, %c0_27] : memref<1280x128xf32, #tpu.memory_space<vmem>>, vector<1x32xf32>
    %c152_28 = arith.constant 152 : index
    %c0_29 = arith.constant 0 : index
    %75 = vector.load %arg0[%c152_28, %c0_29] : memref<1280x128xf32, #tpu.memory_space<vmem>>, vector<1x32xf32>
    %76 = vector.broadcast %73 : vector<16x1xf32> to vector<16x32xf32>
    %77 = vector.broadcast %74 : vector<1x32xf32> to vector<16x32xf32>
    %78 = arith.mulf %76, %77 : vector<16x32xf32>
    %79 = vector.broadcast %73 : vector<16x1xf32> to vector<16x32xf32>
    %80 = vector.broadcast %75 : vector<1x32xf32> to vector<16x32xf32>
    %81 = arith.mulf %79, %80 : vector<16x32xf32>
    %c64_30 = arith.constant 64 : index
    %c1 = arith.constant 1 : index
    %82 = vector.load %arg0[%c64_30, %c1] : memref<1280x128xf32, #tpu.memory_space<vmem>>, vector<16x1xf32>
    %c145 = arith.constant 145 : index
    %c0_31 = arith.constant 0 : index
    %83 = vector.load %arg0[%c145, %c0_31] : memref<1280x128xf32, #tpu.memory_space<vmem>>, vector<1x32xf32>
    %c153 = arith.constant 153 : index
    %c0_32 = arith.constant 0 : index
    %84 = vector.load %arg0[%c153, %c0_32] : memref<1280x128xf32, #tpu.memory_space<vmem>>, vector<1x32xf32>
    %85 = vector.broadcast %82 : vector<16x1xf32> to vector<16x32xf32>
    %86 = vector.broadcast %83 : vector<1x32xf32> to vector<16x32xf32>
    %87 = arith.mulf %85, %86 : vector<16x32xf32>
    %88 = arith.addf %78, %87 : vector<16x32xf32>
    %89 = vector.broadcast %82 : vector<16x1xf32> to vector<16x32xf32>
    %90 = vector.broadcast %84 : vector<1x32xf32> to vector<16x32xf32>
    %91 = arith.mulf %89, %90 : vector<16x32xf32>
    %92 = arith.addf %81, %91 : vector<16x32xf32>
    %c64_33 = arith.constant 64 : index
    %c2 = arith.constant 2 : index
    %93 = vector.load %arg0[%c64_33, %c2] : memref<1280x128xf32, #tpu.memory_space<vmem>>, vector<16x1xf32>
    %c146 = arith.constant 146 : index
    %c0_34 = arith.constant 0 : index
    %94 = vector.load %arg0[%c146, %c0_34] : memref<1280x128xf32, #tpu.memory_space<vmem>>, vector<1x32xf32>
    %c154 = arith.constant 154 : index
    %c0_35 = arith.constant 0 : index
    %95 = vector.load %arg0[%c154, %c0_35] : memref<1280x128xf32, #tpu.memory_space<vmem>>, vector<1x32xf32>
    %96 = vector.broadcast %93 : vector<16x1xf32> to vector<16x32xf32>
    %97 = vector.broadcast %94 : vector<1x32xf32> to vector<16x32xf32>
    %98 = arith.mulf %96, %97 : vector<16x32xf32>
    %99 = arith.addf %88, %98 : vector<16x32xf32>
    %100 = vector.broadcast %93 : vector<16x1xf32> to vector<16x32xf32>
    %101 = vector.broadcast %95 : vector<1x32xf32> to vector<16x32xf32>
    %102 = arith.mulf %100, %101 : vector<16x32xf32>
    %103 = arith.addf %92, %102 : vector<16x32xf32>
    %cst_36 = arith.constant dense<0.000000e+00> : vector<32x32xf32>
    %104 = tpu.matmul %5, %99, %cst_36 {dimension_numbers = #tpu.dot_dimension_numbers<[1], [0], [0], [1], [0, 0, 1, 1], [], []>} : vector<32x16xf32>, vector<16x32xf32>, vector<32x32xf32> -> vector<32x32xf32>
    %cst_37 = arith.constant dense<0.000000e+00> : vector<32x32xf32>
    %105 = tpu.matmul %10, %103, %cst_37 {dimension_numbers = #tpu.dot_dimension_numbers<[1], [0], [0], [1], [0, 0, 1, 1], [], []>} : vector<32x16xf32>, vector<16x32xf32>, vector<32x32xf32> -> vector<32x32xf32>
    %106 = arith.addf %104, %105 : vector<32x32xf32>
    %c160_38 = arith.constant 160 : index
    %c0_39 = arith.constant 0 : index
    %107 = vector.load %arg0[%c160_38, %c0_39] : memref<1280x128xf32, #tpu.memory_space<vmem>>, vector<1x32xf32>
    %108 = vector.broadcast %107 : vector<1x32xf32> to vector<32x32xf32>
    %109 = arith.addf %106, %108 : vector<32x32xf32>
    %cst_40 = arith.constant 0.000000e+00 : f32
    %110 = vector.broadcast %cst_40 : f32 to vector<32x32xf32>
    %111 = arith.maximumf %109, %110 : vector<32x32xf32>
    %c168 = arith.constant 168 : index
    %c0_41 = arith.constant 0 : index
    %112 = vector.load %arg0[%c168, %c0_41] : memref<1280x128xf32, #tpu.memory_space<vmem>>, vector<32x32xf32>
    %cst_42 = arith.constant dense<0.000000e+00> : vector<32x32xf32>
    %113 = tpu.matmul %111, %112, %cst_42 {dimension_numbers = #tpu.dot_dimension_numbers<[1], [0], [0], [1], [0, 0, 1, 1], [], []>} : vector<32x32xf32>, vector<32x32xf32>, vector<32x32xf32> -> vector<32x32xf32>
    %c200 = arith.constant 200 : index
    %c0_43 = arith.constant 0 : index
    %114 = vector.load %arg0[%c200, %c0_43] : memref<1280x128xf32, #tpu.memory_space<vmem>>, vector<1x32xf32>
    %115 = vector.broadcast %114 : vector<1x32xf32> to vector<32x32xf32>
    %116 = arith.addf %113, %115 : vector<32x32xf32>
    %cst_44 = arith.constant 0.000000e+00 : f32
    %117 = vector.broadcast %cst_44 : f32 to vector<32x32xf32>
    %118 = arith.maximumf %116, %117 : vector<32x32xf32>
    %c208 = arith.constant 208 : index
    %c0_45 = arith.constant 0 : index
    %119 = vector.load %arg0[%c208, %c0_45] : memref<1280x128xf32, #tpu.memory_space<vmem>>, vector<32x8xf32>
    %cst_46 = arith.constant dense<0.000000e+00> : vector<32x8xf32>
    %120 = tpu.matmul %118, %119, %cst_46 {dimension_numbers = #tpu.dot_dimension_numbers<[1], [0], [0], [1], [0, 0, 1, 1], [], []>} : vector<32x32xf32>, vector<32x8xf32>, vector<32x8xf32> -> vector<32x8xf32>
    %c240 = arith.constant 240 : index
    %c0_47 = arith.constant 0 : index
    %121 = vector.load %arg0[%c240, %c0_47] : memref<1280x128xf32, #tpu.memory_space<vmem>>, vector<1x8xf32>
    %122 = vector.broadcast %121 : vector<1x8xf32> to vector<32x8xf32>
    %123 = arith.addf %120, %122 : vector<32x8xf32>
    %124 = vector.broadcast %11 : vector<32x1xf32> to vector<32x8xf32>
    %125 = arith.addf %123, %124 : vector<32x8xf32>
    %126 = vector.extract_strided_slice %125 {offsets = [0, 0], sizes = [16, 8], strides = [1, 1]} : vector<32x8xf32> to vector<16x8xf32>
    %127 = vector.extract_strided_slice %125 {offsets = [16, 0], sizes = [16, 8], strides = [1, 1]} : vector<32x8xf32> to vector<16x8xf32>
    %128 = arith.maximumf %126, %127 : vector<16x8xf32>
    %cst_48 = arith.constant 0.000000e+00 : f32
    %129 = vector.broadcast %cst_48 : f32 to vector<16x1xf32>
    %130 = arith.cmpf ogt, %12, %129 : vector<16x1xf32>
    %cst_49 = arith.constant 0.000000e+00 : f32
    %131 = vector.shape_cast %130 : vector<16x1xi1> to vector<16x1xi1>
    %132 = vector.broadcast %131 : vector<16x1xi1> to vector<16x8xi1>
    %133 = vector.broadcast %cst_49 : f32 to vector<16x8xf32>
    %134 = arith.select %132, %128, %133 : vector<16x8xi1>, vector<16x8xf32>
    %cst_50 = arith.constant 0.000000e+00 : f32
    %135 = vector.broadcast %cst_50 : f32 to vector<16x8xf32>
    %136 = arith.maximumf %134, %135 : vector<16x8xf32>
    %cst_51 = arith.constant dense<0.000000e+00> : vector<8xf32>
    %137 = vector.multi_reduction <add>, %136, %cst_51 [0] : vector<16x8xf32> to vector<8xf32>
    %138 = vector.shape_cast %137 : vector<8xf32> to vector<1x8xf32>
    %cst_52 = arith.constant 6.250000e-02 : f32
    %139 = vector.broadcast %cst_52 : f32 to vector<1x8xf32>
    %140 = arith.mulf %138, %139 : vector<1x8xf32>
    %141 = vector.broadcast %140 : vector<1x8xf32> to vector<16x8xf32>
    %142 = arith.subf %136, %141 : vector<16x8xf32>
    %143 = arith.mulf %142, %142 : vector<16x8xf32>
    %cst_53 = arith.constant dense<0.000000e+00> : vector<8xf32>
    %144 = vector.multi_reduction <add>, %143, %cst_53 [0] : vector<16x8xf32> to vector<8xf32>
    %145 = vector.shape_cast %144 : vector<8xf32> to vector<1x8xf32>
    %cst_54 = arith.constant 6.250000e-02 : f32
    %146 = vector.broadcast %cst_54 : f32 to vector<1x8xf32>
    %147 = arith.mulf %145, %146 : vector<1x8xf32>
    %c248 = arith.constant 248 : index
    %c0_55 = arith.constant 0 : index
    %148 = vector.load %arg0[%c248, %c0_55] : memref<1280x128xf32, #tpu.memory_space<vmem>>, vector<1x8xf32>
    %149 = vector.broadcast %148 : vector<1x8xf32> to vector<16x8xf32>
    %150 = arith.mulf %149, %142 : vector<16x8xf32>
    %cst_56 = arith.constant 9.99999974E-6 : f32
    %151 = vector.broadcast %cst_56 : f32 to vector<1x8xf32>
    %152 = arith.addf %147, %151 : vector<1x8xf32>
    %153 = math.rsqrt %152 : vector<1x8xf32>
    %154 = vector.broadcast %153 : vector<1x8xf32> to vector<16x8xf32>
    %155 = arith.mulf %150, %154 : vector<16x8xf32>
    %c256 = arith.constant 256 : index
    %c0_57 = arith.constant 0 : index
    %156 = vector.load %arg0[%c256, %c0_57] : memref<1280x128xf32, #tpu.memory_space<vmem>>, vector<1x8xf32>
    %157 = vector.broadcast %156 : vector<1x8xf32> to vector<16x8xf32>
    %158 = arith.addf %155, %157 : vector<16x8xf32>
    %cst_58 = arith.constant dense<0.000000e+00> : vector<8x8xf32>
    %159 = tpu.matmul %44, %158, %cst_58 {dimension_numbers = #tpu.dot_dimension_numbers<[1], [0], [0], [1], [0, 0, 1, 1], [], []>} : vector<8x16xf32>, vector<16x8xf32>, vector<8x8xf32> -> vector<8x8xf32>
    %160 = vector.broadcast %49 : vector<8x1xf32> to vector<8x8xf32>
    %161 = arith.mulf %159, %160 : vector<8x8xf32>
    %c104 = arith.constant 104 : index
    %c0_59 = arith.constant 0 : index
    %162 = vector.load %arg0[%c104, %c0_59] : memref<1280x128xf32, #tpu.memory_space<vmem>>, vector<8x1xf32>
    %c264 = arith.constant 264 : index
    %c0_60 = arith.constant 0 : index
    %163 = vector.load %arg0[%c264, %c0_60] : memref<1280x128xf32, #tpu.memory_space<vmem>>, vector<1x32xf32>
    %c272 = arith.constant 272 : index
    %c0_61 = arith.constant 0 : index
    %164 = vector.load %arg0[%c272, %c0_61] : memref<1280x128xf32, #tpu.memory_space<vmem>>, vector<1x32xf32>
    %165 = vector.broadcast %162 : vector<8x1xf32> to vector<8x32xf32>
    %166 = vector.broadcast %163 : vector<1x32xf32> to vector<8x32xf32>
    %167 = arith.mulf %165, %166 : vector<8x32xf32>
    %168 = vector.broadcast %162 : vector<8x1xf32> to vector<8x32xf32>
    %169 = vector.broadcast %164 : vector<1x32xf32> to vector<8x32xf32>
    %170 = arith.mulf %168, %169 : vector<8x32xf32>
    %c104_62 = arith.constant 104 : index
    %c1_63 = arith.constant 1 : index
    %171 = vector.load %arg0[%c104_62, %c1_63] : memref<1280x128xf32, #tpu.memory_space<vmem>>, vector<8x1xf32>
    %c265 = arith.constant 265 : index
    %c0_64 = arith.constant 0 : index
    %172 = vector.load %arg0[%c265, %c0_64] : memref<1280x128xf32, #tpu.memory_space<vmem>>, vector<1x32xf32>
    %c273 = arith.constant 273 : index
    %c0_65 = arith.constant 0 : index
    %173 = vector.load %arg0[%c273, %c0_65] : memref<1280x128xf32, #tpu.memory_space<vmem>>, vector<1x32xf32>
    %174 = vector.broadcast %171 : vector<8x1xf32> to vector<8x32xf32>
    %175 = vector.broadcast %172 : vector<1x32xf32> to vector<8x32xf32>
    %176 = arith.mulf %174, %175 : vector<8x32xf32>
    %177 = arith.addf %167, %176 : vector<8x32xf32>
    %178 = vector.broadcast %171 : vector<8x1xf32> to vector<8x32xf32>
    %179 = vector.broadcast %173 : vector<1x32xf32> to vector<8x32xf32>
    %180 = arith.mulf %178, %179 : vector<8x32xf32>
    %181 = arith.addf %170, %180 : vector<8x32xf32>
    %c280 = arith.constant 280 : index
    %c0_66 = arith.constant 0 : index
    %182 = vector.load %arg0[%c280, %c0_66] : memref<1280x128xf32, #tpu.memory_space<vmem>>, vector<8x32xf32>
    %cst_67 = arith.constant dense<0.000000e+00> : vector<8x32xf32>
    %183 = tpu.matmul %161, %182, %cst_67 {dimension_numbers = #tpu.dot_dimension_numbers<[1], [0], [0], [1], [0, 0, 1, 1], [], []>} : vector<8x8xf32>, vector<8x32xf32>, vector<8x32xf32> -> vector<8x32xf32>
    %c288 = arith.constant 288 : index
    %c0_68 = arith.constant 0 : index
    %184 = vector.load %arg0[%c288, %c0_68] : memref<1280x128xf32, #tpu.memory_space<vmem>>, vector<8x32xf32>
    %cst_69 = arith.constant dense<0.000000e+00> : vector<8x32xf32>
    %185 = tpu.matmul %161, %184, %cst_69 {dimension_numbers = #tpu.dot_dimension_numbers<[1], [0], [0], [1], [0, 0, 1, 1], [], []>} : vector<8x8xf32>, vector<8x32xf32>, vector<8x32xf32> -> vector<8x32xf32>
    %186 = arith.addf %177, %183 : vector<8x32xf32>
    %187 = arith.addf %181, %185 : vector<8x32xf32>
    %cst_70 = arith.constant dense<0.000000e+00> : vector<16x32xf32>
    %188 = tpu.matmul %18, %186, %cst_70 {dimension_numbers = #tpu.dot_dimension_numbers<[1], [0], [0], [1], [0, 0, 1, 1], [], []>} : vector<16x8xf32>, vector<8x32xf32>, vector<16x32xf32> -> vector<16x32xf32>
    %cst_71 = arith.constant dense<0.000000e+00> : vector<16x32xf32>
    %189 = tpu.matmul %23, %187, %cst_71 {dimension_numbers = #tpu.dot_dimension_numbers<[1], [0], [0], [1], [0, 0, 1, 1], [], []>} : vector<16x8xf32>, vector<8x32xf32>, vector<16x32xf32> -> vector<16x32xf32>
    %190 = arith.addf %188, %189 : vector<16x32xf32>
    %c296 = arith.constant 296 : index
    %c0_72 = arith.constant 0 : index
    %191 = vector.load %arg0[%c296, %c0_72] : memref<1280x128xf32, #tpu.memory_space<vmem>>, vector<1x32xf32>
    %192 = vector.broadcast %191 : vector<1x32xf32> to vector<16x32xf32>
    %193 = arith.addf %190, %192 : vector<16x32xf32>
    %cst_73 = arith.constant 0.000000e+00 : f32
    %194 = vector.broadcast %cst_73 : f32 to vector<16x32xf32>
    %195 = arith.maximumf %193, %194 : vector<16x32xf32>
    %c304 = arith.constant 304 : index
    %c0_74 = arith.constant 0 : index
    %196 = vector.load %arg0[%c304, %c0_74] : memref<1280x128xf32, #tpu.memory_space<vmem>>, vector<32x32xf32>
    %cst_75 = arith.constant dense<0.000000e+00> : vector<16x32xf32>
    %197 = tpu.matmul %195, %196, %cst_75 {dimension_numbers = #tpu.dot_dimension_numbers<[1], [0], [0], [1], [0, 0, 1, 1], [], []>} : vector<16x32xf32>, vector<32x32xf32>, vector<16x32xf32> -> vector<16x32xf32>
    %c336 = arith.constant 336 : index
    %c0_76 = arith.constant 0 : index
    %198 = vector.load %arg0[%c336, %c0_76] : memref<1280x128xf32, #tpu.memory_space<vmem>>, vector<1x32xf32>
    %199 = vector.broadcast %198 : vector<1x32xf32> to vector<16x32xf32>
    %200 = arith.addf %197, %199 : vector<16x32xf32>
    %cst_77 = arith.constant 0.000000e+00 : f32
    %201 = vector.broadcast %cst_77 : f32 to vector<16x32xf32>
    %202 = arith.maximumf %200, %201 : vector<16x32xf32>
    %c344 = arith.constant 344 : index
    %c0_78 = arith.constant 0 : index
    %203 = vector.load %arg0[%c344, %c0_78] : memref<1280x128xf32, #tpu.memory_space<vmem>>, vector<32x8xf32>
    %cst_79 = arith.constant dense<0.000000e+00> : vector<16x8xf32>
    %204 = tpu.matmul %202, %203, %cst_79 {dimension_numbers = #tpu.dot_dimension_numbers<[1], [0], [0], [1], [0, 0, 1, 1], [], []>} : vector<16x32xf32>, vector<32x8xf32>, vector<16x8xf32> -> vector<16x8xf32>
    %c376 = arith.constant 376 : index
    %c0_80 = arith.constant 0 : index
    %205 = vector.load %arg0[%c376, %c0_80] : memref<1280x128xf32, #tpu.memory_space<vmem>>, vector<1x8xf32>
    %206 = vector.broadcast %205 : vector<1x8xf32> to vector<16x8xf32>
    %207 = arith.addf %204, %206 : vector<16x8xf32>
    %208 = vector.broadcast %24 : vector<16x1xf32> to vector<16x8xf32>
    %209 = arith.addf %207, %208 : vector<16x8xf32>
    %210 = vector.extract_strided_slice %209 {offsets = [0, 0], sizes = [8, 8], strides = [1, 1]} : vector<16x8xf32> to vector<8x8xf32>
    %211 = vector.extract_strided_slice %209 {offsets = [8, 0], sizes = [8, 8], strides = [1, 1]} : vector<16x8xf32> to vector<8x8xf32>
    %212 = arith.maximumf %210, %211 : vector<8x8xf32>
    %cst_81 = arith.constant 0.000000e+00 : f32
    %213 = vector.broadcast %cst_81 : f32 to vector<8x1xf32>
    %214 = arith.cmpf ogt, %25, %213 : vector<8x1xf32>
    %cst_82 = arith.constant 0.000000e+00 : f32
    %215 = vector.shape_cast %214 : vector<8x1xi1> to vector<8x1xi1>
    %216 = vector.broadcast %215 : vector<8x1xi1> to vector<8x8xi1>
    %217 = vector.broadcast %cst_82 : f32 to vector<8x8xf32>
    %218 = arith.select %216, %212, %217 : vector<8x8xi1>, vector<8x8xf32>
    %cst_83 = arith.constant 0.000000e+00 : f32
    %219 = vector.broadcast %cst_83 : f32 to vector<8x8xf32>
    %220 = arith.maximumf %218, %219 : vector<8x8xf32>
    %cst_84 = arith.constant dense<0.000000e+00> : vector<8xf32>
    %221 = vector.multi_reduction <add>, %220, %cst_84 [0] : vector<8x8xf32> to vector<8xf32>
    %222 = vector.shape_cast %221 : vector<8xf32> to vector<1x8xf32>
    %cst_85 = arith.constant 1.250000e-01 : f32
    %223 = vector.broadcast %cst_85 : f32 to vector<1x8xf32>
    %224 = arith.mulf %222, %223 : vector<1x8xf32>
    %225 = vector.broadcast %224 : vector<1x8xf32> to vector<8x8xf32>
    %226 = arith.subf %220, %225 : vector<8x8xf32>
    %227 = arith.mulf %226, %226 : vector<8x8xf32>
    %cst_86 = arith.constant dense<0.000000e+00> : vector<8xf32>
    %228 = vector.multi_reduction <add>, %227, %cst_86 [0] : vector<8x8xf32> to vector<8xf32>
    %229 = vector.shape_cast %228 : vector<8xf32> to vector<1x8xf32>
    %cst_87 = arith.constant 1.250000e-01 : f32
    %230 = vector.broadcast %cst_87 : f32 to vector<1x8xf32>
    %231 = arith.mulf %229, %230 : vector<1x8xf32>
    %c384 = arith.constant 384 : index
    %c0_88 = arith.constant 0 : index
    %232 = vector.load %arg0[%c384, %c0_88] : memref<1280x128xf32, #tpu.memory_space<vmem>>, vector<1x8xf32>
    %233 = vector.broadcast %232 : vector<1x8xf32> to vector<8x8xf32>
    %234 = arith.mulf %233, %226 : vector<8x8xf32>
    %cst_89 = arith.constant 9.99999974E-6 : f32
    %235 = vector.broadcast %cst_89 : f32 to vector<1x8xf32>
    %236 = arith.addf %231, %235 : vector<1x8xf32>
    %237 = math.rsqrt %236 : vector<1x8xf32>
    %238 = vector.broadcast %237 : vector<1x8xf32> to vector<8x8xf32>
    %239 = arith.mulf %234, %238 : vector<8x8xf32>
    %c392 = arith.constant 392 : index
    %c0_90 = arith.constant 0 : index
    %240 = vector.load %arg0[%c392, %c0_90] : memref<1280x128xf32, #tpu.memory_space<vmem>>, vector<1x8xf32>
    %241 = vector.broadcast %240 : vector<1x8xf32> to vector<8x8xf32>
    %242 = arith.addf %239, %241 : vector<8x8xf32>
    %cst_91 = arith.constant dense<0.000000e+00> : vector<4x8xf32>
    %243 = tpu.matmul %61, %242, %cst_91 {dimension_numbers = #tpu.dot_dimension_numbers<[1], [0], [0], [1], [0, 0, 1, 1], [], []>} : vector<4x8xf32>, vector<8x8xf32>, vector<4x8xf32> -> vector<4x8xf32>
    %244 = vector.broadcast %66 : vector<4x1xf32> to vector<4x8xf32>
    %245 = arith.mulf %243, %244 : vector<4x8xf32>
    %c136_92 = arith.constant 136 : index
    %c0_93 = arith.constant 0 : index
    %246 = vector.load %arg0[%c136_92, %c0_93] : memref<1280x128xf32, #tpu.memory_space<vmem>>, vector<4x1xf32>
    %c400 = arith.constant 400 : index
    %c0_94 = arith.constant 0 : index
    %247 = vector.load %arg0[%c400, %c0_94] : memref<1280x128xf32, #tpu.memory_space<vmem>>, vector<1x32xf32>
    %c408 = arith.constant 408 : index
    %c0_95 = arith.constant 0 : index
    %248 = vector.load %arg0[%c408, %c0_95] : memref<1280x128xf32, #tpu.memory_space<vmem>>, vector<1x32xf32>
    %249 = vector.broadcast %246 : vector<4x1xf32> to vector<4x32xf32>
    %250 = vector.broadcast %247 : vector<1x32xf32> to vector<4x32xf32>
    %251 = arith.mulf %249, %250 : vector<4x32xf32>
    %252 = vector.broadcast %246 : vector<4x1xf32> to vector<4x32xf32>
    %253 = vector.broadcast %248 : vector<1x32xf32> to vector<4x32xf32>
    %254 = arith.mulf %252, %253 : vector<4x32xf32>
    %c136_96 = arith.constant 136 : index
    %c1_97 = arith.constant 1 : index
    %255 = vector.load %arg0[%c136_96, %c1_97] : memref<1280x128xf32, #tpu.memory_space<vmem>>, vector<4x1xf32>
    %c401 = arith.constant 401 : index
    %c0_98 = arith.constant 0 : index
    %256 = vector.load %arg0[%c401, %c0_98] : memref<1280x128xf32, #tpu.memory_space<vmem>>, vector<1x32xf32>
    %c409 = arith.constant 409 : index
    %c0_99 = arith.constant 0 : index
    %257 = vector.load %arg0[%c409, %c0_99] : memref<1280x128xf32, #tpu.memory_space<vmem>>, vector<1x32xf32>
    %258 = vector.broadcast %255 : vector<4x1xf32> to vector<4x32xf32>
    %259 = vector.broadcast %256 : vector<1x32xf32> to vector<4x32xf32>
    %260 = arith.mulf %258, %259 : vector<4x32xf32>
    %261 = arith.addf %251, %260 : vector<4x32xf32>
    %262 = vector.broadcast %255 : vector<4x1xf32> to vector<4x32xf32>
    %263 = vector.broadcast %257 : vector<1x32xf32> to vector<4x32xf32>
    %264 = arith.mulf %262, %263 : vector<4x32xf32>
    %265 = arith.addf %254, %264 : vector<4x32xf32>
    %c416 = arith.constant 416 : index
    %c0_100 = arith.constant 0 : index
    %266 = vector.load %arg0[%c416, %c0_100] : memref<1280x128xf32, #tpu.memory_space<vmem>>, vector<8x32xf32>
    %cst_101 = arith.constant dense<0.000000e+00> : vector<4x32xf32>
    %267 = tpu.matmul %245, %266, %cst_101 {dimension_numbers = #tpu.dot_dimension_numbers<[1], [0], [0], [1], [0, 0, 1, 1], [], []>} : vector<4x8xf32>, vector<8x32xf32>, vector<4x32xf32> -> vector<4x32xf32>
    %c424 = arith.constant 424 : index
    %c0_102 = arith.constant 0 : index
    %268 = vector.load %arg0[%c424, %c0_102] : memref<1280x128xf32, #tpu.memory_space<vmem>>, vector<8x32xf32>
    %cst_103 = arith.constant dense<0.000000e+00> : vector<4x32xf32>
    %269 = tpu.matmul %245, %268, %cst_103 {dimension_numbers = #tpu.dot_dimension_numbers<[1], [0], [0], [1], [0, 0, 1, 1], [], []>} : vector<4x8xf32>, vector<8x32xf32>, vector<4x32xf32> -> vector<4x32xf32>
    %270 = arith.addf %261, %267 : vector<4x32xf32>
    %271 = arith.addf %265, %269 : vector<4x32xf32>
    %cst_104 = arith.constant dense<0.000000e+00> : vector<16x32xf32>
    %272 = tpu.matmul %31, %270, %cst_104 {dimension_numbers = #tpu.dot_dimension_numbers<[1], [0], [0], [1], [0, 0, 1, 1], [], []>} : vector<16x4xf32>, vector<4x32xf32>, vector<16x32xf32> -> vector<16x32xf32>
    %cst_105 = arith.constant dense<0.000000e+00> : vector<16x32xf32>
    %273 = tpu.matmul %36, %271, %cst_105 {dimension_numbers = #tpu.dot_dimension_numbers<[1], [0], [0], [1], [0, 0, 1, 1], [], []>} : vector<16x4xf32>, vector<4x32xf32>, vector<16x32xf32> -> vector<16x32xf32>
    %274 = arith.addf %272, %273 : vector<16x32xf32>
    %c432 = arith.constant 432 : index
    %c0_106 = arith.constant 0 : index
    %275 = vector.load %arg0[%c432, %c0_106] : memref<1280x128xf32, #tpu.memory_space<vmem>>, vector<1x32xf32>
    %276 = vector.broadcast %275 : vector<1x32xf32> to vector<16x32xf32>
    %277 = arith.addf %274, %276 : vector<16x32xf32>
    %cst_107 = arith.constant 0.000000e+00 : f32
    %278 = vector.broadcast %cst_107 : f32 to vector<16x32xf32>
    %279 = arith.maximumf %277, %278 : vector<16x32xf32>
    %c440 = arith.constant 440 : index
    %c0_108 = arith.constant 0 : index
    %280 = vector.load %arg0[%c440, %c0_108] : memref<1280x128xf32, #tpu.memory_space<vmem>>, vector<32x32xf32>
    %cst_109 = arith.constant dense<0.000000e+00> : vector<16x32xf32>
    %281 = tpu.matmul %279, %280, %cst_109 {dimension_numbers = #tpu.dot_dimension_numbers<[1], [0], [0], [1], [0, 0, 1, 1], [], []>} : vector<16x32xf32>, vector<32x32xf32>, vector<16x32xf32> -> vector<16x32xf32>
    %c472 = arith.constant 472 : index
    %c0_110 = arith.constant 0 : index
    %282 = vector.load %arg0[%c472, %c0_110] : memref<1280x128xf32, #tpu.memory_space<vmem>>, vector<1x32xf32>
    %283 = vector.broadcast %282 : vector<1x32xf32> to vector<16x32xf32>
    %284 = arith.addf %281, %283 : vector<16x32xf32>
    %cst_111 = arith.constant 0.000000e+00 : f32
    %285 = vector.broadcast %cst_111 : f32 to vector<16x32xf32>
    %286 = arith.maximumf %284, %285 : vector<16x32xf32>
    %c480 = arith.constant 480 : index
    %c0_112 = arith.constant 0 : index
    %287 = vector.load %arg0[%c480, %c0_112] : memref<1280x128xf32, #tpu.memory_space<vmem>>, vector<32x8xf32>
    %cst_113 = arith.constant dense<0.000000e+00> : vector<16x8xf32>
    %288 = tpu.matmul %286, %287, %cst_113 {dimension_numbers = #tpu.dot_dimension_numbers<[1], [0], [0], [1], [0, 0, 1, 1], [], []>} : vector<16x32xf32>, vector<32x8xf32>, vector<16x8xf32> -> vector<16x8xf32>
    %c512 = arith.constant 512 : index
    %c0_114 = arith.constant 0 : index
    %289 = vector.load %arg0[%c512, %c0_114] : memref<1280x128xf32, #tpu.memory_space<vmem>>, vector<1x8xf32>
    %290 = vector.broadcast %289 : vector<1x8xf32> to vector<16x8xf32>
    %291 = arith.addf %288, %290 : vector<16x8xf32>
    %292 = vector.broadcast %37 : vector<16x1xf32> to vector<16x8xf32>
    %293 = arith.addf %291, %292 : vector<16x8xf32>
    %294 = vector.extract_strided_slice %293 {offsets = [0, 0], sizes = [8, 8], strides = [1, 1]} : vector<16x8xf32> to vector<8x8xf32>
    %295 = vector.extract_strided_slice %293 {offsets = [8, 0], sizes = [8, 8], strides = [1, 1]} : vector<16x8xf32> to vector<8x8xf32>
    %296 = arith.maximumf %294, %295 : vector<8x8xf32>
    %297 = vector.extract_strided_slice %296 {offsets = [0, 0], sizes = [4, 8], strides = [1, 1]} : vector<8x8xf32> to vector<4x8xf32>
    %cst_115 = arith.constant 0.000000e+00 : f32
    %298 = vector.broadcast %cst_115 : f32 to vector<4x1xf32>
    %299 = arith.cmpf ogt, %38, %298 : vector<4x1xf32>
    %cst_116 = arith.constant 0.000000e+00 : f32
    %300 = vector.shape_cast %299 : vector<4x1xi1> to vector<4x1xi1>
    %301 = vector.broadcast %300 : vector<4x1xi1> to vector<4x8xi1>
    %302 = vector.broadcast %cst_116 : f32 to vector<4x8xf32>
    %303 = arith.select %301, %297, %302 : vector<4x8xi1>, vector<4x8xf32>
    %cst_117 = arith.constant 0.000000e+00 : f32
    %304 = vector.broadcast %cst_117 : f32 to vector<4x8xf32>
    %305 = arith.maximumf %303, %304 : vector<4x8xf32>
    %cst_118 = arith.constant dense<0.000000e+00> : vector<8xf32>
    %306 = vector.multi_reduction <add>, %305, %cst_118 [0] : vector<4x8xf32> to vector<8xf32>
    %307 = vector.shape_cast %306 : vector<8xf32> to vector<1x8xf32>
    %cst_119 = arith.constant 2.500000e-01 : f32
    %308 = vector.broadcast %cst_119 : f32 to vector<1x8xf32>
    %309 = arith.mulf %307, %308 : vector<1x8xf32>
    %310 = vector.broadcast %309 : vector<1x8xf32> to vector<4x8xf32>
    %311 = arith.subf %305, %310 : vector<4x8xf32>
    %312 = arith.mulf %311, %311 : vector<4x8xf32>
    %cst_120 = arith.constant dense<0.000000e+00> : vector<8xf32>
    %313 = vector.multi_reduction <add>, %312, %cst_120 [0] : vector<4x8xf32> to vector<8xf32>
    %314 = vector.shape_cast %313 : vector<8xf32> to vector<1x8xf32>
    %cst_121 = arith.constant 2.500000e-01 : f32
    %315 = vector.broadcast %cst_121 : f32 to vector<1x8xf32>
    %316 = arith.mulf %314, %315 : vector<1x8xf32>
    %c520 = arith.constant 520 : index
    %c0_122 = arith.constant 0 : index
    %317 = vector.load %arg0[%c520, %c0_122] : memref<1280x128xf32, #tpu.memory_space<vmem>>, vector<1x8xf32>
    %318 = vector.broadcast %317 : vector<1x8xf32> to vector<4x8xf32>
    %319 = arith.mulf %318, %311 : vector<4x8xf32>
    %cst_123 = arith.constant 9.99999974E-6 : f32
    %320 = vector.broadcast %cst_123 : f32 to vector<1x8xf32>
    %321 = arith.addf %316, %320 : vector<1x8xf32>
    %322 = math.rsqrt %321 : vector<1x8xf32>
    %323 = vector.broadcast %322 : vector<1x8xf32> to vector<4x8xf32>
    %324 = arith.mulf %319, %323 : vector<4x8xf32>
    %c528 = arith.constant 528 : index
    %c0_124 = arith.constant 0 : index
    %325 = vector.load %arg0[%c528, %c0_124] : memref<1280x128xf32, #tpu.memory_space<vmem>>, vector<1x8xf32>
    %326 = vector.broadcast %325 : vector<1x8xf32> to vector<4x8xf32>
    %327 = arith.addf %324, %326 : vector<4x8xf32>
    %c136_125 = arith.constant 136 : index
    %c0_126 = arith.constant 0 : index
    %328 = vector.load %arg0[%c136_125, %c0_126] : memref<1280x128xf32, #tpu.memory_space<vmem>>, vector<4x1xf32>
    %c840 = arith.constant 840 : index
    %c0_127 = arith.constant 0 : index
    %329 = vector.load %arg0[%c840, %c0_127] : memref<1280x128xf32, #tpu.memory_space<vmem>>, vector<1x32xf32>
    %c848 = arith.constant 848 : index
    %c0_128 = arith.constant 0 : index
    %330 = vector.load %arg0[%c848, %c0_128] : memref<1280x128xf32, #tpu.memory_space<vmem>>, vector<1x32xf32>
    %331 = vector.broadcast %328 : vector<4x1xf32> to vector<4x32xf32>
    %332 = vector.broadcast %329 : vector<1x32xf32> to vector<4x32xf32>
    %333 = arith.mulf %331, %332 : vector<4x32xf32>
    %334 = vector.broadcast %328 : vector<4x1xf32> to vector<4x32xf32>
    %335 = vector.broadcast %330 : vector<1x32xf32> to vector<4x32xf32>
    %336 = arith.mulf %334, %335 : vector<4x32xf32>
    %c136_129 = arith.constant 136 : index
    %c1_130 = arith.constant 1 : index
    %337 = vector.load %arg0[%c136_129, %c1_130] : memref<1280x128xf32, #tpu.memory_space<vmem>>, vector<4x1xf32>
    %c841 = arith.constant 841 : index
    %c0_131 = arith.constant 0 : index
    %338 = vector.load %arg0[%c841, %c0_131] : memref<1280x128xf32, #tpu.memory_space<vmem>>, vector<1x32xf32>
    %c849 = arith.constant 849 : index
    %c0_132 = arith.constant 0 : index
    %339 = vector.load %arg0[%c849, %c0_132] : memref<1280x128xf32, #tpu.memory_space<vmem>>, vector<1x32xf32>
    %340 = vector.broadcast %337 : vector<4x1xf32> to vector<4x32xf32>
    %341 = vector.broadcast %338 : vector<1x32xf32> to vector<4x32xf32>
    %342 = arith.mulf %340, %341 : vector<4x32xf32>
    %343 = arith.addf %333, %342 : vector<4x32xf32>
    %344 = vector.broadcast %337 : vector<4x1xf32> to vector<4x32xf32>
    %345 = vector.broadcast %339 : vector<1x32xf32> to vector<4x32xf32>
    %346 = arith.mulf %344, %345 : vector<4x32xf32>
    %347 = arith.addf %336, %346 : vector<4x32xf32>
    %c856 = arith.constant 856 : index
    %c0_133 = arith.constant 0 : index
    %348 = vector.load %arg0[%c856, %c0_133] : memref<1280x128xf32, #tpu.memory_space<vmem>>, vector<8x32xf32>
    %cst_134 = arith.constant dense<0.000000e+00> : vector<4x32xf32>
    %349 = tpu.matmul %245, %348, %cst_134 {dimension_numbers = #tpu.dot_dimension_numbers<[1], [0], [0], [1], [0, 0, 1, 1], [], []>} : vector<4x8xf32>, vector<8x32xf32>, vector<4x32xf32> -> vector<4x32xf32>
    %c864 = arith.constant 864 : index
    %c0_135 = arith.constant 0 : index
    %350 = vector.load %arg0[%c864, %c0_135] : memref<1280x128xf32, #tpu.memory_space<vmem>>, vector<8x32xf32>
    %cst_136 = arith.constant dense<0.000000e+00> : vector<4x32xf32>
    %351 = tpu.matmul %245, %350, %cst_136 {dimension_numbers = #tpu.dot_dimension_numbers<[1], [0], [0], [1], [0, 0, 1, 1], [], []>} : vector<4x8xf32>, vector<8x32xf32>, vector<4x32xf32> -> vector<4x32xf32>
    %352 = arith.addf %343, %349 : vector<4x32xf32>
    %353 = arith.addf %347, %351 : vector<4x32xf32>
    %c872 = arith.constant 872 : index
    %c0_137 = arith.constant 0 : index
    %354 = vector.load %arg0[%c872, %c0_137] : memref<1280x128xf32, #tpu.memory_space<vmem>>, vector<8x32xf32>
    %cst_138 = arith.constant dense<0.000000e+00> : vector<4x32xf32>
    %355 = tpu.matmul %327, %354, %cst_138 {dimension_numbers = #tpu.dot_dimension_numbers<[1], [0], [0], [1], [0, 0, 1, 1], [], []>} : vector<4x8xf32>, vector<8x32xf32>, vector<4x32xf32> -> vector<4x32xf32>
    %c880 = arith.constant 880 : index
    %c0_139 = arith.constant 0 : index
    %356 = vector.load %arg0[%c880, %c0_139] : memref<1280x128xf32, #tpu.memory_space<vmem>>, vector<8x32xf32>
    %cst_140 = arith.constant dense<0.000000e+00> : vector<4x32xf32>
    %357 = tpu.matmul %327, %356, %cst_140 {dimension_numbers = #tpu.dot_dimension_numbers<[1], [0], [0], [1], [0, 0, 1, 1], [], []>} : vector<4x8xf32>, vector<8x32xf32>, vector<4x32xf32> -> vector<4x32xf32>
    %358 = arith.addf %352, %355 : vector<4x32xf32>
    %359 = arith.addf %353, %357 : vector<4x32xf32>
    %cst_141 = arith.constant dense<0.000000e+00> : vector<16x32xf32>
    %360 = tpu.matmul %31, %358, %cst_141 {dimension_numbers = #tpu.dot_dimension_numbers<[1], [0], [0], [1], [0, 0, 1, 1], [], []>} : vector<16x4xf32>, vector<4x32xf32>, vector<16x32xf32> -> vector<16x32xf32>
    %cst_142 = arith.constant dense<0.000000e+00> : vector<16x32xf32>
    %361 = tpu.matmul %36, %359, %cst_142 {dimension_numbers = #tpu.dot_dimension_numbers<[1], [0], [0], [1], [0, 0, 1, 1], [], []>} : vector<16x4xf32>, vector<4x32xf32>, vector<16x32xf32> -> vector<16x32xf32>
    %362 = arith.addf %360, %361 : vector<16x32xf32>
    %c888 = arith.constant 888 : index
    %c0_143 = arith.constant 0 : index
    %363 = vector.load %arg0[%c888, %c0_143] : memref<1280x128xf32, #tpu.memory_space<vmem>>, vector<1x32xf32>
    %364 = vector.broadcast %363 : vector<1x32xf32> to vector<16x32xf32>
    %365 = arith.addf %362, %364 : vector<16x32xf32>
    %cst_144 = arith.constant 0.000000e+00 : f32
    %366 = vector.broadcast %cst_144 : f32 to vector<16x32xf32>
    %367 = arith.maximumf %365, %366 : vector<16x32xf32>
    %c896 = arith.constant 896 : index
    %c0_145 = arith.constant 0 : index
    %368 = vector.load %arg0[%c896, %c0_145] : memref<1280x128xf32, #tpu.memory_space<vmem>>, vector<32x32xf32>
    %cst_146 = arith.constant dense<0.000000e+00> : vector<16x32xf32>
    %369 = tpu.matmul %367, %368, %cst_146 {dimension_numbers = #tpu.dot_dimension_numbers<[1], [0], [0], [1], [0, 0, 1, 1], [], []>} : vector<16x32xf32>, vector<32x32xf32>, vector<16x32xf32> -> vector<16x32xf32>
    %c928 = arith.constant 928 : index
    %c0_147 = arith.constant 0 : index
    %370 = vector.load %arg0[%c928, %c0_147] : memref<1280x128xf32, #tpu.memory_space<vmem>>, vector<1x32xf32>
    %371 = vector.broadcast %370 : vector<1x32xf32> to vector<16x32xf32>
    %372 = arith.addf %369, %371 : vector<16x32xf32>
    %cst_148 = arith.constant 0.000000e+00 : f32
    %373 = vector.broadcast %cst_148 : f32 to vector<16x32xf32>
    %374 = arith.maximumf %372, %373 : vector<16x32xf32>
    %c936 = arith.constant 936 : index
    %c0_149 = arith.constant 0 : index
    %375 = vector.load %arg0[%c936, %c0_149] : memref<1280x128xf32, #tpu.memory_space<vmem>>, vector<32x8xf32>
    %cst_150 = arith.constant dense<0.000000e+00> : vector<16x8xf32>
    %376 = tpu.matmul %374, %375, %cst_150 {dimension_numbers = #tpu.dot_dimension_numbers<[1], [0], [0], [1], [0, 0, 1, 1], [], []>} : vector<16x32xf32>, vector<32x8xf32>, vector<16x8xf32> -> vector<16x8xf32>
    %c968 = arith.constant 968 : index
    %c0_151 = arith.constant 0 : index
    %377 = vector.load %arg0[%c968, %c0_151] : memref<1280x128xf32, #tpu.memory_space<vmem>>, vector<1x8xf32>
    %378 = vector.broadcast %377 : vector<1x8xf32> to vector<16x8xf32>
    %379 = arith.addf %376, %378 : vector<16x8xf32>
    %380 = vector.broadcast %37 : vector<16x1xf32> to vector<16x8xf32>
    %381 = arith.addf %379, %380 : vector<16x8xf32>
    %382 = vector.extract_strided_slice %381 {offsets = [0, 0], sizes = [8, 8], strides = [1, 1]} : vector<16x8xf32> to vector<8x8xf32>
    %383 = vector.extract_strided_slice %381 {offsets = [8, 0], sizes = [8, 8], strides = [1, 1]} : vector<16x8xf32> to vector<8x8xf32>
    %384 = arith.maximumf %382, %383 : vector<8x8xf32>
    %385 = vector.extract_strided_slice %384 {offsets = [0, 0], sizes = [4, 8], strides = [1, 1]} : vector<8x8xf32> to vector<4x8xf32>
    %cst_152 = arith.constant 0.000000e+00 : f32
    %386 = vector.broadcast %cst_152 : f32 to vector<4x1xf32>
    %387 = arith.cmpf ogt, %38, %386 : vector<4x1xf32>
    %cst_153 = arith.constant 0.000000e+00 : f32
    %388 = vector.shape_cast %387 : vector<4x1xi1> to vector<4x1xi1>
    %389 = vector.broadcast %388 : vector<4x1xi1> to vector<4x8xi1>
    %390 = vector.broadcast %cst_153 : f32 to vector<4x8xf32>
    %391 = arith.select %389, %385, %390 : vector<4x8xi1>, vector<4x8xf32>
    %cst_154 = arith.constant 0.000000e+00 : f32
    %392 = vector.broadcast %cst_154 : f32 to vector<4x8xf32>
    %393 = arith.maximumf %391, %392 : vector<4x8xf32>
    %cst_155 = arith.constant dense<0.000000e+00> : vector<8xf32>
    %394 = vector.multi_reduction <add>, %393, %cst_155 [0] : vector<4x8xf32> to vector<8xf32>
    %395 = vector.shape_cast %394 : vector<8xf32> to vector<1x8xf32>
    %cst_156 = arith.constant 2.500000e-01 : f32
    %396 = vector.broadcast %cst_156 : f32 to vector<1x8xf32>
    %397 = arith.mulf %395, %396 : vector<1x8xf32>
    %398 = vector.broadcast %397 : vector<1x8xf32> to vector<4x8xf32>
    %399 = arith.subf %393, %398 : vector<4x8xf32>
    %400 = arith.mulf %399, %399 : vector<4x8xf32>
    %cst_157 = arith.constant dense<0.000000e+00> : vector<8xf32>
    %401 = vector.multi_reduction <add>, %400, %cst_157 [0] : vector<4x8xf32> to vector<8xf32>
    %402 = vector.shape_cast %401 : vector<8xf32> to vector<1x8xf32>
    %cst_158 = arith.constant 2.500000e-01 : f32
    %403 = vector.broadcast %cst_158 : f32 to vector<1x8xf32>
    %404 = arith.mulf %402, %403 : vector<1x8xf32>
    %c976 = arith.constant 976 : index
    %c0_159 = arith.constant 0 : index
    %405 = vector.load %arg0[%c976, %c0_159] : memref<1280x128xf32, #tpu.memory_space<vmem>>, vector<1x8xf32>
    %406 = vector.broadcast %405 : vector<1x8xf32> to vector<4x8xf32>
    %407 = arith.mulf %406, %399 : vector<4x8xf32>
    %cst_160 = arith.constant 9.99999974E-6 : f32
    %408 = vector.broadcast %cst_160 : f32 to vector<1x8xf32>
    %409 = arith.addf %404, %408 : vector<1x8xf32>
    %410 = math.rsqrt %409 : vector<1x8xf32>
    %411 = vector.broadcast %410 : vector<1x8xf32> to vector<4x8xf32>
    %412 = arith.mulf %407, %411 : vector<4x8xf32>
    %c984 = arith.constant 984 : index
    %c0_161 = arith.constant 0 : index
    %413 = vector.load %arg0[%c984, %c0_161] : memref<1280x128xf32, #tpu.memory_space<vmem>>, vector<1x8xf32>
    %414 = vector.broadcast %413 : vector<1x8xf32> to vector<4x8xf32>
    %415 = arith.addf %412, %414 : vector<4x8xf32>
    %cst_162 = arith.constant dense<0.000000e+00> : vector<8x8xf32>
    %416 = tpu.matmul %72, %415, %cst_162 {dimension_numbers = #tpu.dot_dimension_numbers<[1], [0], [0], [1], [0, 0, 1, 1], [], []>} : vector<8x4xf32>, vector<4x8xf32>, vector<8x8xf32> -> vector<8x8xf32>
    %c104_163 = arith.constant 104 : index
    %c0_164 = arith.constant 0 : index
    %417 = vector.load %arg0[%c104_163, %c0_164] : memref<1280x128xf32, #tpu.memory_space<vmem>>, vector<8x1xf32>
    %c688 = arith.constant 688 : index
    %c0_165 = arith.constant 0 : index
    %418 = vector.load %arg0[%c688, %c0_165] : memref<1280x128xf32, #tpu.memory_space<vmem>>, vector<1x32xf32>
    %c696 = arith.constant 696 : index
    %c0_166 = arith.constant 0 : index
    %419 = vector.load %arg0[%c696, %c0_166] : memref<1280x128xf32, #tpu.memory_space<vmem>>, vector<1x32xf32>
    %420 = vector.broadcast %417 : vector<8x1xf32> to vector<8x32xf32>
    %421 = vector.broadcast %418 : vector<1x32xf32> to vector<8x32xf32>
    %422 = arith.mulf %420, %421 : vector<8x32xf32>
    %423 = vector.broadcast %417 : vector<8x1xf32> to vector<8x32xf32>
    %424 = vector.broadcast %419 : vector<1x32xf32> to vector<8x32xf32>
    %425 = arith.mulf %423, %424 : vector<8x32xf32>
    %c104_167 = arith.constant 104 : index
    %c1_168 = arith.constant 1 : index
    %426 = vector.load %arg0[%c104_167, %c1_168] : memref<1280x128xf32, #tpu.memory_space<vmem>>, vector<8x1xf32>
    %c689 = arith.constant 689 : index
    %c0_169 = arith.constant 0 : index
    %427 = vector.load %arg0[%c689, %c0_169] : memref<1280x128xf32, #tpu.memory_space<vmem>>, vector<1x32xf32>
    %c697 = arith.constant 697 : index
    %c0_170 = arith.constant 0 : index
    %428 = vector.load %arg0[%c697, %c0_170] : memref<1280x128xf32, #tpu.memory_space<vmem>>, vector<1x32xf32>
    %429 = vector.broadcast %426 : vector<8x1xf32> to vector<8x32xf32>
    %430 = vector.broadcast %427 : vector<1x32xf32> to vector<8x32xf32>
    %431 = arith.mulf %429, %430 : vector<8x32xf32>
    %432 = arith.addf %422, %431 : vector<8x32xf32>
    %433 = vector.broadcast %426 : vector<8x1xf32> to vector<8x32xf32>
    %434 = vector.broadcast %428 : vector<1x32xf32> to vector<8x32xf32>
    %435 = arith.mulf %433, %434 : vector<8x32xf32>
    %436 = arith.addf %425, %435 : vector<8x32xf32>
    %c704 = arith.constant 704 : index
    %c0_171 = arith.constant 0 : index
    %437 = vector.load %arg0[%c704, %c0_171] : memref<1280x128xf32, #tpu.memory_space<vmem>>, vector<8x32xf32>
    %cst_172 = arith.constant dense<0.000000e+00> : vector<8x32xf32>
    %438 = tpu.matmul %242, %437, %cst_172 {dimension_numbers = #tpu.dot_dimension_numbers<[1], [0], [0], [1], [0, 0, 1, 1], [], []>} : vector<8x8xf32>, vector<8x32xf32>, vector<8x32xf32> -> vector<8x32xf32>
    %c712 = arith.constant 712 : index
    %c0_173 = arith.constant 0 : index
    %439 = vector.load %arg0[%c712, %c0_173] : memref<1280x128xf32, #tpu.memory_space<vmem>>, vector<8x32xf32>
    %cst_174 = arith.constant dense<0.000000e+00> : vector<8x32xf32>
    %440 = tpu.matmul %242, %439, %cst_174 {dimension_numbers = #tpu.dot_dimension_numbers<[1], [0], [0], [1], [0, 0, 1, 1], [], []>} : vector<8x8xf32>, vector<8x32xf32>, vector<8x32xf32> -> vector<8x32xf32>
    %441 = arith.addf %432, %438 : vector<8x32xf32>
    %442 = arith.addf %436, %440 : vector<8x32xf32>
    %c720 = arith.constant 720 : index
    %c0_175 = arith.constant 0 : index
    %443 = vector.load %arg0[%c720, %c0_175] : memref<1280x128xf32, #tpu.memory_space<vmem>>, vector<8x32xf32>
    %cst_176 = arith.constant dense<0.000000e+00> : vector<8x32xf32>
    %444 = tpu.matmul %416, %443, %cst_176 {dimension_numbers = #tpu.dot_dimension_numbers<[1], [0], [0], [1], [0, 0, 1, 1], [], []>} : vector<8x8xf32>, vector<8x32xf32>, vector<8x32xf32> -> vector<8x32xf32>
    %c728 = arith.constant 728 : index
    %c0_177 = arith.constant 0 : index
    %445 = vector.load %arg0[%c728, %c0_177] : memref<1280x128xf32, #tpu.memory_space<vmem>>, vector<8x32xf32>
    %cst_178 = arith.constant dense<0.000000e+00> : vector<8x32xf32>
    %446 = tpu.matmul %416, %445, %cst_178 {dimension_numbers = #tpu.dot_dimension_numbers<[1], [0], [0], [1], [0, 0, 1, 1], [], []>} : vector<8x8xf32>, vector<8x32xf32>, vector<8x32xf32> -> vector<8x32xf32>
    %447 = arith.addf %441, %444 : vector<8x32xf32>
    %448 = arith.addf %442, %446 : vector<8x32xf32>
    %cst_179 = arith.constant dense<0.000000e+00> : vector<16x32xf32>
    %449 = tpu.matmul %18, %447, %cst_179 {dimension_numbers = #tpu.dot_dimension_numbers<[1], [0], [0], [1], [0, 0, 1, 1], [], []>} : vector<16x8xf32>, vector<8x32xf32>, vector<16x32xf32> -> vector<16x32xf32>
    %cst_180 = arith.constant dense<0.000000e+00> : vector<16x32xf32>
    %450 = tpu.matmul %23, %448, %cst_180 {dimension_numbers = #tpu.dot_dimension_numbers<[1], [0], [0], [1], [0, 0, 1, 1], [], []>} : vector<16x8xf32>, vector<8x32xf32>, vector<16x32xf32> -> vector<16x32xf32>
    %451 = arith.addf %449, %450 : vector<16x32xf32>
    %c736 = arith.constant 736 : index
    %c0_181 = arith.constant 0 : index
    %452 = vector.load %arg0[%c736, %c0_181] : memref<1280x128xf32, #tpu.memory_space<vmem>>, vector<1x32xf32>
    %453 = vector.broadcast %452 : vector<1x32xf32> to vector<16x32xf32>
    %454 = arith.addf %451, %453 : vector<16x32xf32>
    %cst_182 = arith.constant 0.000000e+00 : f32
    %455 = vector.broadcast %cst_182 : f32 to vector<16x32xf32>
    %456 = arith.maximumf %454, %455 : vector<16x32xf32>
    %c744 = arith.constant 744 : index
    %c0_183 = arith.constant 0 : index
    %457 = vector.load %arg0[%c744, %c0_183] : memref<1280x128xf32, #tpu.memory_space<vmem>>, vector<32x32xf32>
    %cst_184 = arith.constant dense<0.000000e+00> : vector<16x32xf32>
    %458 = tpu.matmul %456, %457, %cst_184 {dimension_numbers = #tpu.dot_dimension_numbers<[1], [0], [0], [1], [0, 0, 1, 1], [], []>} : vector<16x32xf32>, vector<32x32xf32>, vector<16x32xf32> -> vector<16x32xf32>
    %c776 = arith.constant 776 : index
    %c0_185 = arith.constant 0 : index
    %459 = vector.load %arg0[%c776, %c0_185] : memref<1280x128xf32, #tpu.memory_space<vmem>>, vector<1x32xf32>
    %460 = vector.broadcast %459 : vector<1x32xf32> to vector<16x32xf32>
    %461 = arith.addf %458, %460 : vector<16x32xf32>
    %cst_186 = arith.constant 0.000000e+00 : f32
    %462 = vector.broadcast %cst_186 : f32 to vector<16x32xf32>
    %463 = arith.maximumf %461, %462 : vector<16x32xf32>
    %c784 = arith.constant 784 : index
    %c0_187 = arith.constant 0 : index
    %464 = vector.load %arg0[%c784, %c0_187] : memref<1280x128xf32, #tpu.memory_space<vmem>>, vector<32x8xf32>
    %cst_188 = arith.constant dense<0.000000e+00> : vector<16x8xf32>
    %465 = tpu.matmul %463, %464, %cst_188 {dimension_numbers = #tpu.dot_dimension_numbers<[1], [0], [0], [1], [0, 0, 1, 1], [], []>} : vector<16x32xf32>, vector<32x8xf32>, vector<16x8xf32> -> vector<16x8xf32>
    %c816 = arith.constant 816 : index
    %c0_189 = arith.constant 0 : index
    %466 = vector.load %arg0[%c816, %c0_189] : memref<1280x128xf32, #tpu.memory_space<vmem>>, vector<1x8xf32>
    %467 = vector.broadcast %466 : vector<1x8xf32> to vector<16x8xf32>
    %468 = arith.addf %465, %467 : vector<16x8xf32>
    %469 = vector.broadcast %24 : vector<16x1xf32> to vector<16x8xf32>
    %470 = arith.addf %468, %469 : vector<16x8xf32>
    %471 = vector.extract_strided_slice %470 {offsets = [0, 0], sizes = [8, 8], strides = [1, 1]} : vector<16x8xf32> to vector<8x8xf32>
    %472 = vector.extract_strided_slice %470 {offsets = [8, 0], sizes = [8, 8], strides = [1, 1]} : vector<16x8xf32> to vector<8x8xf32>
    %473 = arith.maximumf %471, %472 : vector<8x8xf32>
    %cst_190 = arith.constant 0.000000e+00 : f32
    %474 = vector.broadcast %cst_190 : f32 to vector<8x1xf32>
    %475 = arith.cmpf ogt, %25, %474 : vector<8x1xf32>
    %cst_191 = arith.constant 0.000000e+00 : f32
    %476 = vector.shape_cast %475 : vector<8x1xi1> to vector<8x1xi1>
    %477 = vector.broadcast %476 : vector<8x1xi1> to vector<8x8xi1>
    %478 = vector.broadcast %cst_191 : f32 to vector<8x8xf32>
    %479 = arith.select %477, %473, %478 : vector<8x8xi1>, vector<8x8xf32>
    %cst_192 = arith.constant 0.000000e+00 : f32
    %480 = vector.broadcast %cst_192 : f32 to vector<8x8xf32>
    %481 = arith.maximumf %479, %480 : vector<8x8xf32>
    %cst_193 = arith.constant dense<0.000000e+00> : vector<8xf32>
    %482 = vector.multi_reduction <add>, %481, %cst_193 [0] : vector<8x8xf32> to vector<8xf32>
    %483 = vector.shape_cast %482 : vector<8xf32> to vector<1x8xf32>
    %cst_194 = arith.constant 1.250000e-01 : f32
    %484 = vector.broadcast %cst_194 : f32 to vector<1x8xf32>
    %485 = arith.mulf %483, %484 : vector<1x8xf32>
    %486 = vector.broadcast %485 : vector<1x8xf32> to vector<8x8xf32>
    %487 = arith.subf %481, %486 : vector<8x8xf32>
    %488 = arith.mulf %487, %487 : vector<8x8xf32>
    %cst_195 = arith.constant dense<0.000000e+00> : vector<8xf32>
    %489 = vector.multi_reduction <add>, %488, %cst_195 [0] : vector<8x8xf32> to vector<8xf32>
    %490 = vector.shape_cast %489 : vector<8xf32> to vector<1x8xf32>
    %cst_196 = arith.constant 1.250000e-01 : f32
    %491 = vector.broadcast %cst_196 : f32 to vector<1x8xf32>
    %492 = arith.mulf %490, %491 : vector<1x8xf32>
    %c824 = arith.constant 824 : index
    %c0_197 = arith.constant 0 : index
    %493 = vector.load %arg0[%c824, %c0_197] : memref<1280x128xf32, #tpu.memory_space<vmem>>, vector<1x8xf32>
    %494 = vector.broadcast %493 : vector<1x8xf32> to vector<8x8xf32>
    %495 = arith.mulf %494, %487 : vector<8x8xf32>
    %cst_198 = arith.constant 9.99999974E-6 : f32
    %496 = vector.broadcast %cst_198 : f32 to vector<1x8xf32>
    %497 = arith.addf %492, %496 : vector<1x8xf32>
    %498 = math.rsqrt %497 : vector<1x8xf32>
    %499 = vector.broadcast %498 : vector<1x8xf32> to vector<8x8xf32>
    %500 = arith.mulf %495, %499 : vector<8x8xf32>
    %c832 = arith.constant 832 : index
    %c0_199 = arith.constant 0 : index
    %501 = vector.load %arg0[%c832, %c0_199] : memref<1280x128xf32, #tpu.memory_space<vmem>>, vector<1x8xf32>
    %502 = vector.broadcast %501 : vector<1x8xf32> to vector<8x8xf32>
    %503 = arith.addf %500, %502 : vector<8x8xf32>
    %cst_200 = arith.constant dense<0.000000e+00> : vector<16x8xf32>
    %504 = tpu.matmul %55, %503, %cst_200 {dimension_numbers = #tpu.dot_dimension_numbers<[1], [0], [0], [1], [0, 0, 1, 1], [], []>} : vector<16x8xf32>, vector<8x8xf32>, vector<16x8xf32> -> vector<16x8xf32>
    %c48 = arith.constant 48 : index
    %c0_201 = arith.constant 0 : index
    %505 = vector.load %arg0[%c48, %c0_201] : memref<1280x128xf32, #tpu.memory_space<vmem>>, vector<16x1xf32>
    %c536 = arith.constant 536 : index
    %c0_202 = arith.constant 0 : index
    %506 = vector.load %arg0[%c536, %c0_202] : memref<1280x128xf32, #tpu.memory_space<vmem>>, vector<1x32xf32>
    %c544 = arith.constant 544 : index
    %c0_203 = arith.constant 0 : index
    %507 = vector.load %arg0[%c544, %c0_203] : memref<1280x128xf32, #tpu.memory_space<vmem>>, vector<1x32xf32>
    %508 = vector.broadcast %505 : vector<16x1xf32> to vector<16x32xf32>
    %509 = vector.broadcast %506 : vector<1x32xf32> to vector<16x32xf32>
    %510 = arith.mulf %508, %509 : vector<16x32xf32>
    %511 = vector.broadcast %505 : vector<16x1xf32> to vector<16x32xf32>
    %512 = vector.broadcast %507 : vector<1x32xf32> to vector<16x32xf32>
    %513 = arith.mulf %511, %512 : vector<16x32xf32>
    %c48_204 = arith.constant 48 : index
    %c1_205 = arith.constant 1 : index
    %514 = vector.load %arg0[%c48_204, %c1_205] : memref<1280x128xf32, #tpu.memory_space<vmem>>, vector<16x1xf32>
    %c537 = arith.constant 537 : index
    %c0_206 = arith.constant 0 : index
    %515 = vector.load %arg0[%c537, %c0_206] : memref<1280x128xf32, #tpu.memory_space<vmem>>, vector<1x32xf32>
    %c545 = arith.constant 545 : index
    %c0_207 = arith.constant 0 : index
    %516 = vector.load %arg0[%c545, %c0_207] : memref<1280x128xf32, #tpu.memory_space<vmem>>, vector<1x32xf32>
    %517 = vector.broadcast %514 : vector<16x1xf32> to vector<16x32xf32>
    %518 = vector.broadcast %515 : vector<1x32xf32> to vector<16x32xf32>
    %519 = arith.mulf %517, %518 : vector<16x32xf32>
    %520 = arith.addf %510, %519 : vector<16x32xf32>
    %521 = vector.broadcast %514 : vector<16x1xf32> to vector<16x32xf32>
    %522 = vector.broadcast %516 : vector<1x32xf32> to vector<16x32xf32>
    %523 = arith.mulf %521, %522 : vector<16x32xf32>
    %524 = arith.addf %513, %523 : vector<16x32xf32>
    %c552 = arith.constant 552 : index
    %c0_208 = arith.constant 0 : index
    %525 = vector.load %arg0[%c552, %c0_208] : memref<1280x128xf32, #tpu.memory_space<vmem>>, vector<8x32xf32>
    %cst_209 = arith.constant dense<0.000000e+00> : vector<16x32xf32>
    %526 = tpu.matmul %158, %525, %cst_209 {dimension_numbers = #tpu.dot_dimension_numbers<[1], [0], [0], [1], [0, 0, 1, 1], [], []>} : vector<16x8xf32>, vector<8x32xf32>, vector<16x32xf32> -> vector<16x32xf32>
    %c560 = arith.constant 560 : index
    %c0_210 = arith.constant 0 : index
    %527 = vector.load %arg0[%c560, %c0_210] : memref<1280x128xf32, #tpu.memory_space<vmem>>, vector<8x32xf32>
    %cst_211 = arith.constant dense<0.000000e+00> : vector<16x32xf32>
    %528 = tpu.matmul %158, %527, %cst_211 {dimension_numbers = #tpu.dot_dimension_numbers<[1], [0], [0], [1], [0, 0, 1, 1], [], []>} : vector<16x8xf32>, vector<8x32xf32>, vector<16x32xf32> -> vector<16x32xf32>
    %529 = arith.addf %520, %526 : vector<16x32xf32>
    %530 = arith.addf %524, %528 : vector<16x32xf32>
    %c568 = arith.constant 568 : index
    %c0_212 = arith.constant 0 : index
    %531 = vector.load %arg0[%c568, %c0_212] : memref<1280x128xf32, #tpu.memory_space<vmem>>, vector<8x32xf32>
    %cst_213 = arith.constant dense<0.000000e+00> : vector<16x32xf32>
    %532 = tpu.matmul %504, %531, %cst_213 {dimension_numbers = #tpu.dot_dimension_numbers<[1], [0], [0], [1], [0, 0, 1, 1], [], []>} : vector<16x8xf32>, vector<8x32xf32>, vector<16x32xf32> -> vector<16x32xf32>
    %c576 = arith.constant 576 : index
    %c0_214 = arith.constant 0 : index
    %533 = vector.load %arg0[%c576, %c0_214] : memref<1280x128xf32, #tpu.memory_space<vmem>>, vector<8x32xf32>
    %cst_215 = arith.constant dense<0.000000e+00> : vector<16x32xf32>
    %534 = tpu.matmul %504, %533, %cst_215 {dimension_numbers = #tpu.dot_dimension_numbers<[1], [0], [0], [1], [0, 0, 1, 1], [], []>} : vector<16x8xf32>, vector<8x32xf32>, vector<16x32xf32> -> vector<16x32xf32>
    %535 = arith.addf %529, %532 : vector<16x32xf32>
    %536 = arith.addf %530, %534 : vector<16x32xf32>
    %cst_216 = arith.constant dense<0.000000e+00> : vector<32x32xf32>
    %537 = tpu.matmul %5, %535, %cst_216 {dimension_numbers = #tpu.dot_dimension_numbers<[1], [0], [0], [1], [0, 0, 1, 1], [], []>} : vector<32x16xf32>, vector<16x32xf32>, vector<32x32xf32> -> vector<32x32xf32>
    %cst_217 = arith.constant dense<0.000000e+00> : vector<32x32xf32>
    %538 = tpu.matmul %10, %536, %cst_217 {dimension_numbers = #tpu.dot_dimension_numbers<[1], [0], [0], [1], [0, 0, 1, 1], [], []>} : vector<32x16xf32>, vector<16x32xf32>, vector<32x32xf32> -> vector<32x32xf32>
    %539 = arith.addf %537, %538 : vector<32x32xf32>
    %c584 = arith.constant 584 : index
    %c0_218 = arith.constant 0 : index
    %540 = vector.load %arg0[%c584, %c0_218] : memref<1280x128xf32, #tpu.memory_space<vmem>>, vector<1x32xf32>
    %541 = vector.broadcast %540 : vector<1x32xf32> to vector<32x32xf32>
    %542 = arith.addf %539, %541 : vector<32x32xf32>
    %cst_219 = arith.constant 0.000000e+00 : f32
    %543 = vector.broadcast %cst_219 : f32 to vector<32x32xf32>
    %544 = arith.maximumf %542, %543 : vector<32x32xf32>
    %c592 = arith.constant 592 : index
    %c0_220 = arith.constant 0 : index
    %545 = vector.load %arg0[%c592, %c0_220] : memref<1280x128xf32, #tpu.memory_space<vmem>>, vector<32x32xf32>
    %cst_221 = arith.constant dense<0.000000e+00> : vector<32x32xf32>
    %546 = tpu.matmul %544, %545, %cst_221 {dimension_numbers = #tpu.dot_dimension_numbers<[1], [0], [0], [1], [0, 0, 1, 1], [], []>} : vector<32x32xf32>, vector<32x32xf32>, vector<32x32xf32> -> vector<32x32xf32>
    %c624 = arith.constant 624 : index
    %c0_222 = arith.constant 0 : index
    %547 = vector.load %arg0[%c624, %c0_222] : memref<1280x128xf32, #tpu.memory_space<vmem>>, vector<1x32xf32>
    %548 = vector.broadcast %547 : vector<1x32xf32> to vector<32x32xf32>
    %549 = arith.addf %546, %548 : vector<32x32xf32>
    %cst_223 = arith.constant 0.000000e+00 : f32
    %550 = vector.broadcast %cst_223 : f32 to vector<32x32xf32>
    %551 = arith.maximumf %549, %550 : vector<32x32xf32>
    %c632 = arith.constant 632 : index
    %c0_224 = arith.constant 0 : index
    %552 = vector.load %arg0[%c632, %c0_224] : memref<1280x128xf32, #tpu.memory_space<vmem>>, vector<32x8xf32>
    %cst_225 = arith.constant dense<0.000000e+00> : vector<32x8xf32>
    %553 = tpu.matmul %551, %552, %cst_225 {dimension_numbers = #tpu.dot_dimension_numbers<[1], [0], [0], [1], [0, 0, 1, 1], [], []>} : vector<32x32xf32>, vector<32x8xf32>, vector<32x8xf32> -> vector<32x8xf32>
    %c664 = arith.constant 664 : index
    %c0_226 = arith.constant 0 : index
    %554 = vector.load %arg0[%c664, %c0_226] : memref<1280x128xf32, #tpu.memory_space<vmem>>, vector<1x8xf32>
    %555 = vector.broadcast %554 : vector<1x8xf32> to vector<32x8xf32>
    %556 = arith.addf %553, %555 : vector<32x8xf32>
    %557 = vector.broadcast %11 : vector<32x1xf32> to vector<32x8xf32>
    %558 = arith.addf %556, %557 : vector<32x8xf32>
    %559 = vector.extract_strided_slice %558 {offsets = [0, 0], sizes = [16, 8], strides = [1, 1]} : vector<32x8xf32> to vector<16x8xf32>
    %560 = vector.extract_strided_slice %558 {offsets = [16, 0], sizes = [16, 8], strides = [1, 1]} : vector<32x8xf32> to vector<16x8xf32>
    %561 = arith.maximumf %559, %560 : vector<16x8xf32>
    %cst_227 = arith.constant 0.000000e+00 : f32
    %562 = vector.broadcast %cst_227 : f32 to vector<16x1xf32>
    %563 = arith.cmpf ogt, %12, %562 : vector<16x1xf32>
    %cst_228 = arith.constant 0.000000e+00 : f32
    %564 = vector.shape_cast %563 : vector<16x1xi1> to vector<16x1xi1>
    %565 = vector.broadcast %564 : vector<16x1xi1> to vector<16x8xi1>
    %566 = vector.broadcast %cst_228 : f32 to vector<16x8xf32>
    %567 = arith.select %565, %561, %566 : vector<16x8xi1>, vector<16x8xf32>
    %cst_229 = arith.constant 0.000000e+00 : f32
    %568 = vector.broadcast %cst_229 : f32 to vector<16x8xf32>
    %569 = arith.maximumf %567, %568 : vector<16x8xf32>
    %cst_230 = arith.constant dense<0.000000e+00> : vector<8xf32>
    %570 = vector.multi_reduction <add>, %569, %cst_230 [0] : vector<16x8xf32> to vector<8xf32>
    %571 = vector.shape_cast %570 : vector<8xf32> to vector<1x8xf32>
    %cst_231 = arith.constant 6.250000e-02 : f32
    %572 = vector.broadcast %cst_231 : f32 to vector<1x8xf32>
    %573 = arith.mulf %571, %572 : vector<1x8xf32>
    %574 = vector.broadcast %573 : vector<1x8xf32> to vector<16x8xf32>
    %575 = arith.subf %569, %574 : vector<16x8xf32>
    %576 = arith.mulf %575, %575 : vector<16x8xf32>
    %cst_232 = arith.constant dense<0.000000e+00> : vector<8xf32>
    %577 = vector.multi_reduction <add>, %576, %cst_232 [0] : vector<16x8xf32> to vector<8xf32>
    %578 = vector.shape_cast %577 : vector<8xf32> to vector<1x8xf32>
    %cst_233 = arith.constant 6.250000e-02 : f32
    %579 = vector.broadcast %cst_233 : f32 to vector<1x8xf32>
    %580 = arith.mulf %578, %579 : vector<1x8xf32>
    %c672 = arith.constant 672 : index
    %c0_234 = arith.constant 0 : index
    %581 = vector.load %arg0[%c672, %c0_234] : memref<1280x128xf32, #tpu.memory_space<vmem>>, vector<1x8xf32>
    %582 = vector.broadcast %581 : vector<1x8xf32> to vector<16x8xf32>
    %583 = arith.mulf %582, %575 : vector<16x8xf32>
    %cst_235 = arith.constant 9.99999974E-6 : f32
    %584 = vector.broadcast %cst_235 : f32 to vector<1x8xf32>
    %585 = arith.addf %580, %584 : vector<1x8xf32>
    %586 = math.rsqrt %585 : vector<1x8xf32>
    %587 = vector.broadcast %586 : vector<1x8xf32> to vector<16x8xf32>
    %588 = arith.mulf %583, %587 : vector<16x8xf32>
    %c680 = arith.constant 680 : index
    %c0_236 = arith.constant 0 : index
    %589 = vector.load %arg0[%c680, %c0_236] : memref<1280x128xf32, #tpu.memory_space<vmem>>, vector<1x8xf32>
    %590 = vector.broadcast %589 : vector<1x8xf32> to vector<16x8xf32>
    %591 = arith.addf %588, %590 : vector<16x8xf32>
    %c992 = arith.constant 992 : index
    %c0_237 = arith.constant 0 : index
    %592 = vector.load %arg0[%c992, %c0_237] : memref<1280x128xf32, #tpu.memory_space<vmem>>, vector<8x128xf32>
    %cst_238 = arith.constant dense<0.000000e+00> : vector<16x128xf32>
    %593 = tpu.matmul %591, %592, %cst_238 {dimension_numbers = #tpu.dot_dimension_numbers<[1], [0], [0], [1], [0, 0, 1, 1], [], []>} : vector<16x8xf32>, vector<8x128xf32>, vector<16x128xf32> -> vector<16x128xf32>
    %c1000 = arith.constant 1000 : index
    %c0_239 = arith.constant 0 : index
    %594 = vector.load %arg0[%c1000, %c0_239] : memref<1280x128xf32, #tpu.memory_space<vmem>>, vector<1x128xf32>
    %595 = vector.broadcast %594 : vector<1x128xf32> to vector<16x128xf32>
    %596 = arith.addf %593, %595 : vector<16x128xf32>
    %cst_240 = arith.constant 0.000000e+00 : f32
    %597 = vector.broadcast %cst_240 : f32 to vector<16x128xf32>
    %598 = arith.maximumf %596, %597 : vector<16x128xf32>
    %c1008 = arith.constant 1008 : index
    %c0_241 = arith.constant 0 : index
    %599 = vector.load %arg0[%c1008, %c0_241] : memref<1280x128xf32, #tpu.memory_space<vmem>>, vector<128x128xf32>
    %cst_242 = arith.constant dense<0.000000e+00> : vector<16x128xf32>
    %600 = tpu.matmul %598, %599, %cst_242 {dimension_numbers = #tpu.dot_dimension_numbers<[1], [0], [0], [1], [0, 0, 1, 1], [], []>} : vector<16x128xf32>, vector<128x128xf32>, vector<16x128xf32> -> vector<16x128xf32>
    %c1136 = arith.constant 1136 : index
    %c0_243 = arith.constant 0 : index
    %601 = vector.load %arg0[%c1136, %c0_243] : memref<1280x128xf32, #tpu.memory_space<vmem>>, vector<1x128xf32>
    %602 = vector.broadcast %601 : vector<1x128xf32> to vector<16x128xf32>
    %603 = arith.addf %600, %602 : vector<16x128xf32>
    %cst_244 = arith.constant 0.000000e+00 : f32
    %604 = vector.broadcast %cst_244 : f32 to vector<16x128xf32>
    %605 = arith.maximumf %603, %604 : vector<16x128xf32>
    %c1144 = arith.constant 1144 : index
    %c0_245 = arith.constant 0 : index
    %606 = vector.load %arg0[%c1144, %c0_245] : memref<1280x128xf32, #tpu.memory_space<vmem>>, vector<128x128xf32>
    %cst_246 = arith.constant dense<0.000000e+00> : vector<16x128xf32>
    %607 = tpu.matmul %605, %606, %cst_246 {dimension_numbers = #tpu.dot_dimension_numbers<[1], [0], [0], [1], [0, 0, 1, 1], [], []>} : vector<16x128xf32>, vector<128x128xf32>, vector<16x128xf32> -> vector<16x128xf32>
    %c1272 = arith.constant 1272 : index
    %c0_247 = arith.constant 0 : index
    %608 = vector.load %arg0[%c1272, %c0_247] : memref<1280x128xf32, #tpu.memory_space<vmem>>, vector<1x128xf32>
    %609 = vector.broadcast %608 : vector<1x128xf32> to vector<16x128xf32>
    %610 = arith.addf %607, %609 : vector<16x128xf32>
    %c0_248 = arith.constant 0 : index
    %c0_249 = arith.constant 0 : index
    %611 = vector.load %arg2[%c0_248, %c0_249] : memref<16x128xf32, #tpu.memory_space<vmem>>, vector<16x128xf32>
    tpu.vector_store %arg2[%c0_248, %c0_249], %610 {strides = array<i32>} : memref<16x128xf32, #tpu.memory_space<vmem>>, vector<16x128xf32>,
    return
  }
}

</mosaic_0001>

<bundles_post_ra>
// kernel: tpu_custom_call.1
= control target key start
LH: loop header
LB: loop body
LE: loop exit
PB: predicated region body
PF: predicated region fallthrough
CT: control target
= control target key end

     0   :  { %7 = vsyncpa [#allocation3], 0  ;;  %s6176_s0 = inlined_call_operand.hbm [shape: f32[1280,128], index: 0, kind: input, shape index: {}]   ;;  %s6177_s1 = inlined_call_operand.hbm [shape: s32[168,128], index: 1, kind: input, shape index: {}]   ;;  %s6178_s2 = inlined_call_operand.hbm [shape: f32[16,128], index: 2, kind: output, shape index: {}]  }
   0x1   :  { %8 = vsyncpa [#allocation6], 0 }
   0x2   :  { %9 = vsyncpa [#allocation4], 0  ;;  %s5725_s9 = smov [#allocation2]  }
   0x3   :  { %s15_s10 = sshll.u32 %s5725_s9, 4  ;;  %s16_s10 = int_to_ptr.vmem [resolvable:$true] %s15_s10 }
   0x4   :  { %s5667_s11 = scalar_lea.vmem %s16_s10, 20480  ;;  %p5672_p1 = scmp.lt.s32.totalorder %s16_s10, %s16_s10 }
   0x5   :  { %p5668_p0 = scmp.ne.s32.totalorder %s16_s10, %s5667_s11  ;;  %p5673_p2 = scmp.lt.s32.totalorder %s5667_s11, %s5667_s11 }
   0x7   :  { %p5674_p3 = por %p5673_p2, %p5672_p1 }
   0x9   :  { %p5675_p4 = pnand %p5674_p3, %p5668_p0 }
   0xb   :  { %5678 = shalt.err (!%p5675_p4)
}
   0xc   :  { %s5726_s12 = smov 128   ;;  %s5727_s13 = smov 8  }
   0xd   :  { %21 = dma.hbm_to_vmem [thread:$0]  %s6176_s0, 20480, %s16_s10, [#allocation3], %s5726_s12, %s5726_s12, %s5727_s13  }
   0xe   :  { %s5728_s16 = smov [#allocation5]  }
   0xf   :  { %s27_s17 = sshll.u32 %s5728_s16, 4  ;;  %s28_s17 = int_to_ptr.vmem [resolvable:$true] %s27_s17 }
  0x10   :  { %s5687_s18 = scalar_lea.vmem %s28_s17, 2688  ;;  %p5692_p6 = scmp.lt.s32.totalorder %s28_s17, %s28_s17 }
  0x11   :  { %p5688_p5 = scmp.ne.s32.totalorder %s28_s17, %s5687_s18  ;;  %p5693_p7 = scmp.lt.s32.totalorder %s5687_s18, %s5687_s18 }
  0x13   :  { %p5694_p8 = por %p5693_p7, %p5692_p6 }
  0x15   :  { %p5695_p9 = pnand %p5694_p8, %p5688_p5 }
  0x17   :  { %5698 = shalt.err (!%p5695_p9)
}
  0x18   :  { %33 = dma.hbm_to_vmem [thread:$0]  %s6177_s1, 2688, %s28_s17, [#allocation6], %s5726_s12, %s5726_s12, %s5727_s13  }
  0x19   :  { %5719 = dma.done.wait [#allocation3], 20480  }
  0x1a   :  { %5720 = vsyncadd [#allocation3], 4294946816 }
  0x1b   :  { %5721 = dma.done.wait [#allocation6], 2688  }
  0x1c   :  { %5722 = vsyncadd [#allocation6], 4294964608  ;;  %v5729_v0 = vmov 1   ;;  %v5730_v1 = vmov 0   ;;  %v218_v2 = vld [vmem:[#allocation2 + $0x48] sm:$0xff]  ;;  %v217_v3 = vld [vmem:[#allocation2 + $0x40] sm:$0xff]  ;;  %v40_v21 = vlaneseq }
  0x1d   :  { %5630 = vset.pattern.permute.xlu0 %v5729_v0  ;;  %5631 = vset.pattern.permute.xlu1 %v5730_v1  ;;  %v5731_v4 = vmov 2   ;;  %v43_v5 = vld [vmem:[#allocation5 + $0x8] sm:$0xff]  ;;  %v42_v6 = vld [vmem:[#allocation5] sm:$0xff]  ;;  %v72_v7 = vld [vmem:[#allocation5 + $0x30] sm:$0xff]  ;;  %v5732_v24 = vmov 0.0   ;;  %vm176_vm3 = vcmask 130048  }
  0x1e   :  { %250 = vperm.xlu0 %5630, %v218_v2   ;;  %223 = vperm.xlu1 %5631, %v217_v3   ;;  %v70_v8 = vld [vmem:[#allocation5 + $0x20] sm:$0xff]  ;;  %v73_v9 = vld [vmem:[#allocation5 + $0x38] sm:$0xff]  ;;  %v71_v10 = vld [vmem:[#allocation5 + $0x28] sm:$0xff]  ;;  %v5770_v22 = vshrl.u32 %v40_v21, 7  ;;  %v5780_v48 = vand.u32 127, %v40_v21  ;;  %vm511_vm12 = vcmask 261120  }
  0x1f   :  { %v99_v11 = vld [vmem:[#allocation2 + $0x8] sm:$0xff]  ;;  %v44_v12 = vld [vmem:[#allocation5 + $0x10] sm:$0xff]  ;;  %v101_v14 = vld [vmem:[#allocation2 + $0x18] sm:$0xff]  ;;  %vm5733_vm13 = vmmov 0   ;;  %s5734_s0 = smov [#allocation7]  }
  0x20   :  { %v103_v13 = vld [vmem:[#allocation2 + $0x28] sm:$0xff]  ;;  %v45_v15 = vld [vmem:[#allocation5 + $0x18] sm:$0xff]  ;;  %v98_v17 = vld [vmem:[#allocation2] sm:$0xff]  ;;  %s4815_s1 = sshll.u32 %s5734_s0, 4  ;;  %s4816_s1 = int_to_ptr.vmem [resolvable:$true] %s4815_s1 }
  0x21   :  { %vm746_vm0 = vcmp.gt.f32.partialorder %v103_v13, 0.0  ;;  %v102_v18 = vld [vmem:[#allocation2 + $0x20] sm:$0xff]  ;;  %v100_v19 = vld [vmem:[#allocation2 + $0x10] sm:$0xff]  ;;  %v133_v27 = vld [vmem:[#allocation2 + $0x58] sm:$0xff]  ;;  %s5699_s21 = scalar_lea.vmem %s4816_s1, 256  ;;  %p5704_p11 = scmp.lt.s32.totalorder %s4816_s1, %s4816_s1 }
  0x22   :  { %5634 = vset.pattern.permute.xlu0 %v5731_v4  ;;  %5632 = vset.pattern.permute.xlu1 %v5729_v0  ;;  %v748_v16 = vsel %vm746_vm0, 1, %v5730_v1  ;;  %vm745_vm1 = vcmp.gt.f32.partialorder %v102_v18, 0.0  ;;  %v4844_v23 = vld [vmem:[#allocation5 + $0x80] ss:$0 sm:$0xff]  ;;  %v1542_v28 = vld [vmem:[#allocation2 + $0x88] sm:$0xf]  ;;  %p5700_p10 = scmp.ne.s32.totalorder %s4816_s1, %s5699_s21  ;;  %p5705_p12 = scmp.lt.s32.totalorder %s5699_s21, %s5699_s21 }
  0x23   :  { %272 = vperm.xlu0 %5634, %v217_v3   ;;  %246 = vperm.xlu1 %5632, %v217_v3   ;;  %v747_v20 = vsel %vm745_vm1, 1, %v5730_v1  ;;  %vm173_vm2 = vcmp.eq.s32.totalorder %v5770_v22, %v4844_v23  ;;  %v4854_v31 = vld [vmem:[#allocation2 + $0x99] ss:$0 sm:$0xff]  ;;  %v4852_v34 = vld [vmem:[#allocation2 + $0x98] ss:$0 sm:$0xff]  ;;  %v503_v18 = vld [vmem:[#allocation2 + $0xb0] sm:$0xff] }
  0x24   :  { %v5774_v25 = vsel %vm173_vm2, 1.0, %v5732_v24  ;;  %v4853_v35 = vld [vmem:[#allocation2 + $0x91] ss:$0 sm:$0xff]  ;;  %v4851_v37 = vld [vmem:[#allocation2 + $0x90] ss:$0 sm:$0xff]  ;;  %vm761_vm1 = vcmask 64512   ;;  %p5706_p13 = por %p5705_p12, %p5704_p11 }
  0x25   :  { %v177_v26 = vsel %vm176_vm3, %v5774_v25, 0.0  ;;  %v4856_v40 = vld [vmem:[#allocation2 + $0x9a] ss:$0 sm:$0xff]  ;;  %v4855_v45 = vld [vmem:[#allocation2 + $0x92] ss:$0 sm:$0xff]  ;;  %vm204_vm2 = vcmask 60416  }
  0x26   :  { %p5707_p0 = pnand %p5706_p13, %p5700_p10 }
  0x27   :  { %5635 = vset.pattern.permute.xlu0 %v5730_v1  ;;  %5633 = vset.pattern.permute.xlu1 %v5731_v4 }
  0x28   :  { %228 = vperm.xlu0 %5635, %v218_v2   ;;  %276 = vperm.xlu1 %5633, %v218_v2  }
  0x2c   :  { %5636 = vset.pattern.permute.xlu1 %v5730_v1  ;;  %50 = vperm.xlu0 %5635, %v43_v5  }
  0x2d   :  { %47 = vperm.xlu1 %5636, %v42_v6  }
  0x30   :  { %81 = vperm.xlu0 %5635, %v72_v7  }
  0x31   :  { %75 = vperm.xlu1 %5636, %v70_v8  }
  0x34   :  { %84 = vperm.xlu0 %5635, %v73_v9  }
  0x35   :  { %78 = vperm.xlu1 %5636, %v71_v10  }
  0x38   :  { %726 = vperm.xlu0 %5635, %v99_v11  }
  0x39   :  { %53 = vperm.xlu1 %5636, %v44_v12  }
  0x3c   :  { %736 = vperm.xlu0 %5635, %v101_v14  }
  0x3d   :  { %56 = vperm.xlu1 %5636, %v45_v15  }
  0x40   :  { %753 = vperm.xlu0 %5635, %v748_v16   ;;  %v505_v16 = vld [vmem:[#allocation2 + $0xc0] sm:$0xff] }
  0x41   :  { %721 = vperm.xlu1 %5636, %v98_v17   ;;  %v504_v17 = vld [vmem:[#allocation2 + $0xb8] sm:$0xff] }
  0x44   :  { %5637 = vset.pattern.permute.xlu0 %v5729_v0 }
  0x45   :  { %731 = vperm.xlu1 %5636, %v100_v19   ;;  %v502_v19 = vld [vmem:[#allocation2 + $0xa8] sm:$0xff] }
  0x49   :  { %750 = vperm.xlu1 %5636, %v747_v20  }
  0x6d   :  { %178 = vadd.xlane.f32.xlu1 %v177_v26  ;;  %v4865_v26 = vld [vmem:[#allocation2 + $0xa0] ss:$0 sm:$0xff] }
  0x7e   :  { %1421 = vperm.xlu1 %5636, %v133_v27  }
  0x82   :  { %1547 = vperm.xlu1 %5636, %v1542_v28  }
  0x86   :  { %5639 = vset.pattern.permute.xlu1 %v5729_v0 }
  0x87   :  { %1563 = vperm.xlu1 %5639, %v1542_v28  }
  0x8b   :  { %5640 = vset.pattern.permute.xlu1 %v5730_v1 }
  0x99   :  { %v224_v29 = vpop.permute.xlu1 %223  ;;  %v251_v30 = vpop.permute.xlu0 %250 }
  0x9a   :  { %v258_v38 = vmul.f32 %v4853_v35, %v251_v30  ;;  %v266_v39 = vmul.f32 %v4854_v31, %v251_v30  ;;  %v241_v41 = vmul.f32 %v4852_v34, %v224_v29  ;;  %v235_v49 = vmul.f32 %v4851_v37, %v224_v29 }
  0x9e   :  { %v247_v32 = vpop.permute.xlu1 %246  ;;  %v273_v33 = vpop.permute.xlu0 %272 }
  0x9f   :  { %v265_v36 = vmul.f32 %v4854_v31, %v247_v32  ;;  %v257_v42 = vmul.f32 %v4853_v35, %v247_v32  ;;  %v291_v51 = vmul.f32 %v4856_v40, %v273_v33  ;;  %v283_v57 = vmul.f32 %v4855_v45, %v273_v33 }
  0xa1   :  { %v267_v50 = vadd.f32 %v265_v36, %v241_v41  ;;  %v259_v56 = vadd.f32 %v257_v42, %v235_v49  ;;  %v4866_v49 = vld [vmem:[#allocation2 + $0xc8] ss:$0 sm:$0xff] }
  0xa3   :  { %v229_v43 = vpop.permute.xlu0 %228  ;;  %v277_v44 = vpop.permute.xlu1 %276  ;;  %v293_v62 = vadd.f32 %v291_v51, %v267_v50  ;;  %v285_v2 = vadd.f32 %v283_v57, %v259_v56 }
  0xa4   :  { %v236_v46 = vmul.f32 %v4851_v37, %v229_v43  ;;  %v242_v47 = vmul.f32 %v4852_v34, %v229_v43  ;;  %v284_v52 = vmul.f32 %v4855_v45, %v277_v44  ;;  %v292_v53 = vmul.f32 %v4856_v40, %v277_v44  ;;  %v616_v44 = vld [vmem:[#allocation2 + $0xe8] sm:$0xff]  ;;  %v615_v45 = vld [vmem:[#allocation2 + $0xe0] sm:$0xff] }
  0xa6   :  { %v268_v54 = vadd.f32 %v266_v39, %v242_v47  ;;  %v260_v55 = vadd.f32 %v258_v38, %v236_v46  ;;  %v614_v46 = vld [vmem:[#allocation2 + $0xd8] sm:$0xff]  ;;  %v613_v47 = vld [vmem:[#allocation2 + $0xd0] sm:$0xff] }
  0xa7   :  { %v51_v58 = vpop.permute.xlu0 %50 }
  0xa8   :  { %v48_v59 = vpop.permute.xlu1 %47  ;;  %v294_v60 = vadd.f32 %v292_v53, %v268_v54  ;;  %v286_v61 = vadd.f32 %v284_v52, %v260_v55  ;;  %vm59_vm4 = vcmp.eq.s32.totalorder %v5780_v48, %v51_v58 }
  0xa9   :  { %vm58_vm5 = vcmp.eq.s32.totalorder %v5780_v48, %v48_v59  ;;  %v5788_v4 = vsel %vm59_vm4, 1.0, %v5732_v24 }
  0xaa   :  { %5219 = vmatprep.subr.mxu0 %v294_v60  ;;  %5229 = vmatprep.subr.mxu1 %v286_v61  ;;  %v5785_v63 = vsel %vm58_vm5, 1.0, %v5732_v24 }
  0xab   :  { %5220 = vmatpush3.msra.mxu0 %v294_v60  ;;  %5230 = vmatpush3.msra.mxu1 %v286_v61  ;;  %v82_v3 = vpop.permute.xlu0 %81 }
  0xac   :  { %5233 = vmatprep.mubr.msk.f32.mxu1 %vm176_vm3, %v5785_v63  ;;  %5221 = vmatprep.subr.mxu0 %v293_v62  ;;  %v76_v5 = vpop.permute.xlu1 %75  ;;  %vm88_vm7 = vcmp.eq.s32.totalorder %v5780_v48, %v82_v3  ;;  %v118_v3 = vld [vmem:[#allocation5 + $0x50] sm:$0xff] }
  0xad   :  { %5231 = vmatprep.subr.mxu1 %v285_v2  ;;  %vm86_vm6 = vcmp.eq.s32.totalorder %v5780_v48, %v76_v5  ;;  %5222 = vmatpush3.msra.mxu0 %v293_v62  ;;  %v5806_v10 = vsel %vm88_vm7, 1.0, %v5732_v24  ;;  %v878_v62 = vld [vmem:[#allocation2 + $0x68] sm:$0xff] }
  0xae   :  { %5232 = vmatpush3.msra.mxu1 %v285_v2  ;;  %v5794_v6 = vsel %vm86_vm6, 1.0, %v5732_v24  ;;  %5239 = vmatprep.subr.mxu0 %v505_v16  ;;  %v104_v2 = vld [vmem:[#allocation5 + $0x40] sm:$0xff]  ;;  %v105_v5 = vld [vmem:[#allocation5 + $0x48] sm:$0xff] }
  0xaf   :  { %5234 = vmatmul.mubr.msk.f32.vlgmr.msra.gmra.mxu1 %vm176_vm3, %v5788_v4  ;;  %5223 = vmatprep.mubr.msk.f32.mxu0 %vm176_vm3, %v5794_v6  ;;  %v85_v7 = vpop.permute.xlu0 %84 }
  0xb0   :  { %v79_v8 = vpop.permute.xlu1 %78  ;;  %vm89_vm9 = vcmp.eq.s32.totalorder %v5780_v48, %v85_v7  ;;  %5253 = vmatprep.subr.mxu1 %v616_v44  ;;  %899 = vperm.xlu0 %5637, %v878_v62   ;;  %v119_v7 = vld [vmem:[#allocation5 + $0x58] sm:$0xff] }
  0xb1   :  { %vm87_vm8 = vcmp.eq.s32.totalorder %v5780_v48, %v79_v8  ;;  %v5815_v12 = vsel %vm89_vm9, 1.0, %v5732_v24  ;;  %5254 = vmatpush3.msra.mxu1 %v616_v44  ;;  %v134_v8 = vld [vmem:[#allocation2 + $0x60] sm:$0xff] }
  0xb2   :  { %v5803_v9 = vsel %vm87_vm8, 1.0, %v5732_v24  ;;  %5255 = vmatprep.subr.mxu1 %v615_v45  ;;  %vm1427_vm14 = vcmp.gt.f32.partialorder %v134_v8, 0.0 }
  0xb3   :  { %5224 = vmatmul.mubr.msk.f32.vlgmr.msra.gmra.mxu0 %vm176_vm3, %v5803_v9  ;;  %5256 = vmatpush3.msra.mxu1 %v615_v45 }
  0xb4   :  { %5226 = vmatprep.mubr.msk.f32.mxu0 %vm176_vm3, %v5806_v10  ;;  %v54_v11 = vpop.permute.xlu1 %53  ;;  %5240 = vmatpush3.msra.mxu0 %v505_v16  ;;  %v5846_v16 = vpop.permute.xlu0 %726 }
  0xb5   :  { %vm60_vm10 = vcmp.eq.s32.totalorder %v5780_v48, %v54_v11  ;;  %5241 = vmatprep.subr.mxu0 %v504_v17  ;;  %5257 = vmatprep.subr.mxu1 %v614_v46  ;;  %v132_v11 = vld [vmem:[#allocation2 + $0x50] sm:$0xff] }
  0xb6   :  { %v5818_v13 = vsel %vm60_vm10, 1.0, %v5732_v24  ;;  %5242 = vmatpush3.msra.mxu0 %v504_v17  ;;  %5258 = vmatpush3.msra.mxu1 %v614_v46 }
  0xb7   :  { %5227 = vmatmul.mubr.msk.f32.gmra.mxu0 %vm176_vm3, %v5815_v12  ;;  %5236 = vmatprep.mubr.msk.f32.mxu1 %vm176_vm3, %v5818_v13 }
  0xb8   :  { %v57_v14 = vpop.permute.xlu1 %56  ;;  %5243 = vmatprep.subr.mxu0 %v503_v18  ;;  %5259 = vmatprep.subr.mxu1 %v613_v47 }
  0xb9   :  { %vm61_vm11 = vcmp.eq.s32.totalorder %v5780_v48, %v57_v14  ;;  %5244 = vmatpush3.msra.mxu0 %v503_v18  ;;  %5260 = vmatpush3.msra.mxu1 %v613_v47  ;;  %v1428_v14 = vsel %vm1427_vm14, 1, %v5730_v1 }
  0xba   :  { %v5826_v15 = vsel %vm61_vm11, 1.0, %v5732_v24  ;;  %5245 = vmatprep.subr.mxu0 %v502_v19  ;;  %5267 = vmatprep.subr.mxu1 %v5732_v24 }
  0xbb   :  { %5237 = vmatmul.mubr.msk.f32.gmra.mxu1 %vm176_vm3, %v5826_v15  ;;  %5246 = vmatpush3.msra.mxu0 %v502_v19  ;;  %v4871_v19 = vld [vmem:[#allocation2 + $0xf0] ss:$0 sm:$0xff] }
  0xbc   :  { %5279 = vmatprep.subr.mxu0 %v5732_v24  ;;  %5638 = vset.pattern.permute.xlu0 %v5730_v1  ;;  %v5848_v17 = vpop.permute.xlu1 %721 }
  0xbd   :  { %883 = vperm.xlu0 %5638, %v878_v62  }
  0xc1   :  { %107 = vperm.xlu0 %5638, %v104_v2  }
  0xc5   :  { %121 = vperm.xlu0 %5638, %v118_v3  }
  0xc9   :  { %110 = vperm.xlu0 %5638, %v105_v5  }
  0xcd   :  { %124 = vperm.xlu0 %5638, %v119_v7  }
  0xd1   :  { %1416 = vperm.xlu0 %5638, %v132_v11  }
  0xd5   :  { %1430 = vperm.xlu0 %5638, %v1428_v14  }
 0x16f   :  { %v5235_v20 = vpop.f32.mrf.mxu1 }
 0x171   :  { %v470_v27 = vpop.f32.mrf.mxu1 }
 0x173   :  { %v5225_v21 = vpop.f32.mrf.mxu0 }
 0x174   :  { %v476_v23 = vadd.f32 %v5235_v20, %v5225_v21  ;;  %v5850_v20 = vpop.permute.xlu0 %736 }
 0x175   :  { %v373_v28 = vpop.f32.mrf.mxu0 }
 0x176   :  { %v471_v29 = vadd.f32 %v470_v27, %v373_v28  ;;  %v495_v30 = vadd.f32 %v4865_v26, %v476_v23  ;;  %v5852_v23 = vpop.permute.xlu1 %731 }
 0x177   :  { %v5228_v32 = vpop.f32.mrf.mxu0 }
 0x178   :  { %v494_v31 = vadd.f32 %v4865_v26, %v471_v29  ;;  %v499_v34 = vmax.f32 %v495_v30, 0.0 }
 0x179   :  { %v383_v37 = vpop.f32.mrf.mxu0 }
 0x17a   :  { %v498_v33 = vmax.f32 %v494_v31, 0.0  ;;  %v5854_v31 = vpop.permute.xlu0 %753 }
 0x17b   :  { %v5238_v35 = vpop.f32.mrf.mxu1  ;;  %vm756_vm15 = vcmp.eq.s32.totalorder %v5854_v31, 1 }
 0x17c   :  { %v486_v36 = vadd.f32 %v5238_v35, %v5228_v32  ;;  %5247 = vmatprep.mubr.msk.f32.mxu0 %vm511_vm12, %v498_v33  ;;  %v5858_v35 = vpop.permute.xlu1 %750 }
 0x17d   :  { %v480_v38 = vpop.f32.mrf.mxu1  ;;  %5248 = vmatmul.mubr.msk.f32.vlgmr.msra.gmra.mxu0 %vm511_vm12, %v499_v34  ;;  %vm755_vm0 = vcmp.eq.s32.totalorder %v5858_v35, 1 }
 0x17e   :  { %v481_v39 = vadd.f32 %v480_v38, %v383_v37  ;;  %v497_v40 = vadd.f32 %v4865_v26, %v486_v36 }
 0x180   :  { %v496_v41 = vadd.f32 %v4865_v26, %v481_v39  ;;  %v501_v43 = vmax.f32 %v497_v40, 0.0 }
 0x182   :  { %v500_v42 = vmax.f32 %v496_v41, 0.0 }
 0x184   :  { %5250 = vmatprep.mubr.msk.f32.mxu0 %vm511_vm12, %v500_v42 }
 0x185   :  { %5251 = vmatmul.mubr.msk.f32.gmra.mxu0 %vm511_vm12, %v501_v43 }
 0x186   :  { %5281 = vmatprep.mubr.msk.f32.mxu0 %vm5733_vm13, %v5732_v24 }
 0x23d   :  { %v5249_v50 = vpop.f32.mrf.mxu0 }
 0x23e   :  { %v596_v51 = vadd.f32 %v5249_v50, %v4866_v49 }
 0x23f   :  { %v590_v52 = vpop.f32.mrf.mxu0 }
 0x240   :  { %v591_v53 = vadd.f32 %v4866_v49, %v590_v52  ;;  %v610_v55 = vmax.f32 %v596_v51, 0.0 }
 0x242   :  { %v609_v54 = vmax.f32 %v591_v53, 0.0 }
 0x244   :  { %5261 = vmatprep.mubr.msk.f32.mxu1 %vm511_vm12, %v609_v54 }
 0x245   :  { %v5252_v56 = vpop.f32.mrf.mxu0  ;;  %5262 = vmatmul.mubr.msk.f32.vlgmr.msra.gmra.mxu1 %vm511_vm12, %v610_v55 }
 0x246   :  { %v606_v57 = vadd.f32 %v5252_v56, %v4866_v49 }
 0x247   :  { %v600_v58 = vpop.f32.mrf.mxu0 }
 0x248   :  { %v601_v59 = vadd.f32 %v4866_v49, %v600_v58  ;;  %v612_v61 = vmax.f32 %v606_v57, 0.0 }
 0x24a   :  { %v611_v60 = vmax.f32 %v601_v59, 0.0 }
 0x24c   :  { %5264 = vmatprep.mubr.msk.f32.mxu1 %vm511_vm12, %v611_v60 }
 0x24d   :  { %5265 = vmatmul.mubr.msk.f32.gmra.mxu1 %vm511_vm12, %v612_v61 }
 0x24e   :  { %5271 = vmatprep.mubr.msk.f32.mxu1 %vm5733_vm13, %v5732_v24 }
 0x305   :  { %v5263_v18 = vpop.f32.mrf.mxu1 }
 0x306   :  { %v706_v26 = vadd.f32 %v5263_v18, %v4871_v19  ;;  %v4876_v18 = vld [vmem:[#allocation2 + $0xf8] ss:$0 sm:$0xff] }
 0x307   :  { %v700_v21 = vpop.f32.mrf.mxu1 }
 0x308   :  { %v701_v28 = vadd.f32 %v4871_v19, %v700_v21  ;;  %v740_v32 = vadd.f32 %v5846_v16, %v706_v26 }
 0x30a   :  { %v739_v36 = vadd.f32 %v5848_v17, %v701_v28 }
 0x30d   :  { %v5266_v27 = vpop.f32.mrf.mxu1 }
 0x30e   :  { %v716_v29 = vadd.f32 %v5266_v27, %v4871_v19  ;;  %v4877_v27 = vld [vmem:[#allocation2 + $0x100] ss:$0 sm:$0xff] }
 0x30f   :  { %v710_v30 = vpop.f32.mrf.mxu1 }
 0x310   :  { %v742_v33 = vadd.f32 %v5850_v20, %v716_v29  ;;  %v711_v34 = vadd.f32 %v4871_v19, %v710_v30 }
 0x312   :  { %v744_v37 = vmax.f32 %v740_v32, %v742_v33  ;;  %v741_v38 = vadd.f32 %v5852_v23, %v711_v34  ;;  %v988_v33 = vld [vmem:[#allocation2 + $0x120] sm:$0xff]  ;;  %v914_v34 = vld [vmem:[#allocation2 + $0x118] sm:$0xff] }
 0x313   :  { %5280 = vmatpush3.msra.mxu0 %v988_v33 }
 0x314   :  { %v758_v39 = vsel %vm756_vm15, %v744_v37, 0.0  ;;  %v743_v40 = vmax.f32 %v739_v36, %v741_v38  ;;  %v135_v36 = vld [vmem:[#allocation5 + $0x60] sm:$0xff]  ;;  %v4848_v37 = vld [vmem:[#allocation5 + $0x98] ss:$0 sm:$0xff]  ;;  %v149_v38 = vld [vmem:[#allocation5 + $0x70] sm:$0xff] }
 0x315   :  { %v760_v41 = vmax.f32 %v758_v39, 0.0  ;;  %138 = vperm.xlu1 %5640, %v135_v36   ;;  %vm201_vm4 = vcmp.eq.s32.totalorder %v5770_v22, %v4848_v37  ;;  %v210_v22 = vld [vmem:[#allocation5 + $0xa0] sm:$0xff] }
 0x316   :  { %v757_v42 = vsel %vm755_vm0, %v743_v40, 0.0  ;;  %v5886_v39 = vsel %vm201_vm4, 1.0, %v5732_v24  ;;  %v136_v40 = vld [vmem:[#allocation5 + $0x68] sm:$0xff]  ;;  %vm1725_vm4 = vcmask 31744  }
 0x317   :  { %v759_v43 = vmax.f32 %v757_v42, 0.0  ;;  %v763_v44 = vsel %vm761_vm1, %v760_v41, 0.0  ;;  %v165_v42 = vld [vmem:[#allocation2 + $0x80] sm:$0xf] }
 0x318   :  { %vm2099_vm5 = vcmp.gt.f32.partialorder %v165_v42, 0.0 }
 0x319   :  { %v762_v45 = vsel %vm761_vm1, %v759_v43, 0.0  ;;  %152 = vperm.xlu1 %5640, %v149_v38   ;;  %v1235_v38 = vld [vmem:[#allocation2 + $0x148] sm:$0xff] }
 0x31a   :  { %v764_v46 = vadd.f32 %v763_v44, %v762_v45  ;;  %v2100_v44 = vsel %vm2099_vm5, 1, %v5730_v1  ;;  %v163_v45 = vld [vmem:[#allocation2 + $0x70] sm:$0xff]  ;;  %v5893_v1 = vpop.permute.xlu0 %899  ;;  %vm1732_vm5 = vcmask 1043456  }
 0x31c   :  { %v765_v47 = vrot.slane %v764_v46, 4 }
 0x31d   :  { %141 = vperm.xlu1 %5640, %v136_v40   ;;  %v1233_v40 = vld [vmem:[#allocation2 + $0x138] sm:$0xff] }
 0x31e   :  { %v766_v49 = vadd.f32 %v765_v47, %v764_v46  ;;  %v182_v46 = vld [vmem:[#allocation5 + $0x88] sm:$0xff]  ;;  %v3699_v47 = vld [vmem:[#allocation2 + $0x38] sm:$0xff] }
 0x320   :  { %v767_v50 = vrot.slane %v766_v49, 2 }
 0x322   :  { %v768_v51 = vadd.f32 %v767_v50, %v766_v49  ;;  %v183_v49 = vld [vmem:[#allocation5 + $0x90] sm:$0xff] }
 0x323   :  { %v3698_v50 = vld [vmem:[#allocation2 + $0x30] sm:$0xff] }
 0x324   :  { %v769_v52 = vrot.slane %v768_v51, 1 }
 0x326   :  { %v770_v53 = vadd.f32 %v769_v52, %v768_v51  ;;  %v179_v51 = vpop.xlane.xlu1 %178 }
 0x327   :  { %v180_v52 = vmax.f32 %v179_v51, 1.0 }
 0x328   :  { %v771_v54 = vmul.f32 0.0625, %v770_v53  ;;  %v5895_v53 = vpop.permute.xlu0 %883 }
 0x32a   :  { %v772_v55 = vsub.f32 %v759_v43, %v771_v54  ;;  %v773_v56 = vsub.f32 %v760_v41, %v771_v54  ;;  %v150_v41 = vld [vmem:[#allocation5 + $0x78] sm:$0xff] }
 0x32b   :  { %155 = vperm.xlu1 %5640, %v150_v41   ;;  %v164_v43 = vld [vmem:[#allocation2 + $0x78] sm:$0xff]  ;;  %v1232_v41 = vld [vmem:[#allocation2 + $0x130] sm:$0xff] }
 0x32c   :  { %v774_v57 = vmul.f32 %v772_v55, %v772_v55  ;;  %v775_v58 = vmul.f32 %v773_v56, %v773_v56  ;;  %v791_v19 = vmul.f32 %v4876_v18, %v772_v55  ;;  %v792_v21 = vmul.f32 %v4876_v18, %v773_v56  ;;  %v108_v54 = vpop.permute.xlu0 %107 }
 0x32d   :  { %vm112_vm6 = vcmp.eq.s32.totalorder %v5780_v48, %v108_v54  ;;  %v1327_v54 = vld [vmem:[#allocation2 + $0x170] sm:$0xff] }
 0x32e   :  { %v776_v59 = vsel %vm761_vm1, %v774_v57, 0.0  ;;  %v777_v60 = vsel %vm761_vm1, %v775_v58, 0.0 }
 0x32f   :  { %v778_v61 = vadd.f32 %v777_v60, %v776_v59  ;;  %2093 = vperm.xlu1 %5640, %v164_v43   ;;  %v5900_v59 = vsel %vm112_vm6, 1.0, %v5732_v24 }
 0x330   :  { %v122_v55 = vpop.permute.xlu0 %121 }
 0x331   :  { %v779_v62 = vrot.slane %v778_v61, 4  ;;  %vm126_vm7 = vcmp.eq.s32.totalorder %v5780_v48, %v122_v55  ;;  %v1326_v55 = vld [vmem:[#allocation2 + $0x168] sm:$0xff] }
 0x333   :  { %v780_v2 = vadd.f32 %v779_v62, %v778_v61  ;;  %2102 = vperm.xlu1 %5640, %v2100_v44   ;;  %v4879_v61 = vld [vmem:[#allocation2 + $0x108] ss:$0 sm:$0xff]  ;;  %v4881_v62 = vld [vmem:[#allocation2 + $0x109] ss:$0 sm:$0xff] }
 0x335   :  { %v781_v3 = vrot.slane %v780_v2, 2 }
 0x337   :  { %v782_v5 = vadd.f32 %v781_v3, %v780_v2  ;;  %212 = vperm.xlu1 %5640, %v210_v22   ;;  %v4880_v2 = vld [vmem:[#allocation2 + $0x110] ss:$0 sm:$0xff]  ;;  %v4882_v3 = vld [vmem:[#allocation2 + $0x111] ss:$0 sm:$0xff]  ;;  %v4889_v22 = vld [vmem:[#allocation2 + $0x128] ss:$0 sm:$0xff] }
 0x339   :  { %v783_v7 = vrot.slane %v782_v5, 1 }
 0x33b   :  { %v784_v8 = vadd.f32 %v783_v7, %v782_v5  ;;  %185 = vperm.xlu1 %5640, %v182_v46   ;;  %v111_v5 = vpop.permute.xlu0 %110  ;;  %v890_v7 = vmul.f32 %v4879_v61, %v5895_v53 }
 0x33c   :  { %vm113_vm8 = vcmp.eq.s32.totalorder %v5780_v48, %v111_v5 }
 0x33d   :  { %v785_v11 = vmul.f32 0.0625, %v784_v8  ;;  %v906_v8 = vmul.f32 %v4881_v62, %v5893_v1  ;;  %v5918_v36 = vsel %vm113_vm8, 1.0, %v5732_v24 }
 0x33f   :  { %v793_v14 = vadd.f32 1e-05, %v785_v11  ;;  %188 = vperm.xlu1 %5640, %v183_v49   ;;  %v895_v11 = vmul.f32 %v4880_v2, %v5895_v53  ;;  %v125_v18 = vpop.permute.xlu0 %124 }
 0x340   :  { %vm127_vm9 = vcmp.eq.s32.totalorder %v5780_v48, %v125_v18 }
 0x341   :  { %5643 = vrsqrt.f32 %v793_v14  ;;  %v912_v14 = vmul.f32 %v4882_v3, %v5893_v1  ;;  %v5921_v37 = vsel %vm127_vm9, 1.0, %v5732_v24 }
 0x342   :  { %5645 = vrcp.f32 %v180_v52 }
 0x343   :  { %5641 = vset.pattern.permute.xlu1 %v5729_v0 }
 0x344   :  { %3731 = vperm.xlu1 %5641, %v3699_v47  }
 0x348   :  { %3727 = vperm.xlu1 %5641, %v3698_v50  }
 0x34e   :  { %v5644_v26 = vpop.eup %5643 }
 0x34f   :  { %v796_v28 = vmul.f32 %v5644_v26, %v792_v21  ;;  %v795_v29 = vmul.f32 %v5644_v26, %v791_v19  ;;  %v5646_v56 = vpop.eup %5645  ;;  %v907_v19 = vadd.f32 %v906_v8, %v890_v7  ;;  %v913_v21 = vadd.f32 %v912_v14, %v895_v11  ;;  %v4893_v7 = vld [vmem:[#allocation2 + $0x178] ss:$0 sm:$0xff]  ;;  %v5937_v11 = vpop.permute.xlu0 %1416 }
 0x351   :  { %v5872_v30 = vadd.f32 %v4877_v27, %v796_v28  ;;  %v5875_v32 = vadd.f32 %v4877_v27, %v795_v29 }
 0x353   :  { %5268 = vmatpush3.msra.mxu1 %v5872_v30 }
 0x354   :  { %5269 = vmatprep.subr.mxu1 %v5732_v24 }
 0x355   :  { %5270 = vmatpush3.msra.mxu1 %v5875_v32 }
 0x356   :  { %5272 = vmatmul.mubr.msk.f32.vlgmr.msra.gmra.mxu1 %vm176_vm3, %v5774_v25  ;;  %5274 = vmatprep.subr.mxu1 %v5732_v24  ;;  %v205_v25 = vsel %vm204_vm2, %v5886_v39, 0.0 }
 0x357   :  { %5276 = vmatprep.mubr.msk.f32.mxu1 %vm5733_vm13, %v5732_v24  ;;  %5275 = vmatpush3.msra.mxu1 %v914_v34 }
 0x358   :  { %206 = vadd.xlane.f32.xlu0 %v205_v25  ;;  %v1234_v25 = vld [vmem:[#allocation2 + $0x140] sm:$0xff] }
 0x36e   :  { %2088 = vperm.xlu0 %5638, %v163_v45  }
 0x372   :  { %3709 = vperm.xlu0 %5638, %v3699_v47  }
 0x376   :  { %3704 = vperm.xlu0 %5638, %v3698_v50  }
 0x37a   :  { %5642 = vset.pattern.permute.xlu0 %v5729_v0  ;;  %v5903_v0 = vsel %vm126_vm7, 1.0, %v5732_v24 }
 0x416   :  { %v873_v57 = vpop.f32.mrf.mxu1 }
 0x417   :  { %v877_v58 = vmul.f32 %v5646_v56, %v873_v57  ;;  %v1325_v56 = vld [vmem:[#allocation2 + $0x160] sm:$0xff]  ;;  %v1324_v57 = vld [vmem:[#allocation2 + $0x158] sm:$0xff] }
 0x418   :  { %v5273_v60 = vpop.f32.mrf.mxu1 }
 0x419   :  { %5277 = vmatmul.mubr.msk.f32.vlgmr.msra.gmra.mxu1 %vm761_vm1, %v877_v58  ;;  %5282 = vmatmul.mubr.msk.f32.vlgmr.msra.gmra.mxu0 %vm761_vm1, %v877_v58  ;;  %v4890_v58 = vld [vmem:[#allocation2 + $0x150] ss:$0 sm:$0xff] }
 0x41a   :  { %5286 = vmatprep.mubr.msk.f32.mxu1 %vm761_vm1, %v5903_v0  ;;  %5291 = vmatprep.mubr.msk.f32.mxu0 %vm761_vm1, %v5900_v59 }
 0x4d9   :  { %v984_v26 = vpop.f32.mrf.mxu1  ;;  %v1055_v27 = vpop.f32.mrf.mxu0 }
 0x4da   :  { %v1059_v28 = vadd.f32 %v984_v26, %v907_v19  ;;  %v1060_v29 = vadd.f32 %v1055_v27, %v913_v21  ;;  %v5939_v21 = vpop.permute.xlu1 %1421 }
 0x4db   :  { %v5278_v33 = vpop.f32.mrf.mxu1  ;;  %v5283_v34 = vpop.f32.mrf.mxu0 }
 0x4dc   :  { %5284 = vmatprep.subr.mxu1 %v1060_v29  ;;  %5289 = vmatprep.subr.mxu0 %v1059_v28 }
 0x4dd   :  { %5285 = vmatpush3.msra.mxu1 %v1060_v29  ;;  %5290 = vmatpush3.msra.mxu0 %v1059_v28  ;;  %v5943_v28 = vpop.permute.xlu0 %1430 }
 0x4de   :  { %5287 = vmatmul.mubr.msk.f32.vlgmr.msra.gmra.mxu1 %vm761_vm1, %v5921_v37  ;;  %5292 = vmatmul.mubr.msk.f32.vlgmr.msra.gmra.mxu0 %vm761_vm1, %v5918_v36  ;;  %vm1432_vm10 = vcmp.eq.s32.totalorder %v5943_v28, 1 }
 0x4df   :  { %5294 = vmatprep.subr.mxu1 %v1235_v38  ;;  %5305 = vmatprep.subr.mxu0 %v1327_v54 }
 0x4e0   :  { %5295 = vmatpush3.msra.mxu1 %v1235_v38  ;;  %5306 = vmatpush3.msra.mxu0 %v1327_v54 }
 0x4e1   :  { %5296 = vmatprep.subr.mxu1 %v1234_v25  ;;  %5307 = vmatprep.subr.mxu0 %v1326_v55 }
 0x4e2   :  { %5297 = vmatpush3.msra.mxu1 %v1234_v25  ;;  %5308 = vmatpush3.msra.mxu0 %v1326_v55 }
 0x4e3   :  { %5298 = vmatprep.subr.mxu1 %v1233_v40  ;;  %5309 = vmatprep.subr.mxu0 %v1325_v56 }
 0x4e4   :  { %5299 = vmatpush3.msra.mxu1 %v1233_v40  ;;  %5310 = vmatpush3.msra.mxu0 %v1325_v56 }
 0x4e5   :  { %5300 = vmatprep.subr.mxu1 %v1232_v41  ;;  %5311 = vmatprep.subr.mxu0 %v1324_v57 }
 0x4e6   :  { %5301 = vmatpush3.msra.mxu1 %v1232_v41  ;;  %5312 = vmatpush3.msra.mxu0 %v1324_v57 }
 0x4e7   :  { %5316 = vmatprep.subr.mxu1 %v5732_v24  ;;  %5321 = vmatprep.subr.mxu0 %v5732_v24 }
 0x59e   :  { %v5288_v42 = vpop.f32.mrf.mxu1  ;;  %v5293_v43 = vpop.f32.mrf.mxu0 }
 0x59f   :  { %v1220_v44 = vadd.f32 %v5293_v43, %v5288_v42 }
 0x5a0   :  { %v1133_v45 = vpop.f32.mrf.mxu1  ;;  %v1214_v46 = vpop.f32.mrf.mxu0 }
 0x5a1   :  { %v1215_v47 = vadd.f32 %v1214_v46, %v1133_v45  ;;  %v1229_v49 = vadd.f32 %v4889_v22, %v1220_v44 }
 0x5a3   :  { %v1228_v50 = vadd.f32 %v4889_v22, %v1215_v47  ;;  %v1231_v52 = vmax.f32 %v1229_v49, 0.0 }
 0x5a5   :  { %v1230_v51 = vmax.f32 %v1228_v50, 0.0 }
 0x5a7   :  { %5302 = vmatprep.mubr.msk.f32.mxu1 %vm511_vm12, %v1230_v51 }
 0x5a8   :  { %5303 = vmatmul.mubr.msk.f32.vlgmr.msra.gmra.mxu1 %vm511_vm12, %v1231_v52 }
 0x5a9   :  { %5318 = vmatprep.mubr.msk.f32.mxu1 %vm5733_vm13, %v5732_v24 }
 0x668   :  { %v5304_v60 = vpop.f32.mrf.mxu1 }
 0x669   :  { %v1319_v61 = vadd.f32 %v5304_v60, %v4890_v58 }
 0x66a   :  { %v1313_v62 = vpop.f32.mrf.mxu1 }
 0x66b   :  { %v1314_v2 = vadd.f32 %v4890_v58, %v1313_v62  ;;  %v1323_v5 = vmax.f32 %v1319_v61, 0.0  ;;  %v4896_v58 = vld [vmem:[#allocation2 + $0x180] ss:$0 sm:$0xff]  ;;  %v4897_v62 = vld [vmem:[#allocation2 + $0x188] ss:$0 sm:$0xff] }
 0x66d   :  { %v1322_v3 = vmax.f32 %v1314_v2, 0.0 }
 0x66f   :  { %5313 = vmatprep.mubr.msk.f32.mxu0 %vm511_vm12, %v1322_v3 }
 0x670   :  { %5314 = vmatmul.mubr.msk.f32.vlgmr.msra.gmra.mxu0 %vm511_vm12, %v1323_v5  ;;  %v1578_v5 = vld [vmem:[#allocation2 + $0x1a0] sm:$0xff] }
 0x671   :  { %5323 = vmatprep.mubr.msk.f32.mxu0 %vm5733_vm13, %v5732_v24  ;;  %5322 = vmatpush3.msra.mxu0 %v1578_v5  ;;  %v1905_v5 = vld [vmem:[#allocation2 + $0x1c0] sm:$0xff] }
 0x730   :  { %v5315_v8 = vpop.f32.mrf.mxu0 }
 0x731   :  { %v1411_v14 = vadd.f32 %v5315_v8, %v4893_v7  ;;  %v207_v8 = vpop.xlane.xlu0 %206 }
 0x732   :  { %v1405_v18 = vpop.f32.mrf.mxu0 }
 0x733   :  { %v1406_v19 = vadd.f32 %v4893_v7, %v1405_v18  ;;  %v1425_v26 = vadd.f32 %v5939_v21, %v1411_v14  ;;  %v1652_v7 = vld [vmem:[#allocation2 + $0x1a8] sm:$0xff]  ;;  %v5958_v14 = vpop.permute.xlu1 %1547  ;;  %v208_v18 = vmax.f32 %v207_v8, 1.0 }
 0x735   :  { %v1424_v27 = vadd.f32 %v5937_v11, %v1406_v19 }
 0x737   :  { %v1426_v29 = vmax.f32 %v1424_v27, %v1425_v26  ;;  %v5960_v19 = vpop.permute.xlu1 %1563 }
 0x739   :  { %v1433_v33 = vsel %vm1432_vm10, %v1426_v29, 0.0 }
 0x73a   :  { %v1434_v34 = vmax.f32 %v1433_v33, 0.0 }
 0x73b   :  { %v139_v26 = vpop.permute.xlu1 %138 }
 0x73c   :  { %v1435_v38 = vsel %vm761_vm1, %v1434_v34, 0.0  ;;  %vm143_vm11 = vcmp.eq.s32.totalorder %v5780_v48, %v139_v26 }
 0x73d   :  { %v1436_v25 = vrot.slane %v1435_v38, 4  ;;  %v5965_v33 = vsel %vm143_vm11, 1.0, %v5732_v24 }
 0x73f   :  { %v1437_v40 = vadd.f32 %v1436_v25, %v1435_v38  ;;  %v153_v27 = vpop.permute.xlu1 %152 }
 0x740   :  { %vm157_vm14 = vcmp.eq.s32.totalorder %v5780_v48, %v153_v27  ;;  %v4911_v27 = vld [vmem:[#allocation2 + $0x1b0] ss:$0 sm:$0xff] }
 0x741   :  { %v1438_v41 = vrot.slane %v1437_v40, 2 }
 0x743   :  { %v1439_v42 = vadd.f32 %v1438_v41, %v1437_v40  ;;  %v4901_v40 = vld [vmem:[#allocation2 + $0x191] ss:$0 sm:$0xff]  ;;  %v4902_v41 = vld [vmem:[#allocation2 + $0x199] ss:$0 sm:$0xff] }
 0x745   :  { %v1440_v43 = vrot.slane %v1439_v42, 1 }
 0x747   :  { %v1441_v44 = vadd.f32 %v1440_v43, %v1439_v42  ;;  %v142_v42 = vpop.permute.xlu1 %141  ;;  %v4899_v43 = vld [vmem:[#allocation2 + $0x190] ss:$0 sm:$0xff] }
 0x748   :  { %vm144_vm6 = vcmp.eq.s32.totalorder %v5780_v48, %v142_v42 }
 0x749   :  { %v1442_v22 = vmul.f32 0.125, %v1441_v44  ;;  %v4900_v44 = vld [vmem:[#allocation2 + $0x198] ss:$0 sm:$0xff] }
 0x74b   :  { %v1443_v45 = vsub.f32 %v1434_v34, %v1442_v22  ;;  %v5968_v34 = vsel %vm157_vm14, 1.0, %v5732_v24  ;;  %v1570_v22 = vmul.f32 %v4901_v40, %v5960_v19 }
 0x74d   :  { %v1444_v46 = vmul.f32 %v1443_v45, %v1443_v45  ;;  %v1458_v60 = vmul.f32 %v4896_v58, %v1443_v45  ;;  %v1576_v45 = vmul.f32 %v4902_v41, %v5960_v19 }
 0x74f   :  { %v1445_v47 = vsel %vm761_vm1, %v1444_v46, 0.0  ;;  %v1554_v46 = vmul.f32 %v4899_v43, %v5958_v14 }
 0x750   :  { %v1446_v49 = vrot.slane %v1445_v47, 4 }
 0x752   :  { %v1447_v50 = vadd.f32 %v1446_v49, %v1445_v47  ;;  %v1559_v47 = vmul.f32 %v4900_v44, %v5958_v14  ;;  %v156_v49 = vpop.permute.xlu1 %155  ;;  %v2166_v44 = vld [vmem:[#allocation2 + $0x358] sm:$0xff] }
 0x753   :  { %vm158_vm7 = vcmp.eq.s32.totalorder %v5780_v48, %v156_v49  ;;  %v4922_v49 = vld [vmem:[#allocation2 + $0x349] ss:$0 sm:$0xff] }
 0x754   :  { %v1448_v51 = vrot.slane %v1447_v50, 2 }
 0x756   :  { %v1449_v52 = vadd.f32 %v1448_v51, %v1447_v50  ;;  %v1571_v50 = vadd.f32 %v1570_v22, %v1554_v46  ;;  %v1577_v51 = vadd.f32 %v1576_v45, %v1559_v47  ;;  %v1999_v22 = vld [vmem:[#allocation2 + $0x1f8] sm:$0xff]  ;;  %v1998_v45 = vld [vmem:[#allocation2 + $0x1f0] sm:$0xff]  ;;  %v1997_v46 = vld [vmem:[#allocation2 + $0x1e8] sm:$0xff] }
 0x757   :  { %v1996_v47 = vld [vmem:[#allocation2 + $0x1e0] sm:$0xff] }
 0x758   :  { %v1450_v54 = vrot.slane %v1449_v52, 1 }
 0x75a   :  { %v1451_v55 = vadd.f32 %v1450_v54, %v1449_v52 }
 0x75c   :  { %v1452_v56 = vmul.f32 0.125, %v1451_v55 }
 0x75e   :  { %v1459_v57 = vadd.f32 1e-05, %v1452_v56 }
 0x760   :  { %5647 = vrsqrt.f32 %v1459_v57 }
 0x761   :  { %5649 = vrcp.f32 %v208_v18 }
 0x76d   :  { %v5648_v61 = vpop.eup %5647 }
 0x76e   :  { %v1461_v2 = vmul.f32 %v5648_v61, %v1458_v60  ;;  %v5650_v29 = vpop.eup %5649  ;;  %v5989_v60 = vsel %vm144_vm6, 1.0, %v5732_v24  ;;  %v5992_v61 = vsel %vm158_vm7, 1.0, %v5732_v24 }
 0x770   :  { %v5950_v3 = vadd.f32 %v4897_v62, %v1461_v2  ;;  %v1907_v62 = vld [vmem:[#allocation2 + $0x1d0] sm:$0xff]  ;;  %v1906_v2 = vld [vmem:[#allocation2 + $0x1c8] sm:$0xff] }
 0x772   :  { %5317 = vmatpush3.msra.mxu1 %v5950_v3 }
 0x773   :  { %5319 = vmatmul.mubr.msk.f32.vlgmr.msra.gmra.mxu1 %vm761_vm1, %v5886_v39  ;;  %5326 = vmatprep.subr.mxu1 %v5732_v24 }
 0x774   :  { %5328 = vmatprep.mubr.msk.f32.mxu1 %vm5733_vm13, %v5732_v24  ;;  %5327 = vmatpush3.msra.mxu1 %v1652_v7  ;;  %v1904_v7 = vld [vmem:[#allocation2 + $0x1b8] sm:$0xff] }
 0x833   :  { %v1537_v39 = vpop.f32.mrf.mxu1 }
 0x834   :  { %v5970_v38 = vmul.f32 %v5650_v29, %v1537_v39 }
 0x835   :  { %v5320_v25 = vpop.f32.mrf.mxu1 }
 0x836   :  { %5324 = vmatmul.mubr.msk.f32.vlgmr.msra.gmra.mxu0 %vm761_vm1, %v5970_v38  ;;  %5329 = vmatmul.mubr.msk.f32.vlgmr.msra.gmra.mxu1 %vm761_vm1, %v5970_v38 }
 0x837   :  { %5333 = vmatprep.mubr.msk.f32.mxu0 %vm1725_vm4, %v5968_v34  ;;  %5338 = vmatprep.mubr.msk.f32.mxu1 %vm1725_vm4, %v5965_v33 }
 0x8f6   :  { %v1648_v52 = vpop.f32.mrf.mxu0  ;;  %v1719_v54 = vpop.f32.mrf.mxu1 }
 0x8f7   :  { %v1723_v55 = vadd.f32 %v1648_v52, %v1571_v50  ;;  %v1724_v56 = vadd.f32 %v1719_v54, %v1577_v51  ;;  %v4920_v50 = vld [vmem:[#allocation2 + $0x348] ss:$0 sm:$0xff]  ;;  %v4912_v51 = vld [vmem:[#allocation2 + $0x1d8] ss:$0 sm:$0xff]  ;;  %v2158_v52 = vmul.f32 %v4922_v49, %v5960_v19 }
 0x8f8   :  { %v5325_v57 = vpop.f32.mrf.mxu0  ;;  %v5330_v58 = vpop.f32.mrf.mxu1 }
 0x8f9   :  { %5331 = vmatprep.subr.msk.mxu0 %vm1732_vm5, %v1724_v56  ;;  %5336 = vmatprep.subr.msk.mxu1 %vm1732_vm5, %v1723_v55 }
 0x8fa   :  { %5332 = vmatpush3.msk.msra.mxu0 %vm1732_vm5, %v1724_v56  ;;  %5337 = vmatpush3.msk.msra.mxu1 %vm1732_vm5, %v1723_v55  ;;  %v2146_v55 = vmul.f32 %v4920_v50, %v5958_v14 }
 0x8fb   :  { %5334 = vmatmul.mubr.msk.f32.vlgmr.msra.gmra.mxu0 %vm1725_vm4, %v5992_v61  ;;  %5339 = vmatmul.mubr.msk.f32.vlgmr.msra.gmra.mxu1 %vm1725_vm4, %v5989_v60 }
 0x8fc   :  { %5341 = vmatprep.subr.mxu0 %v1907_v62  ;;  %5352 = vmatprep.subr.mxu1 %v1999_v22 }
 0x8fd   :  { %5342 = vmatpush3.msra.mxu0 %v1907_v62  ;;  %5353 = vmatpush3.msra.mxu1 %v1999_v22  ;;  %v2159_v62 = vadd.f32 %v2158_v52, %v2146_v55 }
 0x8fe   :  { %5343 = vmatprep.subr.mxu0 %v1906_v2  ;;  %5354 = vmatprep.subr.mxu1 %v1998_v45 }
 0x8ff   :  { %5344 = vmatpush3.msra.mxu0 %v1906_v2  ;;  %5355 = vmatpush3.msra.mxu1 %v1998_v45 }
 0x900   :  { %5345 = vmatprep.subr.mxu0 %v1905_v5  ;;  %5356 = vmatprep.subr.mxu1 %v1997_v46 }
 0x901   :  { %5346 = vmatpush3.msra.mxu0 %v1905_v5  ;;  %5357 = vmatpush3.msra.mxu1 %v1997_v46 }
 0x902   :  { %5347 = vmatprep.subr.mxu0 %v1904_v7  ;;  %5358 = vmatprep.subr.mxu1 %v1996_v47 }
 0x903   :  { %5348 = vmatpush3.msra.mxu0 %v1904_v7  ;;  %5359 = vmatpush3.msra.mxu1 %v1996_v47  ;;  %v6028_v47 = vpop.permute.xlu0 %2088 }
 0x904   :  { %5363 = vmatprep.subr.mxu0 %v5732_v24  ;;  %5368 = vmatprep.subr.mxu1 %v5732_v24 }
 0x9bb   :  { %v5335_v8 = vpop.f32.mrf.mxu0  ;;  %v5340_v18 = vpop.f32.mrf.mxu1 }
 0x9bc   :  { %v1892_v26 = vadd.f32 %v5340_v18, %v5335_v8 }
 0x9bd   :  { %v1802_v29 = vpop.f32.mrf.mxu0  ;;  %v1886_v39 = vpop.f32.mrf.mxu1 }
 0x9be   :  { %v1887_v25 = vadd.f32 %v1886_v39, %v1802_v29  ;;  %v1901_v40 = vadd.f32 %v4911_v27, %v1892_v26  ;;  %v2237_v26 = vld [vmem:[#allocation2 + $0x360] sm:$0xff]  ;;  %v2384_v29 = vld [vmem:[#allocation2 + $0x370] sm:$0xff] }
 0x9bf   :  { %v4923_v39 = vld [vmem:[#allocation2 + $0x351] ss:$0 sm:$0xff] }
 0x9c0   :  { %v1900_v41 = vadd.f32 %v4911_v27, %v1887_v25  ;;  %v1903_v43 = vmax.f32 %v1901_v40, 0.0  ;;  %v2310_v27 = vld [vmem:[#allocation2 + $0x368] sm:$0xff]  ;;  %v4915_v25 = vld [vmem:[#allocation2 + $0x200] ss:$0 sm:$0xff]  ;;  %v4921_v40 = vld [vmem:[#allocation2 + $0x350] ss:$0 sm:$0xff] }
 0x9c1   :  { %v2151_v22 = vmul.f32 %v4921_v40, %v5958_v14 }
 0x9c2   :  { %v1902_v42 = vmax.f32 %v1900_v41, 0.0  ;;  %v2164_v41 = vmul.f32 %v4923_v39, %v5960_v19 }
 0x9c4   :  { %5349 = vmatprep.mubr.msk.f32.mxu0 %vm511_vm12, %v1902_v42  ;;  %v2165_v46 = vadd.f32 %v2164_v41, %v2151_v22 }
 0x9c5   :  { %5350 = vmatmul.mubr.msk.f32.vlgmr.msra.gmra.mxu0 %vm511_vm12, %v1903_v43  ;;  %v6025_v43 = vpop.permute.xlu1 %2093 }
 0x9c6   :  { %5364 = vmatpush3.msra.mxu0 %v2166_v44  ;;  %5365 = vmatprep.mubr.msk.f32.mxu0 %vm5733_vm13, %v5732_v24 }
 0x9c7   :  { %5373 = vmatprep.subr.mxu0 %v5732_v24 }
 0x9c9   :  { %5366 = vmatmul.mubr.msk.f32.vlgmr.msra.gmra.mxu0 %vm761_vm1, %v5970_v38  ;;  %v6032_v55 = vpop.permute.xlu1 %2102 }
 0x9ca   :  { %5375 = vmatprep.mubr.msk.f32.mxu0 %vm5733_vm13, %v5732_v24  ;;  %5374 = vmatpush3.msra.mxu0 %v2310_v27  ;;  %vm2104_vm8 = vcmp.eq.s32.totalorder %v6032_v55, 1 }
 0xa85   :  { %v5351_v54 = vpop.f32.mrf.mxu0 }
 0xa86   :  { %v1991_v56 = vadd.f32 %v5351_v54, %v4912_v51 }
 0xa87   :  { %v1985_v57 = vpop.f32.mrf.mxu0 }
 0xa88   :  { %v1986_v58 = vadd.f32 %v4912_v51, %v1985_v57  ;;  %v1995_v8 = vmax.f32 %v1991_v56, 0.0 }
 0xa89   :  { %v2233_v2 = vpop.f32.mrf.mxu0 }
 0xa8a   :  { %v1994_v5 = vmax.f32 %v1986_v58, 0.0  ;;  %v6013_v7 = vadd.f32 %v2233_v2, %v2159_v62 }
 0xa8b   :  { %v5367_v18 = vpop.f32.mrf.mxu0 }
 0xa8c   :  { %5360 = vmatprep.mubr.msk.f32.mxu1 %vm511_vm12, %v1994_v5 }
 0xa8d   :  { %5361 = vmatmul.mubr.msk.f32.vlgmr.msra.gmra.mxu1 %vm511_vm12, %v1995_v8 }
 0xa8e   :  { %5369 = vmatpush3.msra.mxu1 %v2237_v26  ;;  %5370 = vmatprep.mubr.msk.f32.mxu1 %vm5733_vm13, %v5732_v24 }
 0xa8f   :  { %5378 = vmatprep.subr.mxu1 %v5732_v24 }
 0xa91   :  { %5371 = vmatmul.mubr.msk.f32.vlgmr.msra.gmra.mxu1 %vm761_vm1, %v5970_v38 }
 0xa92   :  { %5380 = vmatprep.mubr.msk.f32.mxu1 %vm5733_vm13, %v5732_v24  ;;  %5379 = vmatpush3.msra.mxu1 %v2384_v29 }
 0xb4d   :  { %v5362_v42 = vpop.f32.mrf.mxu1 }
 0xb4e   :  { %v2083_v44 = vadd.f32 %v5362_v42, %v4915_v25 }
 0xb4f   :  { %v2077_v45 = vpop.f32.mrf.mxu1 }
 0xb50   :  { %v2078_v38 = vadd.f32 %v4915_v25, %v2077_v45  ;;  %v2097_v50 = vadd.f32 %v6025_v43, %v2083_v44 }
 0xb51   :  { %v2304_v49 = vpop.f32.mrf.mxu1 }
 0xb52   :  { %v2096_v51 = vadd.f32 %v6028_v47, %v2078_v38  ;;  %v2309_v52 = vadd.f32 %v2304_v49, %v2165_v46  ;;  %v4918_v46 = vld [vmem:[#allocation2 + $0x208] ss:$0 sm:$0xff] }
 0xb53   :  { %v5372_v54 = vpop.f32.mrf.mxu1 }
 0xb54   :  { %v2098_v19 = vmax.f32 %v2096_v51, %v2097_v50  ;;  %v4919_v51 = vld [vmem:[#allocation2 + $0x210] ss:$0 sm:$0xff] }
 0xb56   :  { %v2105_v14 = vsel %vm2104_vm8, %v2098_v19, 0.0 }
 0xb57   :  { %v2106_v56 = vmax.f32 %v2105_v14, 0.0 }
 0xb59   :  { %v2107_v57 = vsel %vm204_vm2, %v2106_v56, 0.0 }
 0xb5a   :  { %v2108_v58 = vrot.slane %v2107_v57, 4 }
 0xb5c   :  { %v2109_v62 = vadd.f32 %v2108_v58, %v2107_v57 }
 0xb5e   :  { %v2110_v2 = vrot.slane %v2109_v62, 2 }
 0xb60   :  { %v2111_v5 = vadd.f32 %v2110_v2, %v2109_v62 }
 0xb62   :  { %v2112_v8 = vrot.slane %v2111_v5, 1 }
 0xb64   :  { %v2113_v18 = vadd.f32 %v2112_v8, %v2111_v5 }
 0xb66   :  { %v2114_v26 = vmul.f32 0.25, %v2113_v18  ;;  %v4934_v18 = vld [vmem:[#allocation2 + $0x378] ss:$0 sm:$0xff] }
 0xb68   :  { %v2115_v27 = vsub.f32 %v2106_v56, %v2114_v26 }
 0xb6a   :  { %v2116_v29 = vmul.f32 %v2115_v27, %v2115_v27  ;;  %v2130_v49 = vmul.f32 %v4918_v46, %v2115_v27 }
 0xb6c   :  { %v2117_v39 = vsel %vm204_vm2, %v2116_v29, 0.0 }
 0xb6d   :  { %v2118_v25 = vrot.slane %v2117_v39, 4 }
 0xb6f   :  { %v2119_v40 = vadd.f32 %v2118_v25, %v2117_v39 }
 0xb71   :  { %v2120_v41 = vrot.slane %v2119_v40, 2 }
 0xb73   :  { %v2121_v42 = vadd.f32 %v2120_v41, %v2119_v40  ;;  %v2717_v41 = vld [vmem:[#allocation2 + $0x3c0] sm:$0xff] }
 0xb75   :  { %v2122_v44 = vrot.slane %v2121_v42, 1 }
 0xb77   :  { %v2123_v22 = vadd.f32 %v2122_v44, %v2121_v42  ;;  %v2716_v42 = vld [vmem:[#allocation2 + $0x3b8] sm:$0xff]  ;;  %v2715_v44 = vld [vmem:[#allocation2 + $0x3b0] sm:$0xff] }
 0xb79   :  { %v2124_v45 = vmul.f32 0.25, %v2123_v22  ;;  %v2714_v22 = vld [vmem:[#allocation2 + $0x3a8] sm:$0xff] }
 0xb7b   :  { %v2131_v38 = vadd.f32 1e-05, %v2124_v45  ;;  %v4935_v45 = vld [vmem:[#allocation2 + $0x3a0] ss:$0 sm:$0xff] }
 0xb7d   :  { %5651 = vrsqrt.f32 %v2131_v38 }
 0xb8a   :  { %v5652_v50 = vpop.eup %5651 }
 0xb8b   :  { %v2133_v54 = vmul.f32 %v5652_v50, %v2130_v49 }
 0xb8d   :  { %v2139_v19 = vadd.f32 %v4919_v51, %v2133_v54 }
 0xb8f   :  { %5376 = vmatmul.mubr.msk.f32.vlgmr.msra.gmra.mxu0 %vm761_vm1, %v2139_v19  ;;  %5381 = vmatmul.mubr.msk.f32.vlgmr.msra.gmra.mxu1 %vm761_vm1, %v2139_v19  ;;  %v2944_v19 = vld [vmem:[#allocation2 + $0x2c0] sm:$0xff] }
 0xb90   :  { %5385 = vmatprep.mubr.msk.f32.mxu0 %vm1725_vm4, %v5968_v34  ;;  %5390 = vmatprep.mubr.msk.f32.mxu1 %vm1725_vm4, %v5965_v33  ;;  %v2625_v33 = vld [vmem:[#allocation2 + $0x398] sm:$0xff]  ;;  %v2624_v34 = vld [vmem:[#allocation2 + $0x390] sm:$0xff] }
 0xc4f   :  { %v2380_v14 = vpop.f32.mrf.mxu0  ;;  %v2451_v56 = vpop.f32.mrf.mxu1 }
 0xc50   :  { %v2455_v57 = vadd.f32 %v2380_v14, %v6013_v7  ;;  %v2456_v58 = vadd.f32 %v2451_v56, %v2309_v52  ;;  %v2623_v7 = vld [vmem:[#allocation2 + $0x388] sm:$0xff]  ;;  %v2622_v52 = vld [vmem:[#allocation2 + $0x380] sm:$0xff] }
 0xc51   :  { %v5377_v62 = vpop.f32.mrf.mxu0  ;;  %v5382_v2 = vpop.f32.mrf.mxu1  ;;  %v4938_v14 = vld [vmem:[#allocation2 + $0x3c8] ss:$0 sm:$0xff] }
 0xc52   :  { %5383 = vmatprep.subr.msk.mxu0 %vm1732_vm5, %v2456_v58  ;;  %5388 = vmatprep.subr.msk.mxu1 %vm1732_vm5, %v2455_v57 }
 0xc53   :  { %5384 = vmatpush3.msk.msra.mxu0 %vm1732_vm5, %v2456_v58  ;;  %5389 = vmatpush3.msk.msra.mxu1 %vm1732_vm5, %v2455_v57 }
 0xc54   :  { %5386 = vmatmul.mubr.msk.f32.vlgmr.msra.gmra.mxu0 %vm1725_vm4, %v5992_v61  ;;  %5391 = vmatmul.mubr.msk.f32.vlgmr.msra.gmra.mxu1 %vm1725_vm4, %v5989_v60 }
 0xc55   :  { %5393 = vmatprep.subr.mxu0 %v2625_v33  ;;  %5404 = vmatprep.subr.mxu1 %v2717_v41 }
 0xc56   :  { %5394 = vmatpush3.msra.mxu0 %v2625_v33  ;;  %5405 = vmatpush3.msra.mxu1 %v2717_v41 }
 0xc57   :  { %5395 = vmatprep.subr.mxu0 %v2624_v34  ;;  %5406 = vmatprep.subr.mxu1 %v2716_v42 }
 0xc58   :  { %5396 = vmatpush3.msra.mxu0 %v2624_v34  ;;  %5407 = vmatpush3.msra.mxu1 %v2716_v42 }
 0xc59   :  { %5397 = vmatprep.subr.mxu0 %v2623_v7  ;;  %5408 = vmatprep.subr.mxu1 %v2715_v44 }
 0xc5a   :  { %5398 = vmatpush3.msra.mxu0 %v2623_v7  ;;  %5409 = vmatpush3.msra.mxu1 %v2715_v44 }
 0xc5b   :  { %5399 = vmatprep.subr.mxu0 %v2622_v52  ;;  %5410 = vmatprep.subr.mxu1 %v2714_v22 }
 0xc5c   :  { %5400 = vmatpush3.msra.mxu0 %v2622_v52  ;;  %5411 = vmatpush3.msra.mxu1 %v2714_v22 }
 0xc5d   :  { %5415 = vmatprep.subr.mxu0 %v5732_v24  ;;  %5420 = vmatprep.subr.mxu1 %v5732_v24 }
 0xd14   :  { %v5387_v5 = vpop.f32.mrf.mxu0  ;;  %v5392_v8 = vpop.f32.mrf.mxu1 }
 0xd15   :  { %v2610_v61 = vadd.f32 %v5392_v8, %v5387_v5 }
 0xd16   :  { %v2526_v26 = vpop.f32.mrf.mxu0  ;;  %v2604_v60 = vpop.f32.mrf.mxu1 }
 0xd17   :  { %v2605_v27 = vadd.f32 %v2604_v60, %v2526_v26  ;;  %v2619_v29 = vadd.f32 %v4934_v18, %v2610_v61 }
 0xd19   :  { %v2618_v39 = vadd.f32 %v4934_v18, %v2605_v27  ;;  %v2621_v40 = vmax.f32 %v2619_v29, 0.0 }
 0xd1b   :  { %v2620_v25 = vmax.f32 %v2618_v39, 0.0 }
 0xd1d   :  { %5401 = vmatprep.mubr.msk.f32.mxu0 %vm511_vm12, %v2620_v25 }
 0xd1e   :  { %5402 = vmatmul.mubr.msk.f32.vlgmr.msra.gmra.mxu0 %vm511_vm12, %v2621_v40 }
 0xd1f   :  { %5417 = vmatprep.mubr.msk.f32.mxu0 %vm5733_vm13, %v5732_v24 }
 0xdde   :  { %v5403_v38 = vpop.f32.mrf.mxu0 }
 0xddf   :  { %v2709_v46 = vadd.f32 %v5403_v38, %v4935_v45 }
 0xde0   :  { %v2703_v49 = vpop.f32.mrf.mxu0 }
 0xde1   :  { %v2704_v50 = vadd.f32 %v4935_v45, %v2703_v49  ;;  %v2713_v54 = vmax.f32 %v2709_v46, 0.0  ;;  %v4941_v49 = vld [vmem:[#allocation2 + $0x3d0] ss:$0 sm:$0xff] }
 0xde3   :  { %v2712_v51 = vmax.f32 %v2704_v50, 0.0 }
 0xde5   :  { %5412 = vmatprep.mubr.msk.f32.mxu1 %vm511_vm12, %v2712_v51 }
 0xde6   :  { %5413 = vmatmul.mubr.msk.f32.vlgmr.msra.gmra.mxu1 %vm511_vm12, %v2713_v54  ;;  %v4942_v54 = vld [vmem:[#allocation2 + $0x3d8] ss:$0 sm:$0xff] }
 0xde7   :  { %5421 = vmatpush3.msra.mxu1 %v2944_v19  ;;  %5422 = vmatprep.mubr.msk.f32.mxu1 %vm5733_vm13, %v5732_v24  ;;  %v213_v19 = vpop.permute.xlu1 %212 }
 0xde8   :  { %5430 = vmatprep.subr.mxu1 %v5732_v24  ;;  %vm214_vm9 = vcmp.eq.s32.totalorder %v5780_v48, %v213_v19 }
 0xdea   :  { %5423 = vmatmul.mubr.msk.f32.vlgmr.msra.gmra.mxu1 %vm761_vm1, %v5950_v3 }
 0xdeb   :  { %5432 = vmatprep.mubr.msk.f32.mxu1 %vm5733_vm13, %v5732_v24 }
 0xea6   :  { %v5414_v56 = vpop.f32.mrf.mxu1 }
 0xea7   :  { %v2801_v57 = vadd.f32 %v5414_v56, %v4938_v14 }
 0xea8   :  { %v2795_v58 = vpop.f32.mrf.mxu1 }
 0xea9   :  { %v2796_v62 = vadd.f32 %v4938_v14, %v2795_v58  ;;  %v2805_v33 = vadd.f32 %v2801_v57, %v6025_v43  ;;  %v3018_v57 = vld [vmem:[#allocation2 + $0x2c8] sm:$0xff]  ;;  %v4850_v58 = vsel %vm214_vm9, 1.0, %v5732_v24 }
 0xeaa   :  { %v6069_v2 = vpop.f32.mrf.mxu1 }
 0xeab   :  { %v2804_v34 = vadd.f32 %v2796_v62, %v6028_v47  ;;  %v3091_v62 = vld [vmem:[#allocation2 + $0x2d0] sm:$0xff] }
 0xeac   :  { %v5424_v7 = vpop.f32.mrf.mxu1  ;;  %5431 = vmatpush3.msra.mxu1 %v3091_v62  ;;  %v3490_v62 = vld [vmem:[#allocation2 + $0x318] sm:$0xff] }
 0xead   :  { %v2806_v52 = vmax.f32 %v2804_v34, %v2805_v33  ;;  %v3165_v33 = vld [vmem:[#allocation2 + $0x2d8] sm:$0xff] }
 0xeaf   :  { %v2807_v5 = vsel %vm2104_vm8, %v2806_v52, 0.0 }
 0xeb0   :  { %v2808_v8 = vmax.f32 %v2807_v5, 0.0  ;;  %v4945_v5 = vld [vmem:[#allocation2 + $0x2b0] ss:$0 sm:$0xff] }
 0xeb2   :  { %v2809_v61 = vsel %vm204_vm2, %v2808_v8, 0.0 }
 0xeb3   :  { %v2810_v18 = vrot.slane %v2809_v61, 4 }
 0xeb5   :  { %v2811_v26 = vadd.f32 %v2810_v18, %v2809_v61  ;;  %v4946_v61 = vld [vmem:[#allocation2 + $0x2b8] ss:$0 sm:$0xff]  ;;  %v4948_v18 = vld [vmem:[#allocation2 + $0x2b9] ss:$0 sm:$0xff] }
 0xeb7   :  { %v2812_v60 = vrot.slane %v2811_v26, 2 }
 0xeb9   :  { %v2813_v27 = vadd.f32 %v2812_v60, %v2811_v26  ;;  %v2924_v26 = vmul.f32 %v4945_v5, %v5895_v53 }
 0xebb   :  { %v2814_v29 = vrot.slane %v2813_v27, 1 }
 0xebd   :  { %v2815_v39 = vadd.f32 %v2814_v29, %v2813_v27  ;;  %v2929_v27 = vmul.f32 %v4946_v61, %v5895_v53  ;;  %v2942_v29 = vmul.f32 %v4948_v18, %v5893_v1  ;;  %v3399_v53 = vld [vmem:[#allocation2 + $0x2f8] sm:$0xff] }
 0xebf   :  { %v2816_v25 = vmul.f32 0.25, %v2815_v39 }
 0xec1   :  { %v2817_v40 = vsub.f32 %v2808_v8, %v2816_v25  ;;  %v4947_v8 = vld [vmem:[#allocation2 + $0x2b1] ss:$0 sm:$0xff]  ;;  %v2943_v25 = vadd.f32 %v2942_v29, %v2929_v27 }
 0xec2   :  { %v2936_v60 = vmul.f32 %v4947_v8, %v5893_v1  ;;  %v3400_v1 = vld [vmem:[#allocation2 + $0x300] sm:$0xff] }
 0xec3   :  { %v2818_v41 = vmul.f32 %v2817_v40, %v2817_v40  ;;  %v2832_v50 = vmul.f32 %v4941_v49, %v2817_v40 }
 0xec4   :  { %v2937_v39 = vadd.f32 %v2936_v60, %v2924_v26  ;;  %v4961_v26 = vld [vmem:[#allocation2 + $0x330] ss:$0 sm:$0xff] }
 0xec5   :  { %v2819_v43 = vsel %vm204_vm2, %v2818_v41, 0.0 }
 0xec6   :  { %v2820_v47 = vrot.slane %v2819_v43, 4 }
 0xec8   :  { %v2821_v42 = vadd.f32 %v2820_v47, %v2819_v43 }
 0xeca   :  { %v2822_v44 = vrot.slane %v2821_v42, 2 }
 0xecc   :  { %v2823_v22 = vadd.f32 %v2822_v44, %v2821_v42 }
 0xece   :  { %v2824_v55 = vrot.slane %v2823_v22, 1 }
 0xed0   :  { %v2825_v45 = vadd.f32 %v2824_v55, %v2823_v22  ;;  %v3397_v22 = vld [vmem:[#allocation2 + $0x2e8] sm:$0xff] }
 0xed2   :  { %v2826_v38 = vmul.f32 0.25, %v2825_v45 }
 0xed4   :  { %v2833_v46 = vadd.f32 1e-05, %v2826_v38 }
 0xed6   :  { %5653 = vrsqrt.f32 %v2833_v46  ;;  %v4957_v46 = vld [vmem:[#allocation2 + $0x2e0] ss:$0 sm:$0xff] }
 0xee3   :  { %v5654_v51 = vpop.eup %5653 }
 0xee4   :  { %v2835_v14 = vmul.f32 %v5654_v51, %v2832_v50 }
 0xee6   :  { %v2841_v56 = vadd.f32 %v4942_v54, %v2835_v14  ;;  %v186_v54 = vpop.permute.xlu1 %185 }
 0xee8   :  { %5416 = vmatpush3.msk.msra.mxu0 %vm1732_vm5, %v2841_v56 }
 0xee9   :  { %5418 = vmatmul.mubr.msk.f32.vlgmr.msra.gmra.mxu0 %vm1725_vm4, %v4850_v58  ;;  %5425 = vmatprep.subr.mxu0 %v5732_v24  ;;  %v3491_v58 = vld [vmem:[#allocation2 + $0x320] sm:$0xff] }
 0xeea   :  { %5426 = vmatpush3.msra.mxu0 %v3018_v57  ;;  %5427 = vmatprep.mubr.msk.f32.mxu0 %vm5733_vm13, %v5732_v24  ;;  %v3492_v57 = vld [vmem:[#allocation2 + $0x328] sm:$0xff] }
 0xeeb   :  { %5435 = vmatprep.subr.mxu0 %v5732_v24 }
 0xeed   :  { %5428 = vmatmul.mubr.msk.f32.vlgmr.msra.gmra.mxu0 %vm761_vm1, %v5950_v3 }
 0xeee   :  { %5437 = vmatprep.mubr.msk.f32.mxu0 %vm5733_vm13, %v5732_v24  ;;  %5436 = vmatpush3.msra.mxu0 %v3165_v33  ;;  %vm190_vm13 = vcmp.eq.s32.totalorder %v5780_v48, %v186_v54  ;;  %v3489_v33 = vld [vmem:[#allocation2 + $0x310] sm:$0xff] }
 0xeef   :  { %v4846_v56 = vsel %vm190_vm13, 1.0, %v5732_v24 }
 0xfa9   :  { %v2914_v34 = vpop.f32.mrf.mxu0 }
 0xfaa   :  { %5433 = vmatmul.mubr.msk.f32.vlgmr.msra.gmra.mxu1 %vm761_vm1, %v2914_v34  ;;  %5438 = vmatmul.mubr.msk.f32.vlgmr.msra.gmra.mxu0 %vm761_vm1, %v2914_v34  ;;  %v3750_v34 = vld [vmem:[#allocation2 + $0x228] sm:$0xff] }
 0xfab   :  { %v5419_v7 = vpop.f32.mrf.mxu0  ;;  %5442 = vmatprep.mubr.msk.f32.mxu1 %vm761_vm1, %v5903_v0  ;;  %5447 = vmatprep.mubr.msk.f32.mxu0 %vm761_vm1, %v5900_v59  ;;  %v3089_v0 = vadd.f32 %v6069_v2, %v2937_v39  ;;  %v3398_v2 = vld [vmem:[#allocation2 + $0x2f0] sm:$0xff] }
 0xfac   :  { %v4958_v7 = vld [vmem:[#allocation2 + $0x308] ss:$0 sm:$0xff] }
 0xfad   :  { %v3085_v3 = vpop.f32.mrf.mxu0 }
 0xfae   :  { %v3090_v40 = vadd.f32 %v3085_v3, %v2943_v25 }
 0xfaf   :  { %v5429_v52 = vpop.f32.mrf.mxu0 }
0x106a   :  { %v3161_v59 = vpop.f32.mrf.mxu1  ;;  %v3232_v41 = vpop.f32.mrf.mxu0 }
0x106b   :  { %v3236_v43 = vadd.f32 %v3161_v59, %v3089_v0  ;;  %v3237_v47 = vadd.f32 %v3232_v41, %v3090_v40 }
0x106c   :  { %v5434_v42 = vpop.f32.mrf.mxu1  ;;  %v5439_v44 = vpop.f32.mrf.mxu0 }
0x106d   :  { %5440 = vmatprep.subr.mxu1 %v3237_v47  ;;  %5445 = vmatprep.subr.mxu0 %v3236_v43 }
0x106e   :  { %5441 = vmatpush3.msra.mxu1 %v3237_v47  ;;  %5446 = vmatpush3.msra.mxu0 %v3236_v43 }
0x106f   :  { %5443 = vmatmul.mubr.msk.f32.vlgmr.msra.gmra.mxu1 %vm761_vm1, %v5921_v37  ;;  %5448 = vmatmul.mubr.msk.f32.vlgmr.msra.gmra.mxu0 %vm761_vm1, %v5918_v36 }
0x1070   :  { %5450 = vmatprep.subr.mxu1 %v3400_v1  ;;  %5461 = vmatprep.subr.mxu0 %v3492_v57 }
0x1071   :  { %5451 = vmatpush3.msra.mxu1 %v3400_v1  ;;  %5462 = vmatpush3.msra.mxu0 %v3492_v57  ;;  %v189_v57 = vpop.permute.xlu1 %188 }
0x1072   :  { %5452 = vmatprep.subr.mxu1 %v3399_v53  ;;  %5463 = vmatprep.subr.mxu0 %v3491_v58  ;;  %vm191_vm2 = vcmp.eq.s32.totalorder %v5780_v48, %v189_v57 }
0x1073   :  { %5453 = vmatpush3.msra.mxu1 %v3399_v53  ;;  %5464 = vmatpush3.msra.mxu0 %v3491_v58 }
0x1074   :  { %5454 = vmatprep.subr.mxu1 %v3398_v2  ;;  %5465 = vmatprep.subr.mxu0 %v3490_v62 }
0x1075   :  { %5455 = vmatpush3.msra.mxu1 %v3398_v2  ;;  %5466 = vmatpush3.msra.mxu0 %v3490_v62  ;;  %v3832_v62 = vld [vmem:[#allocation2 + $0x230] sm:$0xff] }
0x1076   :  { %5456 = vmatprep.subr.mxu1 %v3397_v22  ;;  %5467 = vmatprep.subr.mxu0 %v3489_v33 }
0x1077   :  { %5457 = vmatpush3.msra.mxu1 %v3397_v22  ;;  %5468 = vmatpush3.msra.mxu0 %v3489_v33  ;;  %v4847_v33 = vsel %vm191_vm2, 1.0, %v5732_v24  ;;  %v3710_v24 = vpop.permute.xlu0 %3709 }
0x1078   :  { %5477 = vmatprep.subr.mxu0 %v3750_v34 }
0x112f   :  { %v5444_v55 = vpop.f32.mrf.mxu1  ;;  %v5449_v45 = vpop.f32.mrf.mxu0 }
0x1130   :  { %v3385_v38 = vadd.f32 %v5449_v45, %v5444_v55 }
0x1131   :  { %v3304_v37 = vpop.f32.mrf.mxu1  ;;  %v3379_v49 = vpop.f32.mrf.mxu0 }
0x1132   :  { %v3380_v50 = vadd.f32 %v3379_v49, %v3304_v37  ;;  %v3394_v36 = vadd.f32 %v4957_v46, %v3385_v38 }
0x1134   :  { %v3393_v51 = vadd.f32 %v4957_v46, %v3380_v50  ;;  %v3396_v14 = vmax.f32 %v3394_v36, 0.0 }
0x1136   :  { %v3395_v19 = vmax.f32 %v3393_v51, 0.0  ;;  %v4964_v51 = vld [vmem:[#allocation2 + $0x338] ss:$0 sm:$0xff] }
0x1138   :  { %5458 = vmatprep.mubr.msk.f32.mxu1 %vm511_vm12, %v3395_v19 }
0x1139   :  { %5459 = vmatmul.mubr.msk.f32.vlgmr.msra.gmra.mxu1 %vm511_vm12, %v3396_v14  ;;  %v4965_v14 = vld [vmem:[#allocation2 + $0x340] ss:$0 sm:$0xff] }
0x113a   :  { %5474 = vmatprep.mubr.msk.f32.mxu1 %vm761_vm1, %v4846_v56 }
0x11f9   :  { %v5460_v3 = vpop.f32.mrf.mxu1 }
0x11fa   :  { %v3484_v52 = vadd.f32 %v5460_v3, %v4958_v7 }
0x11fb   :  { %v3478_v5 = vpop.f32.mrf.mxu1 }
0x11fc   :  { %v3479_v8 = vadd.f32 %v4958_v7, %v3478_v5  ;;  %v3488_v18 = vmax.f32 %v3484_v52, 0.0  ;;  %v3994_v7 = vld [vmem:[#allocation2 + $0x240] sm:$0xff]  ;;  %v4970_v5 = vld [vmem:[#allocation2 + $0x219] ss:$0 sm:$0xff] }
0x11fd   :  { %v4969_v52 = vld [vmem:[#allocation2 + $0x220] ss:$0 sm:$0xff] }
0x11fe   :  { %v3487_v61 = vmax.f32 %v3479_v8, 0.0  ;;  %v4971_v8 = vld [vmem:[#allocation2 + $0x221] ss:$0 sm:$0xff] }
0x1200   :  { %5469 = vmatprep.mubr.msk.f32.mxu0 %vm511_vm12, %v3487_v61  ;;  %v3705_v61 = vpop.permute.xlu0 %3704 }
0x1201   :  { %5470 = vmatmul.mubr.msk.f32.vlgmr.msra.gmra.mxu0 %vm511_vm12, %v3488_v18 }
0x1202   :  { %5479 = vmatprep.mubr.msk.f32.mxu0 %vm761_vm1, %v5875_v32  ;;  %5478 = vmatpush3.msra.mxu0 %v3750_v34  ;;  %v3912_v34 = vld [vmem:[#allocation2 + $0x238] sm:$0xff] }
0x1203   :  { %5487 = vmatprep.subr.mxu0 %v3912_v34 }
0x1205   :  { %5480 = vmatmul.mubr.msk.f32.vlgmr.msra.gmra.mxu0 %vm761_vm1, %v5872_v30 }
0x1206   :  { %5488 = vmatpush3.msra.mxu0 %v3912_v34 }
0x12c1   :  { %v5471_v60 = vpop.f32.mrf.mxu0 }
0x12c2   :  { %v3576_v27 = vadd.f32 %v5471_v60, %v4961_v26  ;;  %v3723_v60 = vmul.f32 %v4969_v52, %v3710_v24 }
0x12c3   :  { %v3570_v29 = vpop.f32.mrf.mxu0 }
0x12c4   :  { %v3571_v39 = vadd.f32 %v4961_v26, %v3570_v29  ;;  %v3580_v25 = vadd.f32 %v3576_v27, %v5939_v21 }
0x12c6   :  { %v3579_v0 = vadd.f32 %v3571_v39, %v5937_v11  ;;  %v5481_v39 = vpop.f32.mrf.mxu0 }
0x12c8   :  { %v3581_v40 = vmax.f32 %v3579_v0, %v3580_v25 }
0x12ca   :  { %v3582_v59 = vsel %vm1432_vm10, %v3581_v40, 0.0  ;;  %v3722_v40 = vmul.f32 %v4969_v52, %v3705_v61  ;;  %v4370_v52 = vld [vmem:[#allocation2 + $0x290] sm:$0xff] }
0x12cb   :  { %v3583_v41 = vmax.f32 %v3582_v59, 0.0 }
0x12cd   :  { %v3584_v43 = vsel %vm761_vm1, %v3583_v41, 0.0 }
0x12ce   :  { %v3585_v47 = vrot.slane %v3584_v43, 4 }
0x12d0   :  { %v3586_v42 = vadd.f32 %v3585_v47, %v3584_v43  ;;  %v3823_v43 = vpop.f32.mrf.mxu0 }
0x12d2   :  { %v3587_v44 = vrot.slane %v3586_v42, 2 }
0x12d4   :  { %v3588_v1 = vadd.f32 %v3587_v44, %v3586_v42 }
0x12d6   :  { %v3589_v53 = vrot.slane %v3588_v1, 1 }
0x12d8   :  { %v3590_v2 = vadd.f32 %v3589_v53, %v3588_v1 }
0x12da   :  { %v3591_v22 = vmul.f32 0.125, %v3590_v2 }
0x12dc   :  { %v3592_v55 = vsub.f32 %v3583_v41, %v3591_v22 }
0x12de   :  { %v3593_v45 = vmul.f32 %v3592_v55, %v3592_v55  ;;  %v3607_v54 = vmul.f32 %v4964_v51, %v3592_v55  ;;  %v4988_v51 = vld [vmem:[#allocation2 + $0x248] ss:$0 sm:$0xff] }
0x12e0   :  { %v3594_v21 = vsel %vm761_vm1, %v3593_v45, 0.0 }
0x12e1   :  { %v3595_v38 = vrot.slane %v3594_v21, 4 }
0x12e3   :  { %v3596_v11 = vadd.f32 %v3595_v38, %v3594_v21 }
0x12e5   :  { %v3597_v46 = vrot.slane %v3596_v11, 2 }
0x12e7   :  { %v3598_v37 = vadd.f32 %v3597_v46, %v3596_v11 }
0x12e9   :  { %v3599_v28 = vrot.slane %v3598_v37, 1 }
0x12eb   :  { %v3600_v49 = vadd.f32 %v3599_v28, %v3598_v37 }
0x12ed   :  { %v3601_v50 = vmul.f32 0.125, %v3600_v49  ;;  %v4260_v49 = vld [vmem:[#allocation2 + $0x268] sm:$0xff] }
0x12ef   :  { %v3608_v36 = vadd.f32 1e-05, %v3601_v50  ;;  %v4259_v50 = vld [vmem:[#allocation2 + $0x260] sm:$0xff] }
0x12f1   :  { %5655 = vrsqrt.f32 %v3608_v36 }
0x12fe   :  { %v5656_v19 = vpop.eup %5655 }
0x12ff   :  { %v3610_v56 = vmul.f32 %v5656_v19, %v3607_v54 }
0x1301   :  { %v3616_v58 = vadd.f32 %v4965_v14, %v3610_v56 }
0x1303   :  { %5472 = vmatprep.subr.mxu1 %v3616_v58 }
0x1304   :  { %5473 = vmatpush3.msra.mxu1 %v3616_v58 }
0x1305   :  { %5475 = vmatmul.mubr.msk.f32.vlgmr.msra.gmra.mxu1 %vm761_vm1, %v4847_v33  ;;  %5482 = vmatprep.subr.mxu1 %v3832_v62 }
0x1306   :  { %5484 = vmatprep.mubr.msk.f32.mxu1 %vm761_vm1, %v5875_v32  ;;  %5483 = vmatpush3.msra.mxu1 %v3832_v62  ;;  %v4968_v32 = vld [vmem:[#allocation2 + $0x218] ss:$0 sm:$0xff] }
0x1307   :  { %5492 = vmatprep.subr.mxu1 %v3994_v7  ;;  %v3717_v26 = vmul.f32 %v4968_v32, %v3710_v24  ;;  %v3716_v0 = vmul.f32 %v4968_v32, %v3705_v61  ;;  %v4367_v61 = vld [vmem:[#allocation2 + $0x278] sm:$0xff] }
0x1309   :  { %5485 = vmatmul.mubr.msk.f32.vlgmr.msra.gmra.mxu1 %vm761_vm1, %v5872_v30  ;;  %v3732_v30 = vpop.permute.xlu1 %3731 }
0x130a   :  { %5493 = vmatpush3.msra.mxu1 %v3994_v7  ;;  %v3739_v27 = vmul.f32 %v4970_v5, %v3732_v30  ;;  %v3747_v29 = vmul.f32 %v4971_v8, %v3732_v30 }
0x130c   :  { %v3741_v41 = vadd.f32 %v3739_v27, %v3717_v26 }
0x130d   :  { %v3728_v18 = vpop.permute.xlu1 %3727 }
0x130e   :  { %v3746_v59 = vmul.f32 %v4971_v8, %v3728_v18  ;;  %v3909_v42 = vadd.f32 %v5481_v39, %v3741_v41  ;;  %v4368_v8 = vld [vmem:[#allocation2 + $0x280] sm:$0xff] }
0x1310   :  { %v3748_v53 = vadd.f32 %v3746_v59, %v3722_v40 }
0x13c5   :  { %v5476_v48 = vpop.f32.mrf.mxu1 }
0x13c7   :  { %v3689_v3 = vpop.f32.mrf.mxu1 }
0x13c8   :  { %5489 = vmatprep.mubr.msk.f32.mxu0 %vm761_vm1, %v3689_v3  ;;  %5494 = vmatprep.mubr.msk.f32.mxu1 %vm761_vm1, %v3689_v3 }
0x13c9   :  { %5490 = vmatmul.mubr.msk.f32.vlgmr.msra.gmra.mxu0 %vm761_vm1, %v5476_v48  ;;  %5495 = vmatmul.mubr.msk.f32.vlgmr.msra.gmra.mxu1 %vm761_vm1, %v5476_v48  ;;  %v5486_v25 = vpop.f32.mrf.mxu1 }
0x13ca   :  { %5501 = vmatprep.mubr.msk.f32.mxu0 %vm176_vm3, %v5794_v6  ;;  %5511 = vmatprep.mubr.msk.f32.mxu1 %vm176_vm3, %v5785_v63  ;;  %v3738_v6 = vmul.f32 %v4970_v5, %v3728_v18  ;;  %v3749_v63 = vadd.f32 %v3747_v29, %v3723_v60  ;;  %v4369_v5 = vld [vmem:[#allocation2 + $0x288] sm:$0xff]  ;;  %v4989_v18 = vld [vmem:[#allocation2 + $0x270] ss:$0 sm:$0xff] }
0x13cb   :  { %v3899_v47 = vpop.f32.mrf.mxu1 }
0x13cc   :  { %v3740_v44 = vadd.f32 %v3738_v6, %v3716_v0  ;;  %v3911_v1 = vadd.f32 %v5486_v25, %v3749_v63  ;;  %v3910_v45 = vadd.f32 %v3899_v47, %v3748_v53  ;;  %v4629_v47 = vld [vmem:[#allocation2 + $0x468] sm:$0xff] }
0x13cd   :  { %v4625_v53 = vld [vmem:[#allocation2 + $0x448] sm:$0xff] }
0x13ce   :  { %v3908_v55 = vadd.f32 %v3823_v43, %v3740_v44  ;;  %v4525_v43 = vld [vmem:[#allocation2 + $0x3e0] sm:$0xff]  ;;  %v4627_v44 = vld [vmem:[#allocation2 + $0x458] sm:$0xff] }
0x1489   :  { %v5491_v2 = vpop.f32.mrf.mxu0  ;;  %v5496_v22 = vpop.f32.mrf.mxu1 }
0x148a   :  { %v4071_v21 = vadd.f32 %v5491_v2, %v3909_v42  ;;  %v4073_v38 = vadd.f32 %v5496_v22, %v3911_v1  ;;  %v4628_v42 = vld [vmem:[#allocation2 + $0x460] sm:$0xff]  ;;  %v4626_v1 = vld [vmem:[#allocation2 + $0x450] sm:$0xff]  ;;  %v4623_v22 = vld [vmem:[#allocation2 + $0x438] sm:$0xff] }
0x148b   :  { %v3985_v11 = vpop.f32.mrf.mxu0  ;;  %v4061_v46 = vpop.f32.mrf.mxu1  ;;  %v4624_v2 = vld [vmem:[#allocation2 + $0x440] sm:$0xff] }
0x148c   :  { %v4070_v37 = vadd.f32 %v3985_v11, %v3908_v55  ;;  %v4072_v28 = vadd.f32 %v4061_v46, %v3910_v45  ;;  %5497 = vmatprep.subr.mxu0 %v4073_v38  ;;  %5507 = vmatprep.subr.mxu1 %v4071_v21  ;;  %v4622_v55 = vld [vmem:[#allocation2 + $0x430] sm:$0xff]  ;;  %v4621_v45 = vld [vmem:[#allocation2 + $0x428] sm:$0xff] }
0x148d   :  { %5498 = vmatpush3.msra.mxu0 %v4073_v38  ;;  %5508 = vmatpush3.msra.mxu1 %v4071_v21  ;;  %v4620_v21 = vld [vmem:[#allocation2 + $0x420] sm:$0xff]  ;;  %v4619_v38 = vld [vmem:[#allocation2 + $0x418] sm:$0xff]  ;;  %v4618_v11 = vld [vmem:[#allocation2 + $0x410] sm:$0xff] }
0x148e   :  { %5499 = vmatprep.subr.mxu0 %v4072_v28  ;;  %5509 = vmatprep.subr.mxu1 %v4070_v37 }
0x148f   :  { %5500 = vmatpush3.msra.mxu0 %v4072_v28  ;;  %5510 = vmatpush3.msra.mxu1 %v4070_v37  ;;  %v4994_v37 = vld [vmem:[#allocation2 + $0x298] ss:$0 sm:$0xff] }
0x1490   :  { %5502 = vmatmul.mubr.msk.f32.vlgmr.msra.gmra.mxu0 %vm176_vm3, %v5803_v9  ;;  %5512 = vmatmul.mubr.msk.f32.vlgmr.msra.gmra.mxu1 %vm176_vm3, %v5788_v4  ;;  %v4258_v9 = vld [vmem:[#allocation2 + $0x258] sm:$0xff]  ;;  %v4257_v4 = vld [vmem:[#allocation2 + $0x250] sm:$0xff] }
0x1491   :  { %5504 = vmatprep.mubr.msk.f32.mxu0 %vm176_vm3, %v5806_v10  ;;  %5514 = vmatprep.mubr.msk.f32.mxu1 %vm176_vm3, %v5818_v13 }
0x1492   :  { %5517 = vmatprep.subr.mxu0 %v4260_v49  ;;  %5531 = vmatprep.subr.mxu1 %v4370_v52 }
0x1493   :  { %5518 = vmatpush3.msra.mxu0 %v4260_v49  ;;  %5532 = vmatpush3.msra.mxu1 %v4370_v52 }
0x1494   :  { %5505 = vmatmul.mubr.msk.f32.gmra.mxu0 %vm176_vm3, %v5815_v12  ;;  %5515 = vmatmul.mubr.msk.f32.gmra.mxu1 %vm176_vm3, %v5826_v15 }
0x1495   :  { %5519 = vmatprep.subr.mxu0 %v4259_v50  ;;  %5533 = vmatprep.subr.mxu1 %v4369_v5 }
0x1496   :  { %5520 = vmatpush3.msra.mxu0 %v4259_v50  ;;  %5534 = vmatpush3.msra.mxu1 %v4369_v5 }
0x1497   :  { %5521 = vmatprep.subr.mxu0 %v4258_v9  ;;  %5535 = vmatprep.subr.mxu1 %v4368_v8 }
0x1498   :  { %5522 = vmatpush3.msra.mxu0 %v4258_v9  ;;  %5536 = vmatpush3.msra.mxu1 %v4368_v8 }
0x1499   :  { %5523 = vmatprep.subr.mxu0 %v4257_v4  ;;  %5537 = vmatprep.subr.mxu1 %v4367_v61 }
0x149a   :  { %5524 = vmatpush3.msra.mxu0 %v4257_v4  ;;  %5538 = vmatpush3.msra.mxu1 %v4367_v61 }
0x149b   :  { %5545 = vmatprep.subr.mxu0 %v4525_v43  ;;  %5550 = vmatprep.subr.mxu1 %v4629_v47 }
0x1550   :  { %v5503_v10 = vpop.f32.mrf.mxu0  ;;  %v5513_v13 = vpop.f32.mrf.mxu1 }
0x1551   :  { %v4231_v36 = vadd.f32 %v5513_v13, %v5503_v10 }
0x1552   :  { %v4140_v12 = vpop.f32.mrf.mxu0  ;;  %v4225_v54 = vpop.f32.mrf.mxu1 }
0x1553   :  { %v4226_v19 = vadd.f32 %v4225_v54, %v4140_v12  ;;  %v4250_v15 = vadd.f32 %v4988_v51, %v4231_v36 }
0x1554   :  { %v5506_v14 = vpop.f32.mrf.mxu0  ;;  %v5516_v56 = vpop.f32.mrf.mxu1 }
0x1555   :  { %v4249_v57 = vadd.f32 %v4988_v51, %v4226_v19  ;;  %v4241_v58 = vadd.f32 %v5516_v56, %v5506_v14  ;;  %v4254_v48 = vmax.f32 %v4250_v15, 0.0 }
0x1556   :  { %v4150_v62 = vpop.f32.mrf.mxu0  ;;  %v4235_v33 = vpop.f32.mrf.mxu1 }
0x1557   :  { %v4253_v34 = vmax.f32 %v4249_v57, 0.0  ;;  %v4236_v7 = vadd.f32 %v4235_v33, %v4150_v62  ;;  %v4252_v3 = vadd.f32 %v4988_v51, %v4241_v58 }
0x1559   :  { %v4251_v24 = vadd.f32 %v4988_v51, %v4236_v7  ;;  %5525 = vmatprep.mubr.msk.f32.mxu0 %vm511_vm12, %v4253_v34  ;;  %v4256_v32 = vmax.f32 %v4252_v3, 0.0 }
0x155a   :  { %5526 = vmatmul.mubr.msk.f32.vlgmr.msra.gmra.mxu0 %vm511_vm12, %v4254_v48 }
0x155b   :  { %v4255_v30 = vmax.f32 %v4251_v24, 0.0  ;;  %5546 = vmatpush3.msra.mxu0 %v4525_v43 }
0x155d   :  { %5528 = vmatprep.mubr.msk.f32.mxu0 %vm511_vm12, %v4255_v30 }
0x155e   :  { %5529 = vmatmul.mubr.msk.f32.gmra.mxu0 %vm511_vm12, %v4256_v32 }
0x161a   :  { %v5527_v26 = vpop.f32.mrf.mxu0 }
0x161b   :  { %v4350_v60 = vadd.f32 %v5527_v26, %v4989_v18 }
0x161c   :  { %v4344_v27 = vpop.f32.mrf.mxu0 }
0x161d   :  { %v4345_v29 = vadd.f32 %v4989_v18, %v4344_v27  ;;  %v4364_v0 = vmax.f32 %v4350_v60, 0.0 }
0x161e   :  { %v5530_v39 = vpop.f32.mrf.mxu0 }
0x161f   :  { %v4363_v25 = vmax.f32 %v4345_v29, 0.0  ;;  %v4360_v40 = vadd.f32 %v5530_v39, %v4989_v18 }
0x1620   :  { %v4354_v6 = vpop.f32.mrf.mxu0 }
0x1621   :  { %v4355_v59 = vadd.f32 %v4989_v18, %v4354_v6  ;;  %5539 = vmatprep.mubr.msk.f32.mxu1 %vm511_vm12, %v4363_v25  ;;  %v4366_v63 = vmax.f32 %v4360_v40, 0.0  ;;  %v4999_v25 = vld [vmem:[#allocation2 + $0x2a0] ss:$0 sm:$0xff] }
0x1622   :  { %5540 = vmatmul.mubr.msk.f32.vlgmr.msra.gmra.mxu1 %vm511_vm12, %v4364_v0 }
0x1623   :  { %v4365_v41 = vmax.f32 %v4355_v59, 0.0  ;;  %5551 = vmatpush3.msra.mxu1 %v4629_v47  ;;  %v5000_v59 = vld [vmem:[#allocation2 + $0x2a8] ss:$0 sm:$0xff] }
0x1624   :  { %5552 = vmatprep.subr.mxu1 %v4628_v42 }
0x1625   :  { %5542 = vmatprep.mubr.msk.f32.mxu1 %vm511_vm12, %v4365_v41  ;;  %5553 = vmatpush3.msra.mxu1 %v4628_v42  ;;  %v4617_v42 = vld [vmem:[#allocation2 + $0x408] sm:$0xff] }
0x1626   :  { %5543 = vmatmul.mubr.msk.f32.gmra.mxu1 %vm511_vm12, %v4366_v63  ;;  %5554 = vmatprep.subr.mxu1 %v4627_v44 }
0x1627   :  { %5555 = vmatpush3.msra.mxu1 %v4627_v44  ;;  %v4616_v44 = vld [vmem:[#allocation2 + $0x400] sm:$0xff] }
0x1628   :  { %5556 = vmatprep.subr.mxu1 %v4626_v1 }
0x1629   :  { %5557 = vmatpush3.msra.mxu1 %v4626_v1  ;;  %v4615_v1 = vld [vmem:[#allocation2 + $0x3f8] sm:$0xff] }
0x162a   :  { %5558 = vmatprep.subr.mxu1 %v4625_v53 }
0x162b   :  { %5559 = vmatpush3.msra.mxu1 %v4625_v53  ;;  %v4614_v53 = vld [vmem:[#allocation2 + $0x3f0] sm:$0xff] }
0x162c   :  { %5560 = vmatprep.subr.mxu1 %v4624_v2 }
0x162d   :  { %5561 = vmatpush3.msra.mxu1 %v4624_v2  ;;  %v4727_v2 = vld [vmem:[#allocation2 + $0x4f0] sm:$0xff] }
0x162e   :  { %5562 = vmatprep.subr.mxu1 %v4623_v22  ;;  %5585 = vmatprep.subr.mxu0 %v4727_v2 }
0x162f   :  { %5563 = vmatpush3.msra.mxu1 %v4623_v22  ;;  %v4726_v22 = vld [vmem:[#allocation2 + $0x4e8] sm:$0xff] }
0x1630   :  { %5564 = vmatprep.subr.mxu1 %v4622_v55 }
0x1631   :  { %5565 = vmatpush3.msra.mxu1 %v4622_v55  ;;  %v4725_v55 = vld [vmem:[#allocation2 + $0x4e0] sm:$0xff] }
0x1632   :  { %5566 = vmatprep.subr.mxu1 %v4621_v45 }
0x1633   :  { %5567 = vmatpush3.msra.mxu1 %v4621_v45  ;;  %v4724_v45 = vld [vmem:[#allocation2 + $0x4d8] sm:$0xff] }
0x1634   :  { %5568 = vmatprep.subr.mxu1 %v4620_v21 }
0x1635   :  { %5569 = vmatpush3.msra.mxu1 %v4620_v21  ;;  %v4723_v21 = vld [vmem:[#allocation2 + $0x4d0] sm:$0xff] }
0x1636   :  { %5570 = vmatprep.subr.mxu1 %v4619_v38 }
0x1637   :  { %5571 = vmatpush3.msra.mxu1 %v4619_v38  ;;  %v4722_v38 = vld [vmem:[#allocation2 + $0x4c8] sm:$0xff] }
0x1638   :  { %5572 = vmatprep.subr.mxu1 %v4618_v11 }
0x1639   :  { %5573 = vmatpush3.msra.mxu1 %v4618_v11  ;;  %v4721_v11 = vld [vmem:[#allocation2 + $0x4c0] sm:$0xff] }
0x163a   :  { %5574 = vmatprep.subr.mxu1 %v4617_v42 }
0x163b   :  { %5575 = vmatpush3.msra.mxu1 %v4617_v42 }
0x163c   :  { %5576 = vmatprep.subr.mxu1 %v4616_v44 }
0x163d   :  { %5577 = vmatpush3.msra.mxu1 %v4616_v44 }
0x163e   :  { %5578 = vmatprep.subr.mxu1 %v4615_v1 }
0x163f   :  { %5579 = vmatpush3.msra.mxu1 %v4615_v1 }
0x1640   :  { %5580 = vmatprep.subr.mxu1 %v4614_v53 }
0x1641   :  { %5581 = vmatpush3.msra.mxu1 %v4614_v53 }
0x16e2   :  { %v5541_v46 = vpop.f32.mrf.mxu1 }
0x16e3   :  { %v4460_v49 = vadd.f32 %v5541_v46, %v4994_v37  ;;  %v4720_v46 = vld [vmem:[#allocation2 + $0x4b8] sm:$0xff] }
0x16e4   :  { %v4454_v28 = vpop.f32.mrf.mxu1 }
0x16e5   :  { %v4455_v9 = vadd.f32 %v4994_v37, %v4454_v28  ;;  %v4474_v13 = vadd.f32 %v4460_v49, %v5846_v16  ;;  %v4718_v28 = vld [vmem:[#allocation2 + $0x4a8] sm:$0xff]  ;;  %v4717_v49 = vld [vmem:[#allocation2 + $0x4a0] sm:$0xff] }
0x16e6   :  { %v5544_v50 = vpop.f32.mrf.mxu1 }
0x16e7   :  { %v4470_v4 = vadd.f32 %v5544_v50, %v4994_v37  ;;  %v4473_v12 = vadd.f32 %v4455_v9, %v5848_v17  ;;  %v4716_v50 = vld [vmem:[#allocation2 + $0x498] sm:$0xff]  ;;  %v5001_v9 = vld [vmem:[#allocation2 + $0x3e8] ss:$0 sm:$0xff] }
0x16e8   :  { %v4464_v10 = vpop.f32.mrf.mxu1 }
0x16e9   :  { %v4476_v36 = vadd.f32 %v4470_v4, %v5850_v20  ;;  %v4465_v51 = vadd.f32 %v4994_v37, %v4464_v10  ;;  %v4719_v37 = vld [vmem:[#allocation2 + $0x4b0] sm:$0xff] }
0x16eb   :  { %v4478_v54 = vmax.f32 %v4474_v13, %v4476_v36  ;;  %v4475_v19 = vadd.f32 %v4465_v51, %v5852_v23 }
0x16ed   :  { %v4480_v15 = vsel %vm756_vm15, %v4478_v54, 0.0  ;;  %v4477_v14 = vmax.f32 %v4473_v12, %v4475_v19  ;;  %v4715_v54 = vld [vmem:[#allocation2 + $0x490] sm:$0xff]  ;;  %v4714_v19 = vld [vmem:[#allocation2 + $0x488] sm:$0xff] }
0x16ee   :  { %v4482_v56 = vmax.f32 %v4480_v15, 0.0  ;;  %v4713_v15 = vld [vmem:[#allocation2 + $0x480] sm:$0xff] }
0x16ef   :  { %v4479_v57 = vsel %vm755_vm0, %v4477_v14, 0.0  ;;  %v4712_v14 = vld [vmem:[#allocation2 + $0x478] sm:$0xff] }
0x16f0   :  { %v4481_v58 = vmax.f32 %v4479_v57, 0.0  ;;  %v4484_v62 = vsel %vm761_vm1, %v4482_v56, 0.0 }
0x16f2   :  { %v4483_v16 = vsel %vm761_vm1, %v4481_v58, 0.0 }
0x16f3   :  { %v4485_v20 = vadd.f32 %v4484_v62, %v4483_v16 }
0x16f5   :  { %v4486_v33 = vrot.slane %v4485_v20, 4 }
0x16f7   :  { %v4487_v34 = vadd.f32 %v4486_v33, %v4485_v20 }
0x16f9   :  { %v4488_v17 = vrot.slane %v4487_v34, 2 }
0x16fb   :  { %v4489_v7 = vadd.f32 %v4488_v17, %v4487_v34  ;;  %v5005_v34 = vld [vmem:[#allocation2 + $0x4f8] ss:$0 sm:$0xff] }
0x16fd   :  { %v4490_v48 = vrot.slane %v4489_v7, 1 }
0x16ff   :  { %v4491_v23 = vadd.f32 %v4490_v48, %v4489_v7 }
0x1701   :  { %v4492_v3 = vmul.f32 0.0625, %v4491_v23 }
0x1703   :  { %v4493_v31 = vsub.f32 %v4481_v58, %v4492_v3  ;;  %v4494_v24 = vsub.f32 %v4482_v56, %v4492_v3  ;;  %v5004_v56 = vld [vmem:[#allocation2 + $0x470] ss:$0 sm:$0xff] }
0x1705   :  { %v4495_v30 = vmul.f32 %v4493_v31, %v4493_v31  ;;  %v4496_v32 = vmul.f32 %v4494_v24, %v4494_v24  ;;  %v4512_v0 = vmul.f32 %v4999_v25, %v4493_v31  ;;  %v4513_v40 = vmul.f32 %v4999_v25, %v4494_v24 }
0x1707   :  { %v4497_v35 = vsel %vm761_vm1, %v4495_v30, 0.0  ;;  %v4498_v52 = vsel %vm761_vm1, %v4496_v32, 0.0 }
0x1708   :  { %v4499_v5 = vadd.f32 %v4498_v52, %v4497_v35 }
0x170a   :  { %v4500_v8 = vrot.slane %v4499_v5, 4 }
0x170c   :  { %v4501_v61 = vadd.f32 %v4500_v8, %v4499_v5 }
0x170e   :  { %v4502_v18 = vrot.slane %v4501_v61, 2 }
0x1710   :  { %v4503_v26 = vadd.f32 %v4502_v18, %v4501_v61 }
0x1712   :  { %v4504_v60 = vrot.slane %v4503_v26, 1 }
0x1714   :  { %v4505_v27 = vadd.f32 %v4504_v60, %v4503_v26 }
0x1716   :  { %v4506_v29 = vmul.f32 0.0625, %v4505_v27 }
0x1718   :  { %v4514_v39 = vadd.f32 1e-05, %v4506_v29 }
0x171a   :  { %5657 = vrsqrt.f32 %v4514_v39 }
0x1727   :  { %v5658_v6 = vpop.eup %5657 }
0x1728   :  { %v4516_v41 = vmul.f32 %v5658_v6, %v4512_v0  ;;  %v4517_v63 = vmul.f32 %v5658_v6, %v4513_v40 }
0x172a   :  { %v4523_v43 = vadd.f32 %v5000_v59, %v4516_v41  ;;  %v4524_v47 = vadd.f32 %v5000_v59, %v4517_v63 }
0x172c   :  { %5547 = vmatprep.mubr.msk.f32.mxu0 %vm761_vm1, %v4523_v43 }
0x172d   :  { %5548 = vmatmul.mubr.msk.f32.vlgmr.msra.gmra.mxu0 %vm761_vm1, %v4524_v47 }
0x172e   :  { %5586 = vmatpush3.msra.mxu0 %v4727_v2 }
0x172f   :  { %5587 = vmatprep.subr.mxu0 %v4726_v22 }
0x1730   :  { %5588 = vmatpush3.msra.mxu0 %v4726_v22 }
0x1731   :  { %5589 = vmatprep.subr.mxu0 %v4725_v55 }
0x1732   :  { %5590 = vmatpush3.msra.mxu0 %v4725_v55 }
0x1733   :  { %5591 = vmatprep.subr.mxu0 %v4724_v45 }
0x1734   :  { %5592 = vmatpush3.msra.mxu0 %v4724_v45 }
0x1735   :  { %5593 = vmatprep.subr.mxu0 %v4723_v21 }
0x1736   :  { %5594 = vmatpush3.msra.mxu0 %v4723_v21 }
0x1737   :  { %5595 = vmatprep.subr.mxu0 %v4722_v38 }
0x1738   :  { %5596 = vmatpush3.msra.mxu0 %v4722_v38 }
0x1739   :  { %5597 = vmatprep.subr.mxu0 %v4721_v11 }
0x173a   :  { %5598 = vmatpush3.msra.mxu0 %v4721_v11 }
0x173b   :  { %5599 = vmatprep.subr.mxu0 %v4720_v46 }
0x173c   :  { %5600 = vmatpush3.msra.mxu0 %v4720_v46 }
0x173d   :  { %5601 = vmatprep.subr.mxu0 %v4719_v37 }
0x173e   :  { %5602 = vmatpush3.msra.mxu0 %v4719_v37 }
0x173f   :  { %5603 = vmatprep.subr.mxu0 %v4718_v28 }
0x1740   :  { %5604 = vmatpush3.msra.mxu0 %v4718_v28 }
0x1741   :  { %5605 = vmatprep.subr.mxu0 %v4717_v49 }
0x1742   :  { %5606 = vmatpush3.msra.mxu0 %v4717_v49 }
0x1743   :  { %5607 = vmatprep.subr.mxu0 %v4716_v50 }
0x1744   :  { %5608 = vmatpush3.msra.mxu0 %v4716_v50 }
0x1745   :  { %5609 = vmatprep.subr.mxu0 %v4715_v54 }
0x1746   :  { %5610 = vmatpush3.msra.mxu0 %v4715_v54 }
0x1747   :  { %5611 = vmatprep.subr.mxu0 %v4714_v19 }
0x1748   :  { %5612 = vmatpush3.msra.mxu0 %v4714_v19 }
0x1749   :  { %5613 = vmatprep.subr.mxu0 %v4713_v15 }
0x174a   :  { %5614 = vmatpush3.msra.mxu0 %v4713_v15 }
0x174b   :  { %5615 = vmatprep.subr.mxu0 %v4712_v14 }
0x174c   :  { %5616 = vmatpush3.msra.mxu0 %v4712_v14 }
0x17ed   :  { %v5549_v4 = vpop.f32.mrf.mxu0 }
0x17ee   :  { %v4609_v10 = vadd.f32 %v5549_v4, %v5001_v9 }
0x17ef   :  { %v4603_v13 = vpop.f32.mrf.mxu0 }
0x17f0   :  { %v4604_v36 = vadd.f32 %v5001_v9, %v4603_v13  ;;  %v4613_v12 = vmax.f32 %v4609_v10, 0.0 }
0x17f2   :  { %v4612_v51 = vmax.f32 %v4604_v36, 0.0 }
0x17f4   :  { %5582 = vmatprep.mubr.f32.mxu1 %v4612_v51 }
0x17f5   :  { %5583 = vmatmul.mubr.f32.vlgmr.msra.gmra.mxu1 %v4613_v12 }
0x18b5   :  { %v5584_v57 = vpop.f32.mrf.mxu1 }
0x18b6   :  { %v4707_v58 = vadd.f32 %v5584_v57, %v5004_v56 }
0x18b7   :  { %v4701_v62 = vpop.f32.mrf.mxu1 }
0x18b8   :  { %v4702_v16 = vadd.f32 %v5004_v56, %v4701_v62  ;;  %v4711_v33 = vmax.f32 %v4707_v58, 0.0 }
0x18ba   :  { %v4710_v20 = vmax.f32 %v4702_v16, 0.0 }
0x18bc   :  { %5617 = vmatprep.mubr.f32.mxu0 %v4710_v20 }
0x18bd   :  { %5618 = vmatmul.mubr.f32.vlgmr.msra.gmra.mxu0 %v4711_v33 }
0x197d   :  { %v5619_v17 = vpop.f32.mrf.mxu0 }
0x197e   :  { %v4805_v7 = vadd.f32 %v5619_v17, %v5005_v34 }
0x197f   :  { %v4799_v48 = vpop.f32.mrf.mxu0 }
0x1980   :  { %4809 = vst [vmem:[#allocation7 + $0x8] sm:$0xff] %v4805_v7  ;;  %v4800_v23 = vadd.f32 %v5005_v34, %v4799_v48 }
0x1982   :  { %4808 = vst [vmem:[#allocation7] sm:$0xff] %v4800_v23 }
0x1983   :  { %5710 = shalt.err (!%p5707_p0)
}
0x1984   :  { %4821 = dma.vmem_to_hbm [thread:$0]  %s4816_s1, 256, %s6178_s2, [#allocation4], %s5726_s12, %s5726_s12, %s5727_s13  }
0x1985   :  { %5723 = dma.done.wait [#allocation4], 256  }
0x1986   :  { %5724 = vsyncadd [#allocation4], 4294967040 }
0x1987   :  { %4825 = vsyncpa [#allocation3], 1 }
0x1988   :  { %4826 = vsyncpa [#allocation6], 1 }
0x1989   :  { %4827 = vsyncpa [#allocation4], 1 }

</bundles_post_ra>
